<compile_context>
chip_gen: v6e
topology: v6e:2x2x1
jax: 0.10.0
libtpu: 0.0.40
codegen_flags: <defaults>
</compile_context>

<pallas_src>
import jax
import jax.numpy as jnp
from jax.experimental import pallas as pl
from jax.experimental.pallas import tpu as pltpu

BN_EPS = 1e-5
SPARSE_K = 0.1
MAX_TILE_N = 2048


def _round_up(v, m):
    return -(-v // m) * m


def _pick_tile_n(n, max_tile=MAX_TILE_N):
    """Single tile for tiny batches; otherwise an even >=2-tile grid with
    tile rows a multiple of 8, capped at max_tile."""
    if n < 64:
        return n
    return min(max_tile, _round_up(pl.cdiv(n, 2), 8))


def _make_fused_kernel(n_rows, tile_n):
    needs_mask = (n_rows % tile_n) != 0

    def kernel(x_ref, w1_ref, b1_ref, w2_ref, b2_ref, w3_ref, b3_ref,
               cw_ref, h2_ref, stats_ref):
        x = x_ref[...]                                            # (T, bands) f32

        # weighter: Linear(bands,512) -> ReLU -> Linear(512,bands) -> Sigmoid
        h1 = jnp.dot(x, w1_ref[...], preferred_element_type=jnp.float32)
        h1 = jnp.maximum(h1 + b1_ref[...], 0.0)
        z = jnp.dot(h1, w2_ref[...], preferred_element_type=jnp.float32)
        cw = jax.nn.sigmoid(z + b2_ref[...])                     # channel_weights

        # Sparse threshold + band reweighting (f32 elementwise)
        sw = jnp.where(cw < SPARSE_K, 0.0, cw)
        rw = x * sw

        # classnet Linear(bands,32) + ReLU  (pre-BatchNorm features)
        h2 = jnp.dot(rw, w3_ref[...], preferred_element_type=jnp.float32)
        h2 = jnp.maximum(h2 + b3_ref[...], 0.0)

        cw_ref[...] = cw   # sparse_weights re-derived with one XLA where()
        h2_ref[...] = h2

        # Per-tile partial sums for full-batch BatchNorm statistics.
        # Mask out rows past the real batch size on a partial last tile.
        if needs_mask:
            row0 = pl.program_id(0) * tile_n
            rows = row0 + jax.lax.broadcasted_iota(jnp.int32, (tile_n, 1), 0)
            h2 = jnp.where(rows < n_rows, h2, 0.0)
        s1 = jnp.sum(h2, axis=0, keepdims=True)                  # (1, 32)
        s2 = jnp.sum(h2 * h2, axis=0, keepdims=True)             # (1, 32)
        stats_ref[...] = jnp.concatenate([s1, s2], axis=0).reshape(
            1, 2, h2.shape[-1])

    return kernel


def zhangnet_forward(x, params):
    n, bands = x.shape
    tile_n = _pick_tile_n(n)
    num_tiles = pl.cdiv(n, tile_n)

    row = lambda i: (i, 0)       # row tile of the batch
    pin = lambda i: (0, 0)       # weights / biases: same block every grid step

    cparams = pltpu.CompilerParams(
        dimension_semantics=("parallel",),        # shard row tiles across TCs
        vmem_limit_bytes=32 * 1024 * 1024,        # safe on v5e/v6e/v7x
    )

    cost = pl.CostEstimate(
        flops=2 * n * bands * (512 + 512 + 32),
        transcendentals=n * bands,                                 # sigmoid
        bytes_accessed=(4 * n * (2 * bands + 32)                   # x, cw, h2
                        + 4 * (2 * bands * 512 + bands * 32)       # weights
                        + 4 * (512 + bands + 32)                   # biases
                        + 4 * num_tiles * 2 * 32),                 # stats
    )

    cw, h2, stats = pl.pallas_call(
        _make_fused_kernel(n, tile_n),
        grid=(num_tiles,),
        in_specs=[
            pl.BlockSpec((tile_n, bands), row),    # x
            pl.BlockSpec((bands, 512), pin),       # w1
            pl.BlockSpec((1, 512), pin),           # b1
            pl.BlockSpec((512, bands), pin),       # w2
            pl.BlockSpec((1, bands), pin),         # b2
            pl.BlockSpec((bands, 32), pin),        # w3
            pl.BlockSpec((1, 32), pin),            # b3
        ],
        out_specs=(
            pl.BlockSpec((tile_n, bands), row),              # channel_weights
            pl.BlockSpec((tile_n, 32), row),                 # pre-BN features
            pl.BlockSpec((1, 2, 32), lambda i: (i, 0, 0)),   # per-tile Σh, Σh²
        ),
        out_shape=(
            jax.ShapeDtypeStruct((n, bands), jnp.float32),
            jax.ShapeDtypeStruct((n, 32), jnp.float32),
            jax.ShapeDtypeStruct((num_tiles, 2, 32), jnp.float32),
        ),
        compiler_params=cparams,
        cost_estimate=cost,
    )(x, params["w1"], params["b1"], params["w2"], params["b2"],
      params["w3"], params["b3"])

    # sparse_weights: single cheap elementwise op (keeps it off the kernel's
    # widest store path).
    sw = jnp.where(cw < SPARSE_K, 0.0, cw)

    # Full-batch BatchNorm1d statistics from the per-tile partial sums.
    sums = jnp.sum(stats, axis=0)                                # (2, 32)
    mean = sums[0] / n
    var = jnp.maximum(sums[1] / n - mean * mean, 0.0)            # biased var

    # Fold BN affine + Linear(32,1):  out = h2 @ w4f + b4f  (tiny XLA GEMV).
    gamma = params["gamma"].reshape(-1)
    beta = params["beta"].reshape(-1)
    w4 = params["w4"].reshape(-1)                                # (32,)
    b4 = params["b4"].reshape(-1)[0]
    scale = gamma * jax.lax.rsqrt(var + BN_EPS)                  # (32,)
    w4f = scale * w4                                             # (32,)
    b4f = b4 + jnp.dot(beta, w4) - jnp.dot(mean, w4f)
    out = h2 @ w4f + b4f                                         # (n,)

    return cw, sw, out


def init_params(key, bands):
    """PyTorch-default-style init: U(-1/sqrt(fan_in), 1/sqrt(fan_in)).
    Weights stored pre-transposed as (in, out); biases as (1, out)."""
    def linear(key, fan_in, fan_out):
        kw, kb = jax.random.split(key)
        bound = 1.0 / (fan_in ** 0.5)
        w = jax.random.uniform(kw, (fan_in, fan_out), jnp.float32, -bound, bound)
        b = jax.random.uniform(kb, (1, fan_out), jnp.float32, -bound, bound)
        return w, b

    k1, k2, k3, k4 = jax.random.split(key, 4)
    w1, b1 = linear(k1, bands, 512)
    w2, b2 = linear(k2, 512, bands)
    w3, b3 = linear(k3, bands, 32)
    w4, b4 = linear(k4, 32, 1)
    gamma = jnp.ones((1, 32), jnp.float32)    # BatchNorm1d weight
    beta = jnp.zeros((1, 32), jnp.float32)    # BatchNorm1d bias
    return dict(w1=w1, b1=b1, w2=w2, b2=b2, w3=w3, b3=b3,
                gamma=gamma, beta=beta, w4=w4, b4=b4)


if __name__ == "__main__":
    def reference_cw(x, p):
        h1 = jnp.maximum(x @ p["w1"] + p["b1"], 0.0)
        return jax.nn.sigmoid(h1 @ p["w2"] + p["b2"])

    def reference_tail(x, cw, p):
        # Downstream reference driven by the given channel weights (avoids
        # flakiness from f32 rounding exactly at the 0.1 threshold).
        sw = jnp.where(cw < SPARSE_K, 0.0, cw)
        h = jnp.maximum((x * sw) @ p["w3"] + p["b3"], 0.0)
        mean = jnp.mean(h, axis=0)
        var = jnp.mean(jnp.square(h - mean[None, :]), axis=0)     # biased
        h_bn = ((h - mean) * jax.lax.rsqrt(var + BN_EPS)
                * p["gamma"].reshape(-1) + p["beta"].reshape(-1))
        out = (h_bn @ p["w4"] + p["b4"]).reshape(-1)
        return sw, out

    key = jax.random.PRNGKey(0)
    fwd = jax.jit(zhangnet_forward)

    # First case: aligned two-tile grid.  Second case: partial last tile
    # (exercises the in-kernel row mask for the BN partial sums).
    for batch, bands in ((1024, 16), (200, 16)):
        kx, kp, key = jax.random.split(key, 3)
        x = jax.random.normal(kx, (batch, bands), dtype=jnp.float32)
        params = init_params(kp, bands)

        cw, sw, out = fwd(x, params)
        jax.block_until_ready((cw, sw, out))

        assert cw.shape == (batch, bands)
        assert sw.shape == (batch, bands)
        assert out.shape == (batch,)
        assert bool(jnp.all(jnp.isfinite(cw)))
        assert bool(jnp.all(jnp.isfinite(out)))

        cw_ref = reference_cw(x, params)
        sw_ref, out_ref = reference_tail(x, cw, params)
        assert float(jnp.max(jnp.abs(cw - cw_ref))) < 1e-4
        assert float(jnp.max(jnp.abs(sw - sw_ref))) < 1e-5
        assert float(jnp.max(jnp.abs(out - out_ref))) < 1e-2

    print("KERNEL_OK")
</pallas_src>

<mosaic_0001>
module attributes {stable_mosaic.version = 11 : i64} {
  func.func @kernel(%arg0: i32, %arg1: memref<512x16xf32, #tpu.memory_space<vmem>>, %arg2: memref<16x512xf32, #tpu.memory_space<vmem>>, %arg3: memref<1x512xf32, #tpu.memory_space<vmem>>, %arg4: memref<512x16xf32, #tpu.memory_space<vmem>>, %arg5: memref<1x16xf32, #tpu.memory_space<vmem>>, %arg6: memref<16x32xf32, #tpu.memory_space<vmem>>, %arg7: memref<1x32xf32, #tpu.memory_space<vmem>>, %arg8: memref<512x16xf32, #tpu.memory_space<vmem>>, %arg9: memref<512x32xf32, #tpu.memory_space<vmem>>, %arg10: memref<1x2x32xf32, #tpu.memory_space<vmem>>) attributes {dimension_semantics = [#tpu.dimension_semantics<parallel>], iteration_bounds = array<i64: 2>, scalar_prefetch = 0 : i64, scratch_operands = 0 : i64, tpu.core_type = #tpu.core_type<tc>, window_params = [{transform_indices = @transform_0, window_bounds = array<i64: 512, 16>}, {pipeline_mode = #tpu.pipeline_mode<synchronous>, transform_indices = @transform_1, window_bounds = array<i64: 16, 512>}, {pipeline_mode = #tpu.pipeline_mode<synchronous>, transform_indices = @transform_2, window_bounds = array<i64: 1, 512>}, {pipeline_mode = #tpu.pipeline_mode<synchronous>, transform_indices = @transform_3, window_bounds = array<i64: 512, 16>}, {pipeline_mode = #tpu.pipeline_mode<synchronous>, transform_indices = @transform_4, window_bounds = array<i64: 1, 16>}, {pipeline_mode = #tpu.pipeline_mode<synchronous>, transform_indices = @transform_5, window_bounds = array<i64: 16, 32>}, {pipeline_mode = #tpu.pipeline_mode<synchronous>, transform_indices = @transform_6, window_bounds = array<i64: 1, 32>}, {transform_indices = @transform_7, window_bounds = array<i64: 512, 16>}, {transform_indices = @transform_8, window_bounds = array<i64: 512, 32>}, {transform_indices = @transform_9, window_bounds = array<i64: 1, 2, 32>}]} {
    %c0 = arith.constant 0 : index
    %c0_0 = arith.constant 0 : index
    %0 = vector.load %arg1[%c0, %c0_0] : memref<512x16xf32, #tpu.memory_space<vmem>>, vector<512x16xf32>
    %c0_1 = arith.constant 0 : index
    %c0_2 = arith.constant 0 : index
    %1 = vector.load %arg2[%c0_1, %c0_2] : memref<16x512xf32, #tpu.memory_space<vmem>>, vector<16x512xf32>
    %cst = arith.constant dense<0.000000e+00> : vector<512x512xf32>
    %2 = tpu.matmul %0, %1, %cst {dimension_numbers = #tpu.dot_dimension_numbers<[1], [0], [0], [1], [0, 0, 1, 1], [], []>} : vector<512x16xf32>, vector<16x512xf32>, vector<512x512xf32> -> vector<512x512xf32>
    %c0_3 = arith.constant 0 : index
    %c0_4 = arith.constant 0 : index
    %3 = vector.load %arg3[%c0_3, %c0_4] : memref<1x512xf32, #tpu.memory_space<vmem>>, vector<1x512xf32>
    %4 = vector.broadcast %3 : vector<1x512xf32> to vector<512x512xf32>
    %5 = arith.addf %2, %4 : vector<512x512xf32>
    %cst_5 = arith.constant 0.000000e+00 : f32
    %6 = vector.broadcast %cst_5 : f32 to vector<512x512xf32>
    %7 = arith.maximumf %5, %6 : vector<512x512xf32>
    %c0_6 = arith.constant 0 : index
    %c0_7 = arith.constant 0 : index
    %8 = vector.load %arg4[%c0_6, %c0_7] : memref<512x16xf32, #tpu.memory_space<vmem>>, vector<512x16xf32>
    %cst_8 = arith.constant dense<0.000000e+00> : vector<512x16xf32>
    %9 = tpu.matmul %7, %8, %cst_8 {dimension_numbers = #tpu.dot_dimension_numbers<[1], [0], [0], [1], [0, 0, 1, 1], [], []>} : vector<512x512xf32>, vector<512x16xf32>, vector<512x16xf32> -> vector<512x16xf32>
    %c0_9 = arith.constant 0 : index
    %c0_10 = arith.constant 0 : index
    %10 = vector.load %arg5[%c0_9, %c0_10] : memref<1x16xf32, #tpu.memory_space<vmem>>, vector<1x16xf32>
    %11 = vector.broadcast %10 : vector<1x16xf32> to vector<512x16xf32>
    %12 = arith.addf %9, %11 : vector<512x16xf32>
    %13 = arith.negf %12 : vector<512x16xf32>
    %14 = math.exp %13 : vector<512x16xf32>
    %cst_11 = arith.constant 1.000000e+00 : f32
    %15 = vector.broadcast %cst_11 : f32 to vector<512x16xf32>
    %16 = arith.addf %15, %14 : vector<512x16xf32>
    %17 = arith.divf %15, %16 : vector<512x16xf32>
    %cst_12 = arith.constant 1.000000e-01 : f32
    %18 = vector.broadcast %cst_12 : f32 to vector<512x16xf32>
    %19 = arith.cmpf olt, %17, %18 : vector<512x16xf32>
    %cst_13 = arith.constant 0.000000e+00 : f32
    %20 = vector.broadcast %cst_13 : f32 to vector<512x16xf32>
    %21 = arith.select %19, %20, %17 : vector<512x16xi1>, vector<512x16xf32>
    %22 = arith.mulf %0, %21 : vector<512x16xf32>
    %c0_14 = arith.constant 0 : index
    %c0_15 = arith.constant 0 : index
    %23 = vector.load %arg6[%c0_14, %c0_15] : memref<16x32xf32, #tpu.memory_space<vmem>>, vector<16x32xf32>
    %cst_16 = arith.constant dense<0.000000e+00> : vector<512x32xf32>
    %24 = tpu.matmul %22, %23, %cst_16 {dimension_numbers = #tpu.dot_dimension_numbers<[1], [0], [0], [1], [0, 0, 1, 1], [], []>} : vector<512x16xf32>, vector<16x32xf32>, vector<512x32xf32> -> vector<512x32xf32>
    %c0_17 = arith.constant 0 : index
    %c0_18 = arith.constant 0 : index
    %25 = vector.load %arg7[%c0_17, %c0_18] : memref<1x32xf32, #tpu.memory_space<vmem>>, vector<1x32xf32>
    %26 = vector.broadcast %25 : vector<1x32xf32> to vector<512x32xf32>
    %27 = arith.addf %24, %26 : vector<512x32xf32>
    %cst_19 = arith.constant 0.000000e+00 : f32
    %28 = vector.broadcast %cst_19 : f32 to vector<512x32xf32>
    %29 = arith.maximumf %27, %28 : vector<512x32xf32>
    %c0_20 = arith.constant 0 : index
    %c0_21 = arith.constant 0 : index
    %30 = vector.load %arg8[%c0_20, %c0_21] : memref<512x16xf32, #tpu.memory_space<vmem>>, vector<512x16xf32>
    tpu.vector_store %arg8[%c0_20, %c0_21], %17 {strides = array<i32>} : memref<512x16xf32, #tpu.memory_space<vmem>>, vector<512x16xf32>,
    %c0_22 = arith.constant 0 : index
    %c0_23 = arith.constant 0 : index
    %31 = vector.load %arg9[%c0_22, %c0_23] : memref<512x32xf32, #tpu.memory_space<vmem>>, vector<512x32xf32>
    tpu.vector_store %arg9[%c0_22, %c0_23], %29 {strides = array<i32>} : memref<512x32xf32, #tpu.memory_space<vmem>>, vector<512x32xf32>,
    %cst_24 = arith.constant dense<0.000000e+00> : vector<32xf32>
    %32 = vector.multi_reduction <add>, %29, %cst_24 [0] : vector<512x32xf32> to vector<32xf32>
    %33 = vector.shape_cast %32 : vector<32xf32> to vector<1x32xf32>
    %34 = arith.mulf %29, %29 : vector<512x32xf32>
    %cst_25 = arith.constant dense<0.000000e+00> : vector<32xf32>
    %35 = vector.multi_reduction <add>, %34, %cst_25 [0] : vector<512x32xf32> to vector<32xf32>
    %36 = vector.shape_cast %35 : vector<32xf32> to vector<1x32xf32>
    %37 = tpu.concatenate %33, %36 in 0 : vector<1x32xf32>, vector<1x32xf32> -> vector<2x32xf32>
    %38 = vector.shape_cast %37 : vector<2x32xf32> to vector<1x2x32xf32>
    %c0_26 = arith.constant 0 : index
    %c0_27 = arith.constant 0 : index
    %c0_28 = arith.constant 0 : index
    %39 = vector.load %arg10[%c0_26, %c0_27, %c0_28] : memref<1x2x32xf32, #tpu.memory_space<vmem>>, vector<1x2x32xf32>
    tpu.vector_store %arg10[%c0_26, %c0_27, %c0_28], %38 {strides = array<i32>} : memref<1x2x32xf32, #tpu.memory_space<vmem>>, vector<1x2x32xf32>,
    return
  }
  func.func @transform_0(%arg0: i32) -> (i32, i32) {
    %c0_i32 = arith.constant 0 : i32
    %c0_i32_0 = arith.constant 0 : i32
    return %arg0, %c0_i32 : i32, i32
  }
  func.func @transform_1(%arg0: i32) -> (i32, i32) {
    %c0_i32 = arith.constant 0 : i32
    %c0_i32_0 = arith.constant 0 : i32
    %c0_i32_1 = arith.constant 0 : i32
    return %c0_i32, %c0_i32_0 : i32, i32
  }
  func.func @transform_2(%arg0: i32) -> (i32, i32) {
    %c0_i32 = arith.constant 0 : i32
    %c0_i32_0 = arith.constant 0 : i32
    %c0_i32_1 = arith.constant 0 : i32
    return %c0_i32, %c0_i32_0 : i32, i32
  }
  func.func @transform_3(%arg0: i32) -> (i32, i32) {
    %c0_i32 = arith.constant 0 : i32
    %c0_i32_0 = arith.constant 0 : i32
    %c0_i32_1 = arith.constant 0 : i32
    return %c0_i32, %c0_i32_0 : i32, i32
  }
  func.func @transform_4(%arg0: i32) -> (i32, i32) {
    %c0_i32 = arith.constant 0 : i32
    %c0_i32_0 = arith.constant 0 : i32
    %c0_i32_1 = arith.constant 0 : i32
    return %c0_i32, %c0_i32_0 : i32, i32
  }
  func.func @transform_5(%arg0: i32) -> (i32, i32) {
    %c0_i32 = arith.constant 0 : i32
    %c0_i32_0 = arith.constant 0 : i32
    %c0_i32_1 = arith.constant 0 : i32
    return %c0_i32, %c0_i32_0 : i32, i32
  }
  func.func @transform_6(%arg0: i32) -> (i32, i32) {
    %c0_i32 = arith.constant 0 : i32
    %c0_i32_0 = arith.constant 0 : i32
    %c0_i32_1 = arith.constant 0 : i32
    return %c0_i32, %c0_i32_0 : i32, i32
  }
  func.func @transform_7(%arg0: i32) -> (i32, i32) {
    %c0_i32 = arith.constant 0 : i32
    %c0_i32_0 = arith.constant 0 : i32
    return %arg0, %c0_i32 : i32, i32
  }
  func.func @transform_8(%arg0: i32) -> (i32, i32) {
    %c0_i32 = arith.constant 0 : i32
    %c0_i32_0 = arith.constant 0 : i32
    return %arg0, %c0_i32 : i32, i32
  }
  func.func @transform_9(%arg0: i32) -> (i32, i32, i32) {
    %c0_i32 = arith.constant 0 : i32
    %c0_i32_0 = arith.constant 0 : i32
    %c0_i32_1 = arith.constant 0 : i32
    return %arg0, %c0_i32, %c0_i32_0 : i32, i32, i32
  }
}

</mosaic_0001>

<bundles_post_ra>
// kernel: zhangnet_forward.1
= control target key start
LH: loop header
LB: loop body
LE: loop exit
PB: predicated region body
PF: predicated region fallthrough
CT: control target
= control target key end

     0   :  { %s5301_s30 = smov 0   ;;  %s7784_s0 = inlined_call_operand.vmem [shape: f32[1024,16], index: 0, kind: input, shape index: {}]   ;;  %s7785_s1 = inlined_call_operand.vmem [shape: f32[16,512], index: 1, kind: input, shape index: {}]   ;;  %s7786_s2 = inlined_call_operand.vmem [shape: f32[1,512], index: 2, kind: input, shape index: {}]   ;;  %s7787_s3 = inlined_call_operand.vmem [shape: f32[512,16], index: 3, kind: input, shape index: {}]   ;;  %s7788_s4 = inlined_call_operand.vmem [shape: f32[1,16], index: 4, kind: input, shape index: {}]   ;;  %s7789_s5 = inlined_call_operand.vmem [shape: f32[16,32], index: 5, kind: input, shape index: {}]   ;;  %s7790_s6 = inlined_call_operand.vmem [shape: f32[1,32], index: 6, kind: input, shape index: {}]   ;;  %s7791_s7 = inlined_call_operand.vmem [shape: f32[1024,16], index: 7, kind: output, shape index: {0}]   ;;  %s7792_s8 = inlined_call_operand.vmem [shape: f32[1024,32], index: 8, kind: output, shape index: {1}]   ;;  %s7793_s9 = inlined_call_operand.vmem [shape: f32[2,2,32], index: 9, kind: output, shape index: {2}]  }
   0x1 LB: > { %s5307_s10 = sadd.s32 4294967295, %s5248_s30   ;;  %p4456_p0 = scmp.ge.s32.totalorder %s5248_s30, 1  ;;  %s5248_s30 = sphi %s5301_s30, %s20_s30  }
   0x2   : > { %p293_p1 = scmp.lt.s32.totalorder %s5248_s30, 3 }
   0x4   : > { %p294_p2 = pnand %p4456_p0, %p293_p1 }
   0x6   : > { %297 = sbr.rel (%p294_p2) target bundleno = 1043 (0x413), region = 48 }
   0xb   : > { %v429_v0 = vld [vmem:[%s7785_s1 + $0x28] sm:$0xff]  ;;  %v428_v1 = vld [vmem:[%s7785_s1 + $0x20] sm:$0xff]  ;;  %s4457_s17 = sshll.u32 %s5307_s10, 6  ;;  %v431_v4 = vld [vmem:[%s7785_s1 + $0x38] sm:$0xff]  ;;  %v7794_v5 = vmov 0.0   ;;  %vm454_vm0 = vcmask 130048  }
   0xc   : > { %v425_v2 = vld [vmem:[%s7785_s1 + $0x8] sm:$0xff]  ;;  %4890 = vmatprep.subr.mxu1 %v429_v0  ;;  %675 = vmatprep.subr.mxu0 %v429_v0  ;;  %v424_v3 = vld [vmem:[%s7785_s1] sm:$0xff]  ;;  %p339_p3 = scmp.lt.s32.totalorder %s4457_s17, 127  ;;  %v430_v6 = vld [vmem:[%s7785_s1 + $0x30] sm:$0xff]  ;;  %p356_p4 = scmp.lt.s32.totalorder %s5307_s10, 1 }
   0xd   : > { %4892 = vmatpush1.msra.mxu1 %v428_v1  ;;  %676 = vmatpush1.msra.mxu0 %v428_v1  ;;  %v427_v9 = vld [vmem:[%s7785_s1 + $0x18] sm:$0xff]  ;;  %v426_v10 = vld [vmem:[%s7785_s1 + $0x10] sm:$0xff]  ;;  %v1814_v23 = vld [vmem:[%s7787_s3 + $0x68] sm:$0xff] }
   0xe   : > { %4891 = vmatprep.subr.mxu1 %v425_v2  ;;  %677 = vmatprep.subr.mxu0 %v425_v2  ;;  %s7860_s17 = smov (!%p339_p3, %s4457_s17), 127  ;;  %v1816_v11 = vld [vmem:[%s7787_s3 + $0x78] sm:$0xff]  ;;  %v1815_v20 = vld [vmem:[%s7787_s3 + $0x70] sm:$0xff]  ;;  %v1813_v26 = vld [vmem:[%s7787_s3 + $0x60] sm:$0xff]  ;;  %s7862_s10 = smov (!%p356_p4, %s5307_s10), 1 }
   0xf   : > { %4893 = vmatpush1.msra.mxu1 %v424_v3  ;;  %678 = vmatpush1.msra.mxu0 %v424_v3  ;;  %s5329_s22 = sshll.u32 %s7860_s17, 3  ;;  %v1812_v29 = vld [vmem:[%s7787_s3 + $0x58] sm:$0xff]  ;;  %v1811_v32 = vld [vmem:[%s7787_s3 + $0x50] sm:$0xff]  ;;  %v1810_v35 = vld [vmem:[%s7787_s3 + $0x48] sm:$0xff]  ;;  %s4463_s27 = sshll.u32 %s7862_s10, 1 }
  0x10   : > { %711 = vmatprep.mubr.f32.mxu0 %v7794_v5  ;;  %999 = vmatprep.mubr.f32.mxu1 %v7794_v5  ;;  %s5335_s25 = scalar_lea.vmem %s7784_s0, %s5329_s22  ;;  %v1809_v38 = vld [vmem:[%s7787_s3 + $0x40] sm:$0xff]  ;;  %v1808_v41 = vld [vmem:[%s7787_s3 + $0x38] sm:$0xff]  ;;  %v1807_v44 = vld [vmem:[%s7787_s3 + $0x30] sm:$0xff]  ;;  %s6974_s15 = scalar_lea.vmem %s7791_s7, %s5329_s22 }
  0x11   : > { %1124 = vmatprep.subr.mxu1 %v431_v4  ;;  %1872 = vmatprep.subr.mxu0 %v7794_v5  ;;  %v5342_v7 = vld [vmem:[%s5335_s25] sm:$0xff]  ;;  %v5359_v12 = vld [vmem:[%s5335_s25 + $0x8] sm:$0xff]  ;;  %v5369_v14 = vld [vmem:[%s5335_s25 + $0x10] sm:$0xff]  ;;  %s7369_s23 = scalar_lea.vmem %s7792_s8, %s5329_s22  ;;  %s359_s11 = scalar_lea.vmem %s7793_s9, %s4463_s27 }
  0x12   : > { %v408_v8 = vld [vmem:[%s5335_s25 + $0x180] sm:$0xff]  ;;  %4464 = vmatmul.mubr.msk.f32.vlgmr.msra.gmra.mxu0 %vm454_vm0, %v5342_v7  ;;  %v409_v13 = vld [vmem:[%s5335_s25 + $0x188] sm:$0xff]  ;;  %v410_v15 = vld [vmem:[%s5335_s25 + $0x190] sm:$0xff] }
  0x13   : > { %4512 = vmatmul.mubr.msk.f32.vlgmr.msra.gmra.mxu1 %vm454_vm0, %v408_v8  ;;  %717 = vmatprep.mubr.f32.mxu0 %v7794_v5  ;;  %v5380_v16 = vld [vmem:[%s5335_s25 + $0x18] sm:$0xff]  ;;  %v5389_v18 = vld [vmem:[%s5335_s25 + $0x20] sm:$0xff]  ;;  %v5401_v21 = vld [vmem:[%s5335_s25 + $0x28] sm:$0xff] }
  0x14   : > { %1125 = vmatpush1.msra.mxu1 %v430_v6  ;;  %1005 = vmatprep.mubr.f32.mxu1 %v7794_v5  ;;  %v411_v17 = vld [vmem:[%s5335_s25 + $0x198] sm:$0xff]  ;;  %v412_v19 = vld [vmem:[%s5335_s25 + $0x1a0] sm:$0xff]  ;;  %v413_v22 = vld [vmem:[%s5335_s25 + $0x1a8] sm:$0xff] }
  0x15   : > { %1126 = vmatprep.subr.mxu1 %v427_v9  ;;  %1873 = vmatpush1.msra.mxu0 %v1816_v11  ;;  %v5414_v24 = vld [vmem:[%s5335_s25 + $0x30] sm:$0xff]  ;;  %v5427_v27 = vld [vmem:[%s5335_s25 + $0x38] sm:$0xff]  ;;  %v5440_v30 = vld [vmem:[%s5335_s25 + $0x40] sm:$0xff] }
  0x16   : > { %1127 = vmatpush1.msra.mxu1 %v426_v10  ;;  %4465 = vmatmul.mubr.msk.f32.gmra.mxu0 %vm454_vm0, %v5359_v12  ;;  %v414_v25 = vld [vmem:[%s5335_s25 + $0x1b0] sm:$0xff]  ;;  %v415_v28 = vld [vmem:[%s5335_s25 + $0x1b8] sm:$0xff]  ;;  %v416_v31 = vld [vmem:[%s5335_s25 + $0x1c0] sm:$0xff] }
  0x17   : > { %4513 = vmatmul.mubr.msk.f32.gmra.mxu1 %vm454_vm0, %v409_v13  ;;  %723 = vmatprep.mubr.f32.mxu0 %v7794_v5  ;;  %v5453_v33 = vld [vmem:[%s5335_s25 + $0x48] sm:$0xff]  ;;  %v5466_v36 = vld [vmem:[%s5335_s25 + $0x50] sm:$0xff]  ;;  %v5479_v39 = vld [vmem:[%s5335_s25 + $0x58] sm:$0xff] }
  0x18   : > { %1011 = vmatprep.mubr.f32.mxu1 %v7794_v5  ;;  %2257 = vmatprep.subr.mxu1 %v7794_v5  ;;  %v417_v34 = vld [vmem:[%s5335_s25 + $0x1c8] sm:$0xff]  ;;  %v418_v37 = vld [vmem:[%s5335_s25 + $0x1d0] sm:$0xff]  ;;  %v419_v40 = vld [vmem:[%s5335_s25 + $0x1d8] sm:$0xff] }
  0x19   : > { %1874 = vmatprep.subr.mxu0 %v7794_v5  ;;  %v5492_v42 = vld [vmem:[%s5335_s25 + $0x60] sm:$0xff]  ;;  %v5505_v45 = vld [vmem:[%s5335_s25 + $0x68] sm:$0xff]  ;;  %v5518_v48 = vld [vmem:[%s5335_s25 + $0x70] sm:$0xff] }
  0x1a   : > { %4466 = vmatmul.mubr.msk.f32.gmra.mxu0 %vm454_vm0, %v5369_v14  ;;  %v420_v43 = vld [vmem:[%s5335_s25 + $0x1e0] sm:$0xff]  ;;  %v421_v46 = vld [vmem:[%s5335_s25 + $0x1e8] sm:$0xff]  ;;  %v422_v49 = vld [vmem:[%s5335_s25 + $0x1f0] sm:$0xff] }
  0x1b   : > { %4514 = vmatmul.mubr.msk.f32.gmra.mxu1 %vm454_vm0, %v410_v15  ;;  %729 = vmatprep.mubr.f32.mxu0 %v7794_v5  ;;  %v1806_v47 = vld [vmem:[%s7787_s3 + $0x28] sm:$0xff]  ;;  %v1805_v50 = vld [vmem:[%s7787_s3 + $0x20] sm:$0xff]  ;;  %v5531_v51 = vld [vmem:[%s5335_s25 + $0x78] sm:$0xff] }
  0x1c   : > { %1017 = vmatprep.mubr.f32.mxu1 %v7794_v5  ;;  %1875 = vmatpush1.msra.mxu0 %v1815_v20  ;;  %v423_v52 = vld [vmem:[%s5335_s25 + $0x1f8] sm:$0xff]  ;;  %v5544_v54 = vld [vmem:[%s5335_s25 + $0x80] sm:$0xff]  ;;  %v1847_v56 = vld [vmem:[%s7787_s3 + $0x170] sm:$0xff] }
  0x1d   : > { %1876 = vmatprep.subr.mxu0 %v7794_v5  ;;  %v1804_v53 = vld [vmem:[%s7787_s3 + $0x18] sm:$0xff]  ;;  %v1803_v57 = vld [vmem:[%s7787_s3 + $0x10] sm:$0xff]  ;;  %v5562_v58 = vld [vmem:[%s5335_s25 + $0x88] sm:$0xff] }
  0x1e   : > { %4467 = vmatmul.mubr.msk.f32.gmra.mxu0 %vm454_vm0, %v5380_v16  ;;  %v1848_v55 = vld [vmem:[%s7787_s3 + $0x178] sm:$0xff]  ;;  %v1846_v59 = vld [vmem:[%s7787_s3 + $0x168] sm:$0xff]  ;;  %v5579_v61 = vld [vmem:[%s5335_s25 + $0x90] sm:$0xff] }
  0x1f   : > { %4515 = vmatmul.mubr.msk.f32.gmra.mxu1 %vm454_vm0, %v411_v17  ;;  %735 = vmatprep.mubr.f32.mxu0 %v7794_v5  ;;  %v1802_v60 = vld [vmem:[%s7787_s3 + $0x8] sm:$0xff]  ;;  %v1845_v62 = vld [vmem:[%s7787_s3 + $0x160] sm:$0xff]  ;;  %v5596_v0 = vld [vmem:[%s5335_s25 + $0x98] sm:$0xff] }
  0x20   : > { %1023 = vmatprep.mubr.f32.mxu1 %v7794_v5  ;;  %1877 = vmatpush1.msra.mxu0 %v1814_v23  ;;  %v1801_v63 = vld [vmem:[%s7787_s3] sm:$0xff]  ;;  %v1844_v1 = vld [vmem:[%s7787_s3 + $0x158] sm:$0xff]  ;;  %v1843_v4 = vld [vmem:[%s7787_s3 + $0x150] sm:$0xff] }
  0x21   : > { %1878 = vmatprep.subr.mxu0 %v7794_v5  ;;  %v1832_v2 = vld [vmem:[%s7787_s3 + $0xf8] sm:$0xff]  ;;  %v5613_v3 = vld [vmem:[%s5335_s25 + $0xa0] sm:$0xff]  ;;  %v1831_v6 = vld [vmem:[%s7787_s3 + $0xf0] sm:$0xff] }
  0x22   : > { %4468 = vmatmul.mubr.msk.f32.gmra.mxu0 %vm454_vm0, %v5389_v18  ;;  %v1842_v8 = vld [vmem:[%s7787_s3 + $0x148] sm:$0xff]  ;;  %v5647_v10 = vld [vmem:[%s5335_s25 + $0xb0] sm:$0xff]  ;;  %v1841_v11 = vld [vmem:[%s7787_s3 + $0x140] sm:$0xff] }
  0x23   : > { %4516 = vmatmul.mubr.msk.f32.gmra.mxu1 %vm454_vm0, %v412_v19  ;;  %741 = vmatprep.mubr.f32.mxu0 %v7794_v5  ;;  %v1830_v9 = vld [vmem:[%s7787_s3 + $0xe8] sm:$0xff]  ;;  %v5664_v13 = vld [vmem:[%s5335_s25 + $0xb8] sm:$0xff]  ;;  %v1839_v17 = vld [vmem:[%s7787_s3 + $0x130] sm:$0xff] }
  0x24   : > { %1029 = vmatprep.mubr.f32.mxu1 %v7794_v5  ;;  %1879 = vmatpush1.msra.mxu0 %v1813_v26  ;;  %v1828_v15 = vld [vmem:[%s7787_s3 + $0xd8] sm:$0xff]  ;;  %v5698_v19 = vld [vmem:[%s5335_s25 + $0xc8] sm:$0xff]  ;;  %v1837_v23 = vld [vmem:[%s7787_s3 + $0x120] sm:$0xff] }
  0x25   : > { %1880 = vmatprep.subr.mxu0 %v7794_v5  ;;  %v1838_v20 = vld [vmem:[%s7787_s3 + $0x128] sm:$0xff]  ;;  %v1836_v26 = vld [vmem:[%s7787_s3 + $0x118] sm:$0xff] }
  0x26   : > { %4469 = vmatmul.mubr.msk.f32.gmra.mxu0 %vm454_vm0, %v5401_v21 }
  0x27   : > { %4517 = vmatmul.mubr.msk.f32.gmra.mxu1 %vm454_vm0, %v413_v22  ;;  %747 = vmatprep.mubr.f32.mxu0 %v7794_v5  ;;  %v5715_v22 = vld [vmem:[%s5335_s25 + $0xd0] sm:$0xff] }
  0x28   : > { %1035 = vmatprep.mubr.f32.mxu1 %v7794_v5  ;;  %1881 = vmatpush1.msra.mxu0 %v1812_v29  ;;  %v1835_v29 = vld [vmem:[%s7787_s3 + $0x110] sm:$0xff] }
  0x29   : > { %1882 = vmatprep.subr.mxu0 %v7794_v5 }
  0x2a   : > { %4470 = vmatmul.mubr.msk.f32.gmra.mxu0 %vm454_vm0, %v5414_v24 }
  0x2b   : > { %4518 = vmatmul.mubr.msk.f32.gmra.mxu1 %vm454_vm0, %v414_v25  ;;  %753 = vmatprep.mubr.f32.mxu0 %v7794_v5  ;;  %v5732_v25 = vld [vmem:[%s5335_s25 + $0xd8] sm:$0xff] }
  0x2c   : > { %1041 = vmatprep.mubr.f32.mxu1 %v7794_v5  ;;  %1883 = vmatpush1.msra.mxu0 %v1811_v32  ;;  %v1834_v32 = vld [vmem:[%s7787_s3 + $0x108] sm:$0xff] }
  0x2d   : > { %1884 = vmatprep.subr.mxu0 %v7794_v5 }
  0x2e   : > { %4471 = vmatmul.mubr.msk.f32.gmra.mxu0 %vm454_vm0, %v5427_v27 }
  0x2f   : > { %4519 = vmatmul.mubr.msk.f32.gmra.mxu1 %vm454_vm0, %v415_v28  ;;  %759 = vmatprep.mubr.f32.mxu0 %v7794_v5  ;;  %v5749_v28 = vld [vmem:[%s5335_s25 + $0xe0] sm:$0xff] }
  0x30   : > { %1047 = vmatprep.mubr.f32.mxu1 %v7794_v5  ;;  %1885 = vmatpush1.msra.mxu0 %v1810_v35  ;;  %v1833_v35 = vld [vmem:[%s7787_s3 + $0x100] sm:$0xff] }
  0x31   : > { %1886 = vmatprep.subr.mxu0 %v7794_v5 }
  0x32   : > { %4472 = vmatmul.mubr.msk.f32.gmra.mxu0 %vm454_vm0, %v5440_v30 }
  0x33   : > { %4520 = vmatmul.mubr.msk.f32.gmra.mxu1 %vm454_vm0, %v416_v31  ;;  %765 = vmatprep.mubr.f32.mxu0 %v7794_v5  ;;  %v5766_v31 = vld [vmem:[%s5335_s25 + $0xe8] sm:$0xff] }
  0x34   : > { %1053 = vmatprep.mubr.f32.mxu1 %v7794_v5  ;;  %1887 = vmatpush1.msra.mxu0 %v1809_v38  ;;  %v1864_v38 = vld [vmem:[%s7787_s3 + $0x1f8] sm:$0xff] }
  0x35   : > { %1888 = vmatprep.subr.mxu0 %v7794_v5 }
  0x36   : > { %4473 = vmatmul.mubr.msk.f32.gmra.mxu0 %vm454_vm0, %v5453_v33 }
  0x37   : > { %4521 = vmatmul.mubr.msk.f32.gmra.mxu1 %vm454_vm0, %v417_v34  ;;  %771 = vmatprep.mubr.f32.mxu0 %v7794_v5  ;;  %v5783_v34 = vld [vmem:[%s5335_s25 + $0xf0] sm:$0xff] }
  0x38   : > { %1059 = vmatprep.mubr.f32.mxu1 %v7794_v5  ;;  %1889 = vmatpush1.msra.mxu0 %v1808_v41  ;;  %v1819_v41 = vld [vmem:[%s7787_s3 + $0x90] sm:$0xff] }
  0x39   : > { %1890 = vmatprep.subr.mxu0 %v7794_v5 }
  0x3a   : > { %4474 = vmatmul.mubr.msk.f32.gmra.mxu0 %vm454_vm0, %v5466_v36 }
  0x3b   : > { %4522 = vmatmul.mubr.msk.f32.gmra.mxu1 %vm454_vm0, %v418_v37  ;;  %777 = vmatprep.mubr.f32.mxu0 %v7794_v5  ;;  %v5800_v37 = vld [vmem:[%s5335_s25 + $0xf8] sm:$0xff] }
  0x3c   : > { %1065 = vmatprep.mubr.f32.mxu1 %v7794_v5  ;;  %1891 = vmatpush1.msra.mxu0 %v1807_v44  ;;  %v1818_v44 = vld [vmem:[%s7787_s3 + $0x88] sm:$0xff] }
  0x3d   : > { %1892 = vmatprep.subr.mxu0 %v7794_v5 }
  0x3e   : > { %4475 = vmatmul.mubr.msk.f32.gmra.mxu0 %vm454_vm0, %v5479_v39 }
  0x3f   : > { %4523 = vmatmul.mubr.msk.f32.gmra.mxu1 %vm454_vm0, %v419_v40  ;;  %783 = vmatprep.mubr.f32.mxu0 %v7794_v5  ;;  %v5817_v40 = vld [vmem:[%s5335_s25 + $0x100] sm:$0xff] }
  0x40   : > { %1071 = vmatprep.mubr.f32.mxu1 %v7794_v5  ;;  %1893 = vmatpush1.msra.mxu0 %v1806_v47  ;;  %v1817_v47 = vld [vmem:[%s7787_s3 + $0x80] sm:$0xff] }
  0x41   : > { %1894 = vmatprep.subr.mxu0 %v7794_v5 }
  0x42   : > { %4476 = vmatmul.mubr.msk.f32.gmra.mxu0 %vm454_vm0, %v5492_v42 }
  0x43   : > { %4524 = vmatmul.mubr.msk.f32.gmra.mxu1 %vm454_vm0, %v420_v43  ;;  %789 = vmatprep.mubr.f32.mxu0 %v7794_v5  ;;  %v5834_v43 = vld [vmem:[%s5335_s25 + $0x108] sm:$0xff] }
  0x44   : > { %1077 = vmatprep.mubr.f32.mxu1 %v7794_v5  ;;  %1895 = vmatpush1.msra.mxu0 %v1805_v50  ;;  %v1860_v50 = vld [vmem:[%s7787_s3 + $0x1d8] sm:$0xff] }
  0x45   : > { %1896 = vmatprep.subr.mxu0 %v7794_v5 }
  0x46   : > { %4477 = vmatmul.mubr.msk.f32.gmra.mxu0 %vm454_vm0, %v5505_v45 }
  0x47   : > { %4525 = vmatmul.mubr.msk.f32.gmra.mxu1 %vm454_vm0, %v421_v46  ;;  %795 = vmatprep.mubr.f32.mxu0 %v7794_v5  ;;  %v5851_v46 = vld [vmem:[%s5335_s25 + $0x110] sm:$0xff] }
  0x48   : > { %1083 = vmatprep.mubr.f32.mxu1 %v7794_v5  ;;  %1897 = vmatpush1.msra.mxu0 %v1804_v53  ;;  %v5895_v53 = vld [vmem:[%s5335_s25 + $0x128] sm:$0xff] }
  0x49   : > { %1898 = vmatprep.subr.mxu0 %v7794_v5 }
  0x4a   : > { %4478 = vmatmul.mubr.msk.f32.gmra.mxu0 %vm454_vm0, %v5518_v48 }
  0x4b   : > { %4526 = vmatmul.mubr.msk.f32.gmra.mxu1 %vm454_vm0, %v422_v49  ;;  %801 = vmatprep.mubr.f32.mxu0 %v7794_v5  ;;  %v5868_v49 = vld [vmem:[%s5335_s25 + $0x118] sm:$0xff] }
  0x4c   : > { %1089 = vmatprep.mubr.f32.mxu1 %v7794_v5  ;;  %1899 = vmatpush1.msra.mxu0 %v1803_v57  ;;  %v5921_v57 = vld [vmem:[%s5335_s25 + $0x138] sm:$0xff] }
  0x4d   : > { %1900 = vmatprep.subr.mxu0 %v7794_v5 }
  0x4e   : > { %4479 = vmatmul.mubr.msk.f32.gmra.mxu0 %vm454_vm0, %v5531_v51 }
  0x4f   : > { %4527 = vmatmul.mubr.msk.f32.gmra.mxu1 %vm454_vm0, %v423_v52  ;;  %807 = vmatprep.mubr.f32.mxu0 %v7794_v5  ;;  %v1859_v52 = vld [vmem:[%s7787_s3 + $0x1d0] sm:$0xff] }
  0x50   : > { %1160 = vmatprep.mubr.f32.mxu1 %v7794_v5  ;;  %1901 = vmatpush1.msra.mxu0 %v1802_v60  ;;  %v1855_v60 = vld [vmem:[%s7787_s3 + $0x1b0] sm:$0xff] }
  0x51   : > { %1902 = vmatprep.subr.mxu0 %v7794_v5 }
  0x52   : > { %4480 = vmatmul.mubr.msk.f32.gmra.mxu0 %vm454_vm0, %v5544_v54 }
  0x53   : > { %4528 = vmatmul.mubr.msk.f32.vlgmr.msra.gmra.mxu1 %vm454_vm0, %v5342_v7  ;;  %813 = vmatprep.mubr.f32.mxu0 %v7794_v5  ;;  %v5630_v7 = vld [vmem:[%s5335_s25 + $0xa8] sm:$0xff] }
  0x54   : > { %2258 = vmatpush1.msra.mxu1 %v1848_v55  ;;  %1166 = vmatprep.mubr.f32.mxu1 %v7794_v5  ;;  %v5908_v55 = vld [vmem:[%s5335_s25 + $0x130] sm:$0xff] }
  0x55   : > { %2259 = vmatprep.subr.mxu1 %v7794_v5  ;;  %1903 = vmatpush1.msra.mxu0 %v1801_v63  ;;  %v5960_v63 = vld [vmem:[%s5335_s25 + $0x150] sm:$0xff] }
  0x56   : > { %2260 = vmatpush1.msra.mxu1 %v1847_v56  ;;  %4481 = vmatmul.mubr.msk.f32.gmra.mxu0 %vm454_vm0, %v5562_v58  ;;  %v1857_v56 = vld [vmem:[%s7787_s3 + $0x1c0] sm:$0xff] }
  0x57   : > { %4529 = vmatmul.mubr.msk.f32.gmra.mxu1 %vm454_vm0, %v5359_v12  ;;  %819 = vmatprep.mubr.f32.mxu0 %v7794_v5  ;;  %v1829_v12 = vld [vmem:[%s7787_s3 + $0xe0] sm:$0xff] }
  0x58   : > { %1172 = vmatprep.mubr.f32.mxu1 %v7794_v5  ;;  %2261 = vmatprep.subr.mxu1 %v7794_v5 }
  0x59   : > { %2262 = vmatpush1.msra.mxu1 %v1846_v59  ;;  %1904 = vmatprep.subr.mxu0 %v7794_v5  ;;  %v5934_v59 = vld [vmem:[%s5335_s25 + $0x140] sm:$0xff] }
  0x5a   : > { %4482 = vmatmul.mubr.msk.f32.gmra.mxu0 %vm454_vm0, %v5579_v61  ;;  %2263 = vmatprep.subr.mxu1 %v7794_v5 }
  0x5b   : > { %4530 = vmatmul.mubr.msk.f32.gmra.mxu1 %vm454_vm0, %v5369_v14  ;;  %825 = vmatprep.mubr.f32.mxu0 %v7794_v5  ;;  %v1840_v14 = vld [vmem:[%s7787_s3 + $0x138] sm:$0xff] }
  0x5c   : > { %1178 = vmatprep.mubr.f32.mxu1 %v7794_v5  ;;  %2264 = vmatpush1.msra.mxu1 %v1845_v62  ;;  %v1854_v62 = vld [vmem:[%s7787_s3 + $0x1a8] sm:$0xff] }
  0x5d   : > { %2265 = vmatprep.subr.mxu1 %v7794_v5  ;;  %1905 = vmatpush2.msra.mxu0 %v1832_v2  ;;  %v1852_v2 = vld [vmem:[%s7787_s3 + $0x198] sm:$0xff] }
  0x5e   : > { %4483 = vmatmul.mubr.msk.f32.gmra.mxu0 %vm454_vm0, %v5596_v0  ;;  %2266 = vmatpush1.msra.mxu1 %v1844_v1  ;;  %v5973_v1 = vld [vmem:[%s5335_s25 + $0x158] sm:$0xff] }
  0x5f   : > { %4531 = vmatmul.mubr.msk.f32.gmra.mxu1 %vm454_vm0, %v5380_v16  ;;  %831 = vmatprep.mubr.f32.mxu0 %v7794_v5  ;;  %v5681_v16 = vld [vmem:[%s5335_s25 + $0xc0] sm:$0xff] }
  0x60   : > { %1184 = vmatprep.mubr.f32.mxu1 %v7794_v5  ;;  %2267 = vmatprep.subr.mxu1 %v7794_v5 }
  0x61   : > { %1906 = vmatprep.subr.mxu0 %v7794_v5  ;;  %2268 = vmatpush1.msra.mxu1 %v1843_v4  ;;  %v1851_v4 = vld [vmem:[%s7787_s3 + $0x190] sm:$0xff] }
  0x62   : > { %4484 = vmatmul.mubr.msk.f32.gmra.mxu0 %vm454_vm0, %v5613_v3  ;;  %2269 = vmatprep.subr.mxu1 %v7794_v5 }
  0x63   : > { %4532 = vmatmul.mubr.msk.f32.gmra.mxu1 %vm454_vm0, %v5389_v18  ;;  %837 = vmatprep.mubr.f32.mxu0 %v7794_v5  ;;  %v1827_v18 = vld [vmem:[%s7787_s3 + $0xd0] sm:$0xff] }
  0x64   : > { %1190 = vmatprep.mubr.f32.mxu1 %v7794_v5  ;;  %1907 = vmatpush2.msra.mxu0 %v1831_v6  ;;  %v5999_v6 = vld [vmem:[%s5335_s25 + $0x168] sm:$0xff] }
  0x65   : > { %1908 = vmatprep.subr.mxu0 %v7794_v5  ;;  %2270 = vmatpush1.msra.mxu1 %v1842_v8  ;;  %v1850_v8 = vld [vmem:[%s7787_s3 + $0x188] sm:$0xff] }
  0x66   : > { %4485 = vmatmul.mubr.msk.f32.gmra.mxu0 %vm454_vm0, %v5630_v7  ;;  %2271 = vmatprep.subr.mxu1 %v7794_v5 }
  0x67   : > { %4533 = vmatmul.mubr.msk.f32.gmra.mxu1 %vm454_vm0, %v5401_v21  ;;  %843 = vmatprep.mubr.f32.mxu0 %v7794_v5  ;;  %v1826_v21 = vld [vmem:[%s7787_s3 + $0xc8] sm:$0xff] }
  0x68   : > { %1196 = vmatprep.mubr.f32.mxu1 %v7794_v5  ;;  %1909 = vmatpush2.msra.mxu0 %v1830_v9  ;;  %v6012_v9 = vld [vmem:[%s5335_s25 + $0x170] sm:$0xff] }
  0x69   : > { %1910 = vmatprep.subr.mxu0 %v7794_v5  ;;  %2272 = vmatpush1.msra.mxu1 %v1841_v11  ;;  %v6024_v11 = vld [vmem:[%s5335_s25 + $0x178] sm:$0xff] }
  0x6a   : > { %4486 = vmatmul.mubr.msk.f32.gmra.mxu0 %vm454_vm0, %v5647_v10  ;;  %2273 = vmatprep.subr.mxu1 %v7794_v5 }
  0x6b   : > { %4534 = vmatmul.mubr.msk.f32.gmra.mxu1 %vm454_vm0, %v5414_v24  ;;  %849 = vmatprep.mubr.f32.mxu0 %v7794_v5  ;;  %v1825_v24 = vld [vmem:[%s7787_s3 + $0xc0] sm:$0xff] }
  0x6c   : > { %1202 = vmatprep.mubr.f32.mxu1 %v7794_v5  ;;  %1911 = vmatpush2.msra.mxu0 %v1829_v12 }
  0x6d   : > { %1912 = vmatprep.subr.mxu0 %v7794_v5  ;;  %2274 = vmatpush1.msra.mxu1 %v1840_v14  ;;  %v1849_v14 = vld [vmem:[%s7787_s3 + $0x180] sm:$0xff] }
  0x6e   : > { %4487 = vmatmul.mubr.msk.f32.gmra.mxu0 %vm454_vm0, %v5664_v13  ;;  %2275 = vmatprep.subr.mxu1 %v7794_v5 }
  0x6f   : > { %4535 = vmatmul.mubr.msk.f32.gmra.mxu1 %vm454_vm0, %v5427_v27  ;;  %855 = vmatprep.mubr.f32.mxu0 %v7794_v5  ;;  %v1824_v27 = vld [vmem:[%s7787_s3 + $0xb8] sm:$0xff] }
  0x70   : > { %1208 = vmatprep.mubr.f32.mxu1 %v7794_v5  ;;  %1913 = vmatpush2.msra.mxu0 %v1828_v15  ;;  %v6039_v15 = vld [vmem:[%s7786_s2] sm:$0xf] }
  0x71   : > { %1914 = vmatprep.subr.mxu0 %v7794_v5  ;;  %2276 = vmatpush1.msra.mxu1 %v1839_v17 }
  0x72   : > { %4488 = vmatmul.mubr.msk.f32.gmra.mxu0 %vm454_vm0, %v5681_v16  ;;  %2277 = vmatprep.subr.mxu1 %v7794_v5 }
  0x73   : > { %4536 = vmatmul.mubr.msk.f32.gmra.mxu1 %vm454_vm0, %v5440_v30  ;;  %861 = vmatprep.mubr.f32.mxu0 %v7794_v5  ;;  %v1823_v30 = vld [vmem:[%s7787_s3 + $0xb0] sm:$0xff] }
  0x74   : > { %1214 = vmatprep.mubr.f32.mxu1 %v7794_v5  ;;  %1915 = vmatpush2.msra.mxu0 %v1827_v18 }
  0x75   : > { %1916 = vmatprep.subr.mxu0 %v7794_v5  ;;  %2278 = vmatpush1.msra.mxu1 %v1838_v20 }
  0x76   : > { %4489 = vmatmul.mubr.msk.f32.gmra.mxu0 %vm454_vm0, %v5698_v19  ;;  %2279 = vmatprep.subr.mxu1 %v7794_v5 }
  0x77   : > { %4537 = vmatmul.mubr.msk.f32.gmra.mxu1 %vm454_vm0, %v5453_v33  ;;  %867 = vmatprep.mubr.f32.mxu0 %v7794_v5  ;;  %v1822_v33 = vld [vmem:[%s7787_s3 + $0xa8] sm:$0xff] }
  0x78   : > { %1220 = vmatprep.mubr.f32.mxu1 %v7794_v5  ;;  %1917 = vmatpush2.msra.mxu0 %v1826_v21 }
  0x79   : > { %1918 = vmatprep.subr.mxu0 %v7794_v5  ;;  %2280 = vmatpush1.msra.mxu1 %v1837_v23 }
  0x7a   : > { %4490 = vmatmul.mubr.msk.f32.gmra.mxu0 %vm454_vm0, %v5715_v22  ;;  %2281 = vmatprep.subr.mxu1 %v7794_v5 }
  0x7b   : > { %4538 = vmatmul.mubr.msk.f32.gmra.mxu1 %vm454_vm0, %v5466_v36  ;;  %873 = vmatprep.mubr.f32.mxu0 %v7794_v5  ;;  %v1821_v36 = vld [vmem:[%s7787_s3 + $0xa0] sm:$0xff] }
  0x7c   : > { %1226 = vmatprep.mubr.f32.mxu1 %v7794_v5  ;;  %1919 = vmatpush2.msra.mxu0 %v1825_v24 }
  0x7d   : > { %1920 = vmatprep.subr.mxu0 %v7794_v5  ;;  %2282 = vmatpush1.msra.mxu1 %v1836_v26 }
  0x7e   : > { %4491 = vmatmul.mubr.msk.f32.gmra.mxu0 %vm454_vm0, %v5732_v25  ;;  %2283 = vmatprep.subr.mxu1 %v7794_v5 }
  0x7f   : > { %4539 = vmatmul.mubr.msk.f32.gmra.mxu1 %vm454_vm0, %v5479_v39  ;;  %879 = vmatprep.mubr.f32.mxu0 %v7794_v5  ;;  %v1820_v39 = vld [vmem:[%s7787_s3 + $0x98] sm:$0xff] }
  0x80   : > { %1232 = vmatprep.mubr.f32.mxu1 %v7794_v5  ;;  %1921 = vmatpush2.msra.mxu0 %v1824_v27 }
  0x81   : > { %1922 = vmatprep.subr.mxu0 %v7794_v5  ;;  %2284 = vmatpush1.msra.mxu1 %v1835_v29 }
  0x82   : > { %4492 = vmatmul.mubr.msk.f32.gmra.mxu0 %vm454_vm0, %v5749_v28  ;;  %2285 = vmatprep.subr.mxu1 %v7794_v5 }
  0x83   : > { %4540 = vmatmul.mubr.msk.f32.gmra.mxu1 %vm454_vm0, %v5492_v42  ;;  %885 = vmatprep.mubr.f32.mxu0 %v7794_v5  ;;  %v1863_v42 = vld [vmem:[%s7787_s3 + $0x1f0] sm:$0xff] }
  0x84   : > { %1238 = vmatprep.mubr.f32.mxu1 %v7794_v5  ;;  %1923 = vmatpush2.msra.mxu0 %v1823_v30 }
  0x85   : > { %1924 = vmatprep.subr.mxu0 %v7794_v5  ;;  %2286 = vmatpush1.msra.mxu1 %v1834_v32 }
  0x86   : > { %4493 = vmatmul.mubr.msk.f32.gmra.mxu0 %vm454_vm0, %v5766_v31  ;;  %2287 = vmatprep.subr.mxu1 %v7794_v5 }
  0x87   : > { %4541 = vmatmul.mubr.msk.f32.gmra.mxu1 %vm454_vm0, %v5505_v45  ;;  %891 = vmatprep.mubr.f32.mxu0 %v7794_v5  ;;  %v1862_v45 = vld [vmem:[%s7787_s3 + $0x1e8] sm:$0xff] }
  0x88   : > { %1244 = vmatprep.mubr.f32.mxu1 %v7794_v5  ;;  %1925 = vmatpush2.msra.mxu0 %v1822_v33 }
  0x89   : > { %1926 = vmatprep.subr.mxu0 %v7794_v5  ;;  %2288 = vmatpush1.msra.mxu1 %v1833_v35 }
  0x8a   : > { %4494 = vmatmul.mubr.msk.f32.gmra.mxu0 %vm454_vm0, %v5783_v34  ;;  %2289 = vmatprep.subr.mxu1 %v7794_v5 }
  0x8b   : > { %4542 = vmatmul.mubr.msk.f32.gmra.mxu1 %vm454_vm0, %v5518_v48  ;;  %897 = vmatprep.mubr.f32.mxu0 %v7794_v5  ;;  %v1861_v48 = vld [vmem:[%s7787_s3 + $0x1e0] sm:$0xff] }
  0x8c   : > { %1250 = vmatprep.mubr.f32.mxu1 %v7794_v5  ;;  %1927 = vmatpush2.msra.mxu0 %v1821_v36 }
  0x8d   : > { %1928 = vmatprep.subr.mxu0 %v7794_v5  ;;  %2290 = vmatpush2.msra.mxu1 %v1864_v38 }
  0x8e   : > { %4495 = vmatmul.mubr.msk.f32.gmra.mxu0 %vm454_vm0, %v5800_v37  ;;  %2291 = vmatprep.subr.mxu1 %v7794_v5 }
  0x8f   : > { %4543 = vmatmul.mubr.msk.f32.gmra.mxu1 %vm454_vm0, %v5531_v51  ;;  %903 = vmatprep.mubr.f32.mxu0 %v7794_v5  ;;  %v5882_v51 = vld [vmem:[%s5335_s25 + $0x120] sm:$0xff] }
  0x90   : > { %1256 = vmatprep.mubr.f32.mxu1 %v7794_v5  ;;  %1929 = vmatpush2.msra.mxu0 %v1820_v39 }
  0x91   : > { %1930 = vmatprep.subr.mxu0 %v7794_v5  ;;  %2292 = vmatpush2.msra.mxu1 %v1863_v42 }
  0x92   : > { %4496 = vmatmul.mubr.msk.f32.gmra.mxu0 %vm454_vm0, %v5817_v40  ;;  %2293 = vmatprep.subr.mxu1 %v7794_v5 }
  0x93   : > { %4544 = vmatmul.mubr.msk.f32.gmra.mxu1 %vm454_vm0, %v5544_v54  ;;  %909 = vmatprep.mubr.f32.mxu0 %v7794_v5  ;;  %v1858_v54 = vld [vmem:[%s7787_s3 + $0x1c8] sm:$0xff] }
  0x94   : > { %1262 = vmatprep.mubr.f32.mxu1 %v7794_v5  ;;  %1931 = vmatpush2.msra.mxu0 %v1819_v41 }
  0x95   : > { %1932 = vmatprep.subr.mxu0 %v7794_v5  ;;  %2294 = vmatpush2.msra.mxu1 %v1862_v45 }
  0x96   : > { %4497 = vmatmul.mubr.msk.f32.gmra.mxu0 %vm454_vm0, %v5834_v43  ;;  %2295 = vmatprep.subr.mxu1 %v7794_v5 }
  0x97   : > { %4545 = vmatmul.mubr.msk.f32.gmra.mxu1 %vm454_vm0, %v5562_v58  ;;  %915 = vmatprep.mubr.f32.mxu0 %v7794_v5  ;;  %v1856_v58 = vld [vmem:[%s7787_s3 + $0x1b8] sm:$0xff] }
  0x98   : > { %1268 = vmatprep.mubr.f32.mxu1 %v7794_v5  ;;  %1933 = vmatpush2.msra.mxu0 %v1818_v44 }
  0x99   : > { %1934 = vmatprep.subr.mxu0 %v7794_v5  ;;  %2296 = vmatpush2.msra.mxu1 %v1861_v48 }
  0x9a   : > { %4498 = vmatmul.mubr.msk.f32.gmra.mxu0 %vm454_vm0, %v5851_v46  ;;  %2297 = vmatprep.subr.mxu1 %v7794_v5 }
  0x9b   : > { %4546 = vmatmul.mubr.msk.f32.gmra.mxu1 %vm454_vm0, %v5579_v61  ;;  %921 = vmatprep.mubr.f32.mxu0 %v7794_v5  ;;  %v5947_v61 = vld [vmem:[%s5335_s25 + $0x148] sm:$0xff] }
  0x9c   : > { %1274 = vmatprep.mubr.f32.mxu1 %v7794_v5  ;;  %1935 = vmatpush2.msra.mxu0 %v1817_v47 }
  0x9d   : > { %2298 = vmatpush2.msra.mxu1 %v1860_v50 }
  0x9e   : > { %4499 = vmatmul.mubr.msk.f32.gmra.mxu0 %vm454_vm0, %v5868_v49  ;;  %2299 = vmatprep.subr.mxu1 %v7794_v5 }
  0x9f   : > { %4547 = vmatmul.mubr.msk.f32.gmra.mxu1 %vm454_vm0, %v5596_v0  ;;  %927 = vmatprep.mubr.f32.mxu0 %v7794_v5  ;;  %v1853_v0 = vld [vmem:[%s7787_s3 + $0x1a0] sm:$0xff] }
  0xa0   : > { %1280 = vmatprep.mubr.f32.mxu1 %v7794_v5  ;;  %2300 = vmatpush2.msra.mxu1 %v1859_v52 }
  0xa1   : > { %2301 = vmatprep.subr.mxu1 %v7794_v5 }
  0xa2   : > { %4500 = vmatmul.mubr.msk.f32.gmra.mxu0 %vm454_vm0, %v5882_v51  ;;  %2302 = vmatpush2.msra.mxu1 %v1858_v54 }
  0xa3   : > { %4548 = vmatmul.mubr.msk.f32.gmra.mxu1 %vm454_vm0, %v5613_v3  ;;  %933 = vmatprep.mubr.f32.mxu0 %v7794_v5  ;;  %v5986_v3 = vld [vmem:[%s5335_s25 + $0x160] sm:$0xff] }
  0xa4   : > { %1286 = vmatprep.mubr.f32.mxu1 %v7794_v5  ;;  %2303 = vmatprep.subr.mxu1 %v7794_v5 }
  0xa5   : > { %2304 = vmatpush2.msra.mxu1 %v1857_v56 }
  0xa6   : > { %4501 = vmatmul.mubr.msk.f32.gmra.mxu0 %vm454_vm0, %v5895_v53  ;;  %2305 = vmatprep.subr.mxu1 %v7794_v5 }
  0xa7   : > { %4549 = vmatmul.mubr.msk.f32.gmra.mxu1 %vm454_vm0, %v5630_v7  ;;  %939 = vmatprep.mubr.f32.mxu0 %v7794_v5  ;;  %v434_v7 = vlaneseq }
  0xa8   : > { %1292 = vmatprep.mubr.f32.mxu1 %v7794_v5  ;;  %2306 = vmatpush2.msra.mxu1 %v1856_v58 }
  0xa9   : > { %2307 = vmatprep.subr.mxu1 %v7794_v5 }
  0xaa   : > { %4502 = vmatmul.mubr.msk.f32.gmra.mxu0 %vm454_vm0, %v5908_v55  ;;  %2308 = vmatpush2.msra.mxu1 %v1855_v60 }
  0xab   : > { %4550 = vmatmul.mubr.msk.f32.gmra.mxu1 %vm454_vm0, %v5647_v10  ;;  %945 = vmatprep.mubr.f32.mxu0 %v7794_v5  ;;  %v6015_v10 = vshrl.u32 %v434_v7, 7 }
  0xac   : > { %1298 = vmatprep.mubr.f32.mxu1 %v7794_v5  ;;  %2309 = vmatprep.subr.mxu1 %v7794_v5 }
  0xad   : > { %2310 = vmatpush2.msra.mxu1 %v1854_v62  ;;  %v436_v12 = vsub.s32 0, %v6015_v10 }
  0xae   : > { %4503 = vmatmul.mubr.msk.f32.gmra.mxu0 %vm454_vm0, %v5921_v57  ;;  %2311 = vmatprep.subr.mxu1 %v7794_v5 }
  0xaf   : > { %4551 = vmatmul.mubr.msk.f32.gmra.mxu1 %vm454_vm0, %v5664_v13  ;;  %951 = vmatprep.mubr.f32.mxu0 %v7794_v5  ;;  %v440_v13 = vsub.s32 1, %v6015_v10 }
  0xb0   : > { %1304 = vmatprep.mubr.f32.mxu1 %v7794_v5  ;;  %2312 = vmatpush2.msra.mxu1 %v1853_v0 }
  0xb1   : > { %2313 = vmatprep.subr.mxu1 %v7794_v5  ;;  %v6046_v17 = vrot.slane %v6039_v15, %v440_v13 }
  0xb2   : > { %4504 = vmatmul.mubr.msk.f32.gmra.mxu0 %vm454_vm0, %v5934_v59  ;;  %2314 = vmatpush2.msra.mxu1 %v1852_v2 }
  0xb3   : > { %4552 = vmatmul.mubr.msk.f32.gmra.mxu1 %vm454_vm0, %v5681_v16  ;;  %957 = vmatprep.mubr.f32.mxu0 %v7794_v5  ;;  %v6043_v16 = vrot.slane %v6039_v15, %v436_v12 }
  0xb4   : > { %1310 = vmatprep.mubr.f32.mxu1 %v7794_v5  ;;  %2315 = vmatprep.subr.mxu1 %v7794_v5 }
  0xb5   : > { %2316 = vmatpush2.msra.mxu1 %v1851_v4 }
  0xb6   : > { %4505 = vmatmul.mubr.msk.f32.gmra.mxu0 %vm454_vm0, %v5947_v61  ;;  %2317 = vmatprep.subr.mxu1 %v7794_v5 }
  0xb7   : > { %4553 = vmatmul.mubr.msk.f32.gmra.mxu1 %vm454_vm0, %v5698_v19  ;;  %963 = vmatprep.mubr.f32.mxu0 %v7794_v5 }
  0xb8   : > { %1316 = vmatprep.mubr.f32.mxu1 %v7794_v5  ;;  %2318 = vmatpush2.msra.mxu1 %v1850_v8 }
  0xb9   : > { %2319 = vmatprep.subr.mxu1 %v7794_v5 }
  0xba   : > { %4506 = vmatmul.mubr.msk.f32.gmra.mxu0 %vm454_vm0, %v5960_v63  ;;  %2320 = vmatpush2.msra.mxu1 %v1849_v14 }
  0xbb   : > { %4554 = vmatmul.mubr.msk.f32.gmra.mxu1 %vm454_vm0, %v5715_v22  ;;  %969 = vmatprep.mubr.f32.mxu0 %v7794_v5 }
  0xbc   : > { %1322 = vmatprep.mubr.f32.mxu1 %v7794_v5 }
  0xbe   : > { %4507 = vmatmul.mubr.msk.f32.gmra.mxu0 %vm454_vm0, %v5973_v1 }
  0xbf   : > { %4555 = vmatmul.mubr.msk.f32.gmra.mxu1 %vm454_vm0, %v5732_v25  ;;  %975 = vmatprep.mubr.f32.mxu0 %v7794_v5 }
  0xc0   : > { %1328 = vmatprep.mubr.f32.mxu1 %v7794_v5 }
  0xc2   : > { %4508 = vmatmul.mubr.msk.f32.gmra.mxu0 %vm454_vm0, %v5986_v3 }
  0xc3   : > { %4556 = vmatmul.mubr.msk.f32.gmra.mxu1 %vm454_vm0, %v5749_v28  ;;  %981 = vmatprep.mubr.f32.mxu0 %v7794_v5 }
  0xc4   : > { %1334 = vmatprep.mubr.f32.mxu1 %v7794_v5 }
  0xc6   : > { %4509 = vmatmul.mubr.msk.f32.gmra.mxu0 %vm454_vm0, %v5999_v6 }
  0xc7   : > { %4557 = vmatmul.mubr.msk.f32.gmra.mxu1 %vm454_vm0, %v5766_v31  ;;  %987 = vmatprep.mubr.f32.mxu0 %v7794_v5 }
  0xc8   : > { %1340 = vmatprep.mubr.f32.mxu1 %v7794_v5 }
  0xca   : > { %4510 = vmatmul.mubr.msk.f32.gmra.mxu0 %vm454_vm0, %v6012_v9 }
  0xcb   : > { %4558 = vmatmul.mubr.msk.f32.gmra.mxu1 %vm454_vm0, %v5783_v34  ;;  %993 = vmatprep.mubr.f32.mxu0 %v7794_v5 }
  0xcc   : > { %1346 = vmatprep.mubr.f32.mxu1 %v7794_v5 }
  0xce   : > { %4511 = vmatmul.mubr.msk.f32.gmra.mxu0 %vm454_vm0, %v6024_v11 }
  0xcf   : > { %4559 = vmatmul.mubr.msk.f32.gmra.mxu1 %vm454_vm0, %v5800_v37 }
  0xd0   : > { %1352 = vmatprep.mubr.f32.mxu1 %v7794_v5 }
  0xd2   : > { %v713_v18 = vpop.f32.mrf.mxu0 }
  0xd3   : > { %v6048_v19 = vpop.f32.mrf.mxu1  ;;  %4560 = vmatmul.mubr.msk.f32.gmra.mxu1 %vm454_vm0, %v5817_v40  ;;  %v714_v20 = vadd.f32 %v713_v18, %v6043_v16 }
  0xd4   : > { %1358 = vmatprep.mubr.f32.mxu1 %v7794_v5  ;;  %v715_v21 = vpop.f32.mrf.mxu0 }
  0xd5   : > { %v6054_v22 = vpop.f32.mrf.mxu1  ;;  %v716_v23 = vadd.f32 %v715_v21, %v6046_v17  ;;  %v1545_v24 = vmax.f32 %v714_v20, 0.0 }
  0xd6   : > { %v719_v25 = vpop.f32.mrf.mxu0 }
  0xd7   : > { %v6057_v26 = vpop.f32.mrf.mxu1  ;;  %4561 = vmatmul.mubr.msk.f32.gmra.mxu1 %vm454_vm0, %v5834_v43  ;;  %v1546_v27 = vmax.f32 %v716_v23, 0.0  ;;  %v720_v28 = vadd.f32 %v719_v25, %v6043_v16 }
  0xd8   : > { %1364 = vmatprep.mubr.f32.mxu1 %v7794_v5  ;;  %v721_v29 = vpop.f32.mrf.mxu0 }
  0xd9   : > { %v6063_v30 = vpop.f32.mrf.mxu1  ;;  %v722_v31 = vadd.f32 %v721_v29, %v6046_v17  ;;  %1936 = vmatprep.mubr.f32.mxu0 %v1546_v27  ;;  %v1549_v32 = vmax.f32 %v720_v28, 0.0 }
  0xda   : > { %v725_v33 = vpop.f32.mrf.mxu0  ;;  %1937 = vmatmul.mubr.f32.vlgmr.msra.gmra.mxu0 %v1545_v24 }
  0xdb   : > { %v6066_v34 = vpop.f32.mrf.mxu1  ;;  %4562 = vmatmul.mubr.msk.f32.gmra.mxu1 %vm454_vm0, %v5851_v46  ;;  %v1550_v35 = vmax.f32 %v722_v31, 0.0  ;;  %v726_v36 = vadd.f32 %v725_v33, %v6043_v16 }
  0xdc   : > { %1370 = vmatprep.mubr.f32.mxu1 %v7794_v5  ;;  %v727_v37 = vpop.f32.mrf.mxu0 }
  0xdd   : > { %v6072_v38 = vpop.f32.mrf.mxu1  ;;  %v728_v39 = vadd.f32 %v727_v37, %v6046_v17  ;;  %1941 = vmatprep.mubr.f32.mxu0 %v1550_v35  ;;  %v1553_v40 = vmax.f32 %v726_v36, 0.0 }
  0xde   : > { %v731_v41 = vpop.f32.mrf.mxu0  ;;  %1942 = vmatmul.mubr.f32.gmra.mxu0 %v1549_v32 }
  0xdf   : > { %v6075_v42 = vpop.f32.mrf.mxu1  ;;  %4563 = vmatmul.mubr.msk.f32.gmra.mxu1 %vm454_vm0, %v5868_v49  ;;  %v1554_v43 = vmax.f32 %v728_v39, 0.0  ;;  %v732_v44 = vadd.f32 %v731_v41, %v6043_v16 }
  0xe0   : > { %1376 = vmatprep.mubr.f32.mxu1 %v7794_v5  ;;  %v733_v45 = vpop.f32.mrf.mxu0 }
  0xe1   : > { %v6081_v46 = vpop.f32.mrf.mxu1  ;;  %v734_v47 = vadd.f32 %v733_v45, %v6046_v17  ;;  %1946 = vmatprep.mubr.f32.mxu0 %v1554_v43  ;;  %v1557_v48 = vmax.f32 %v732_v44, 0.0 }
  0xe2   : > { %v737_v50 = vpop.f32.mrf.mxu0  ;;  %1947 = vmatmul.mubr.f32.gmra.mxu0 %v1553_v40 }
  0xe3   : > { %v6084_v52 = vpop.f32.mrf.mxu1  ;;  %4564 = vmatmul.mubr.msk.f32.gmra.mxu1 %vm454_vm0, %v5882_v51  ;;  %v1558_v49 = vmax.f32 %v734_v47, 0.0  ;;  %v738_v54 = vadd.f32 %v737_v50, %v6043_v16 }
  0xe4   : > { %1382 = vmatprep.mubr.f32.mxu1 %v7794_v5  ;;  %v739_v56 = vpop.f32.mrf.mxu0 }
  0xe5   : > { %v6090_v58 = vpop.f32.mrf.mxu1  ;;  %v740_v60 = vadd.f32 %v739_v56, %v6046_v17  ;;  %1951 = vmatprep.mubr.f32.mxu0 %v1558_v49  ;;  %v1561_v62 = vmax.f32 %v738_v54, 0.0 }
  0xe6   : > { %v743_v0 = vpop.f32.mrf.mxu0  ;;  %1952 = vmatmul.mubr.f32.gmra.mxu0 %v1557_v48 }
  0xe7   : > { %v6093_v2 = vpop.f32.mrf.mxu1  ;;  %4565 = vmatmul.mubr.msk.f32.gmra.mxu1 %vm454_vm0, %v5895_v53  ;;  %v1562_v51 = vmax.f32 %v740_v60, 0.0  ;;  %v744_v4 = vadd.f32 %v743_v0, %v6043_v16 }
  0xe8   : > { %1388 = vmatprep.mubr.f32.mxu1 %v7794_v5  ;;  %v745_v7 = vpop.f32.mrf.mxu0 }
  0xe9   : > { %v6099_v8 = vpop.f32.mrf.mxu1  ;;  %v746_v12 = vadd.f32 %v745_v7, %v6046_v17  ;;  %1956 = vmatprep.mubr.f32.mxu0 %v1562_v51  ;;  %v1565_v13 = vmax.f32 %v744_v4, 0.0 }
  0xea   : > { %v749_v14 = vpop.f32.mrf.mxu0  ;;  %1957 = vmatmul.mubr.f32.gmra.mxu0 %v1561_v62 }
  0xeb   : > { %v6102_v18 = vpop.f32.mrf.mxu1  ;;  %4566 = vmatmul.mubr.msk.f32.gmra.mxu1 %vm454_vm0, %v5908_v55  ;;  %v1566_v53 = vmax.f32 %v746_v12, 0.0  ;;  %v750_v20 = vadd.f32 %v749_v14, %v6043_v16 }
  0xec   : > { %1394 = vmatprep.mubr.f32.mxu1 %v7794_v5  ;;  %v751_v21 = vpop.f32.mrf.mxu0 }
  0xed   : > { %v6108_v23 = vpop.f32.mrf.mxu1  ;;  %v752_v24 = vadd.f32 %v751_v21, %v6046_v17  ;;  %1961 = vmatprep.mubr.f32.mxu0 %v1566_v53  ;;  %v1569_v25 = vmax.f32 %v750_v20, 0.0 }
  0xee   : > { %v755_v27 = vpop.f32.mrf.mxu0  ;;  %1962 = vmatmul.mubr.f32.gmra.mxu0 %v1565_v13 }
  0xef   : > { %v6111_v28 = vpop.f32.mrf.mxu1  ;;  %4567 = vmatmul.mubr.msk.f32.gmra.mxu1 %vm454_vm0, %v5921_v57  ;;  %v1570_v55 = vmax.f32 %v752_v24, 0.0  ;;  %v756_v29 = vadd.f32 %v755_v27, %v6043_v16 }
  0xf0   : > { %7796 = vst [vmem:[#allocation2_spill] sm:$0xff] %v6111_v28  ;;  %1400 = vmatprep.mubr.f32.mxu1 %v7794_v5  ;;  %v757_v31 = vpop.f32.mrf.mxu0 }
  0xf1   : > { %v6117_v32 = vpop.f32.mrf.mxu1  ;;  %v758_v33 = vadd.f32 %v757_v31, %v6046_v17  ;;  %1966 = vmatprep.mubr.f32.mxu0 %v1570_v55  ;;  %v1573_v35 = vmax.f32 %v756_v29, 0.0 }
  0xf2   : > { %7797 = vst [vmem:[#allocation3_spill] sm:$0xff] %v6117_v32  ;;  %v761_v36 = vpop.f32.mrf.mxu0  ;;  %1967 = vmatmul.mubr.f32.gmra.mxu0 %v1569_v25 }
  0xf3   : > { %v6120_v37 = vpop.f32.mrf.mxu1  ;;  %4568 = vmatmul.mubr.msk.f32.gmra.mxu1 %vm454_vm0, %v5934_v59  ;;  %v1574_v57 = vmax.f32 %v758_v33, 0.0  ;;  %v762_v39 = vadd.f32 %v761_v36, %v6043_v16 }
  0xf4   : > { %7798 = vst [vmem:[#allocation4_spill] sm:$0xff] %v6120_v37  ;;  %1406 = vmatprep.mubr.f32.mxu1 %v7794_v5  ;;  %v763_v40 = vpop.f32.mrf.mxu0 }
  0xf5   : > { %v6126_v41 = vpop.f32.mrf.mxu1  ;;  %v764_v43 = vadd.f32 %v763_v40, %v6046_v17  ;;  %1971 = vmatprep.mubr.f32.mxu0 %v1574_v57  ;;  %v1577_v44 = vmax.f32 %v762_v39, 0.0 }
  0xf6   : > { %7799 = vst [vmem:[#allocation5_spill] sm:$0xff] %v6126_v41  ;;  %v767_v45 = vpop.f32.mrf.mxu0  ;;  %1972 = vmatmul.mubr.f32.gmra.mxu0 %v1573_v35 }
  0xf7   : > { %v6129_v47 = vpop.f32.mrf.mxu1  ;;  %4569 = vmatmul.mubr.msk.f32.gmra.mxu1 %vm454_vm0, %v5947_v61  ;;  %v1578_v59 = vmax.f32 %v764_v43, 0.0  ;;  %v768_v48 = vadd.f32 %v767_v45, %v6043_v16 }
  0xf8   : > { %7800 = vst [vmem:[#allocation6_spill] sm:$0xff] %v6129_v47  ;;  %1412 = vmatprep.mubr.f32.mxu1 %v7794_v5  ;;  %v769_v50 = vpop.f32.mrf.mxu0 }
  0xf9   : > { %v6135_v49 = vpop.f32.mrf.mxu1  ;;  %v770_v54 = vadd.f32 %v769_v50, %v6046_v17  ;;  %1976 = vmatprep.mubr.f32.mxu0 %v1578_v59  ;;  %v1581_v56 = vmax.f32 %v768_v48, 0.0 }
  0xfa   : > { %7801 = vst [vmem:[#allocation7_spill] sm:$0xff] %v6135_v49  ;;  %v773_v60 = vpop.f32.mrf.mxu0  ;;  %1977 = vmatmul.mubr.f32.gmra.mxu0 %v1577_v44 }
  0xfb   : > { %v6138_v62 = vpop.f32.mrf.mxu1  ;;  %4570 = vmatmul.mubr.msk.f32.gmra.mxu1 %vm454_vm0, %v5960_v63  ;;  %v1582_v61 = vmax.f32 %v770_v54, 0.0  ;;  %v774_v0 = vadd.f32 %v773_v60, %v6043_v16 }
  0xfc   : > { %7802 = vst [vmem:[#allocation8_spill] sm:$0xff] %v6138_v62  ;;  %1418 = vmatprep.mubr.f32.mxu1 %v7794_v5  ;;  %v775_v51 = vpop.f32.mrf.mxu0 }
  0xfd   : > { %v6144_v4 = vpop.f32.mrf.mxu1  ;;  %v776_v7 = vadd.f32 %v775_v51, %v6046_v17  ;;  %1981 = vmatprep.mubr.f32.mxu0 %v1582_v61  ;;  %v1585_v12 = vmax.f32 %v774_v0, 0.0 }
  0xfe   : > { %7803 = vst [vmem:[#allocation9_spill] sm:$0xff] %v6144_v4  ;;  %v779_v13 = vpop.f32.mrf.mxu0  ;;  %1982 = vmatmul.mubr.f32.gmra.mxu0 %v1581_v56 }
  0xff   : > { %v6147_v14 = vpop.f32.mrf.mxu1  ;;  %4571 = vmatmul.mubr.msk.f32.gmra.mxu1 %vm454_vm0, %v5973_v1  ;;  %v1586_v63 = vmax.f32 %v776_v7, 0.0  ;;  %v780_v53 = vadd.f32 %v779_v13, %v6043_v16 }
 0x100   : > { %7804 = vst [vmem:[#allocation10_spill] sm:$0xff] %v6147_v14  ;;  %1424 = vmatprep.mubr.f32.mxu1 %v7794_v5  ;;  %v781_v20 = vpop.f32.mrf.mxu0 }
 0x101   : > { %v6153_v21 = vpop.f32.mrf.mxu1  ;;  %v782_v24 = vadd.f32 %v781_v20, %v6046_v17  ;;  %1986 = vmatprep.mubr.f32.mxu0 %v1586_v63  ;;  %v1589_v25 = vmax.f32 %v780_v53, 0.0 }
 0x102   : > { %7805 = vst [vmem:[#allocation11_spill] sm:$0xff] %v6153_v21  ;;  %v785_v27 = vpop.f32.mrf.mxu0  ;;  %1987 = vmatmul.mubr.f32.gmra.mxu0 %v1585_v12 }
 0x103   : > { %v6156_v55 = vpop.f32.mrf.mxu1  ;;  %4572 = vmatmul.mubr.msk.f32.gmra.mxu1 %vm454_vm0, %v5986_v3  ;;  %v1590_v1 = vmax.f32 %v782_v24, 0.0  ;;  %v786_v29 = vadd.f32 %v785_v27, %v6043_v16  ;;  %v5159_v27 = vld [vmem:[%s5335_s25 + $0x180] sm:$0xff] }
 0x104   : > { %7806 = vst [vmem:[#allocation12_spill] sm:$0xff] %v6156_v55  ;;  %1430 = vmatprep.mubr.f32.mxu1 %v7794_v5  ;;  %v787_v31 = vpop.f32.mrf.mxu0  ;;  %v7814_v55 = vmov 0.0  }
 0x105   : > { %v6162_v33 = vpop.f32.mrf.mxu1  ;;  %v788_v35 = vadd.f32 %v787_v31, %v6046_v17  ;;  %1991 = vmatprep.mubr.f32.mxu0 %v1590_v1  ;;  %v1593_v36 = vmax.f32 %v786_v29, 0.0 }
 0x106   : > { %7807 = vst [vmem:[#allocation13_spill] sm:$0xff] %v6162_v33  ;;  %v791_v57 = vpop.f32.mrf.mxu0  ;;  %1992 = vmatmul.mubr.f32.gmra.mxu0 %v1589_v25 }
 0x107   : > { %v6165_v39 = vpop.f32.mrf.mxu1  ;;  %4573 = vmatmul.mubr.msk.f32.gmra.mxu1 %vm454_vm0, %v5999_v6  ;;  %v1594_v3 = vmax.f32 %v788_v35, 0.0  ;;  %v792_v40 = vadd.f32 %v791_v57, %v6043_v16 }
 0x108   : > { %7808 = vst [vmem:[#allocation14_spill] sm:$0xff] %v6165_v39  ;;  %1436 = vmatprep.mubr.f32.mxu1 %v7794_v5  ;;  %v793_v43 = vpop.f32.mrf.mxu0 }
 0x109   : > { %v6171_v44 = vpop.f32.mrf.mxu1  ;;  %v794_v45 = vadd.f32 %v793_v43, %v6046_v17  ;;  %1996 = vmatprep.mubr.f32.mxu0 %v1594_v3  ;;  %v1597_v59 = vmax.f32 %v792_v40, 0.0  ;;  %v5160_v40 = vld [vmem:[%s5335_s25 + $0x188] sm:$0xff] }
 0x10a   : > { %7809 = vst [vmem:[#allocation15_spill] sm:$0xff] %v6171_v44  ;;  %v797_v48 = vpop.f32.mrf.mxu0  ;;  %1997 = vmatmul.mubr.f32.gmra.mxu0 %v1593_v36  ;;  %v5169_v44 = vld [vmem:[%s5335_s25 + $0x1d0] sm:$0xff] }
 0x10b   : > { %v6174_v50 = vpop.f32.mrf.mxu1  ;;  %4574 = vmatmul.mubr.msk.f32.gmra.mxu1 %vm454_vm0, %v6012_v9  ;;  %v1598_v6 = vmax.f32 %v794_v45, 0.0  ;;  %v798_v54 = vadd.f32 %v797_v48, %v6043_v16 }
 0x10c   : > { %7810 = vst [vmem:[#allocation16_spill] sm:$0xff] %v6174_v50  ;;  %1442 = vmatprep.mubr.f32.mxu1 %v7794_v5  ;;  %v799_v56 = vpop.f32.mrf.mxu0 }
 0x10d   : > { %v6180_v60 = vpop.f32.mrf.mxu1  ;;  %v800_v61 = vadd.f32 %v799_v56, %v6046_v17  ;;  %2001 = vmatprep.mubr.f32.mxu0 %v1598_v6  ;;  %v1601_v0 = vmax.f32 %v798_v54, 0.0 }
 0x10e   : > { %7811 = vst [vmem:[#allocation17_spill] sm:$0xff] %v6180_v60  ;;  %v803_v51 = vpop.f32.mrf.mxu0  ;;  %2002 = vmatmul.mubr.f32.gmra.mxu0 %v1597_v59  ;;  %v5168_v60 = vld [vmem:[%s5335_s25 + $0x1c8] sm:$0xff] }
 0x10f   : > { %v6183_v7 = vpop.f32.mrf.mxu1  ;;  %4575 = vmatmul.mubr.msk.f32.gmra.mxu1 %vm454_vm0, %v6024_v11  ;;  %v1602_v9 = vmax.f32 %v800_v61, 0.0  ;;  %v804_v12 = vadd.f32 %v803_v51, %v6043_v16 }
 0x110   : > { %7812 = vst [vmem:[#allocation18_spill] sm:$0xff] %v6183_v7  ;;  %1448 = vmatprep.mubr.f32.mxu1 %v7794_v5  ;;  %v805_v13 = vpop.f32.mrf.mxu0 }
 0x111   : > { %v6189_v63 = vpop.f32.mrf.mxu1  ;;  %v806_v53 = vadd.f32 %v805_v13, %v6046_v17  ;;  %2006 = vmatprep.mubr.f32.mxu0 %v1602_v9  ;;  %v1605_v20 = vmax.f32 %v804_v12, 0.0 }
 0x112   : > { %7813 = vst [vmem:[#allocation19_spill] sm:$0xff] %v6189_v63  ;;  %v809_v24 = vpop.f32.mrf.mxu0  ;;  %2007 = vmatmul.mubr.f32.gmra.mxu0 %v1601_v0  ;;  %v5161_v0 = vld [vmem:[%s5335_s25 + $0x190] sm:$0xff]  ;;  %v5167_v63 = vld [vmem:[%s5335_s25 + $0x1c0] sm:$0xff] }
 0x113   : > { %v6192_v25 = vpop.f32.mrf.mxu1  ;;  %4576 = vmatmul.mubr.msk.f32.gmra.mxu1 %vm454_vm0, %v5159_v27  ;;  %v1606_v11 = vmax.f32 %v806_v53, 0.0  ;;  %v810_v1 = vadd.f32 %v809_v24, %v6043_v16 }
 0x114   : > { %1454 = vmatprep.mubr.f32.mxu1 %v7794_v5  ;;  %v811_v29 = vpop.f32.mrf.mxu0 }
 0x115   : > { %v6198_v31 = vpop.f32.mrf.mxu1  ;;  %v812_v35 = vadd.f32 %v811_v29, %v6046_v17  ;;  %2011 = vmatprep.mubr.f32.mxu0 %v1606_v11  ;;  %v1609_v36 = vmax.f32 %v810_v1, 0.0  ;;  %v5162_v11 = vld [vmem:[%s5335_s25 + $0x198] sm:$0xff] }
 0x116   : > { %v815_v57 = vpop.f32.mrf.mxu0  ;;  %2012 = vmatmul.mubr.f32.gmra.mxu0 %v1605_v20 }
 0x117   : > { %v6201_v3 = vpop.f32.mrf.mxu1  ;;  %4577 = vmatmul.mubr.msk.f32.gmra.mxu1 %vm454_vm0, %v5160_v40  ;;  %v1610_v43 = vmax.f32 %v812_v35, 0.0  ;;  %v816_v45 = vadd.f32 %v815_v57, %v6043_v16 }
 0x118   : > { %1460 = vmatprep.mubr.f32.mxu1 %v7794_v5  ;;  %v817_v59 = vpop.f32.mrf.mxu0 }
 0x119   : > { %v6207_v48 = vpop.f32.mrf.mxu1  ;;  %v818_v6 = vadd.f32 %v817_v59, %v6046_v17  ;;  %2016 = vmatprep.mubr.f32.mxu0 %v1610_v43  ;;  %v1613_v54 = vmax.f32 %v816_v45, 0.0  ;;  %v5163_v59 = vld [vmem:[%s5335_s25 + $0x1a0] sm:$0xff] }
 0x11a   : > { %v821_v56 = vpop.f32.mrf.mxu0  ;;  %2017 = vmatmul.mubr.f32.gmra.mxu0 %v1609_v36 }
 0x11b   : > { %v6210_v61 = vpop.f32.mrf.mxu1  ;;  %4578 = vmatmul.mubr.msk.f32.gmra.mxu1 %vm454_vm0, %v5161_v0  ;;  %v1614_v51 = vmax.f32 %v818_v6, 0.0  ;;  %v822_v9 = vadd.f32 %v821_v56, %v6043_v16 }
 0x11c   : > { %1466 = vmatprep.mubr.f32.mxu1 %v7794_v5  ;;  %v823_v12 = vpop.f32.mrf.mxu0 }
 0x11d   : > { %v6216_v13 = vpop.f32.mrf.mxu1  ;;  %v824_v53 = vadd.f32 %v823_v12, %v6046_v17  ;;  %2021 = vmatprep.mubr.f32.mxu0 %v1614_v51  ;;  %v1617_v20 = vmax.f32 %v822_v9, 0.0 }
 0x11e   : > { %v827_v24 = vpop.f32.mrf.mxu0  ;;  %2022 = vmatmul.mubr.f32.gmra.mxu0 %v1613_v54 }
 0x11f   : > { %v6219_v27 = vpop.f32.mrf.mxu1  ;;  %4579 = vmatmul.mubr.msk.f32.gmra.mxu1 %vm454_vm0, %v5162_v11  ;;  %v1618_v1 = vmax.f32 %v824_v53, 0.0  ;;  %v828_v29 = vadd.f32 %v827_v24, %v6043_v16  ;;  %v5164_v24 = vld [vmem:[%s5335_s25 + $0x1a8] sm:$0xff] }
 0x120   : > { %1472 = vmatprep.mubr.f32.mxu1 %v7794_v5  ;;  %v829_v35 = vpop.f32.mrf.mxu0 }
 0x121   : > { %v6225_v36 = vpop.f32.mrf.mxu1  ;;  %v830_v57 = vadd.f32 %v829_v35, %v6046_v17  ;;  %2026 = vmatprep.mubr.f32.mxu0 %v1618_v1  ;;  %v1621_v40 = vmax.f32 %v828_v29, 0.0 }
 0x122   : > { %v833_v43 = vpop.f32.mrf.mxu0  ;;  %2027 = vmatmul.mubr.f32.gmra.mxu0 %v1617_v20 }
 0x123   : > { %v6228_v45 = vpop.f32.mrf.mxu1  ;;  %4580 = vmatmul.mubr.msk.f32.gmra.mxu1 %vm454_vm0, %v5163_v59  ;;  %v1622_v6 = vmax.f32 %v830_v57, 0.0  ;;  %v834_v54 = vadd.f32 %v833_v43, %v6043_v16 }
 0x124   : > { %1478 = vmatprep.mubr.f32.mxu1 %v7794_v5  ;;  %v835_v56 = vpop.f32.mrf.mxu0 }
 0x125   : > { %v6234_v0 = vpop.f32.mrf.mxu1  ;;  %v836_v51 = vadd.f32 %v835_v56, %v6046_v17  ;;  %2031 = vmatprep.mubr.f32.mxu0 %v1622_v6  ;;  %v1625_v9 = vmax.f32 %v834_v54, 0.0  ;;  %v5165_v6 = vld [vmem:[%s5335_s25 + $0x1b0] sm:$0xff] }
 0x126   : > { %v839_v12 = vpop.f32.mrf.mxu0  ;;  %2032 = vmatmul.mubr.f32.gmra.mxu0 %v1621_v40 }
 0x127   : > { %v6237_v53 = vpop.f32.mrf.mxu1  ;;  %4581 = vmatmul.mubr.msk.f32.gmra.mxu1 %vm454_vm0, %v5164_v24  ;;  %v1626_v20 = vmax.f32 %v836_v51, 0.0  ;;  %v840_v11 = vadd.f32 %v839_v12, %v6043_v16 }
 0x128   : > { %1484 = vmatprep.mubr.f32.mxu1 %v7794_v5  ;;  %v841_v1 = vpop.f32.mrf.mxu0 }
 0x129   : > { %v6243_v29 = vpop.f32.mrf.mxu1  ;;  %v842_v35 = vadd.f32 %v841_v1, %v6046_v17  ;;  %2036 = vmatprep.mubr.f32.mxu0 %v1626_v20  ;;  %v1629_v57 = vmax.f32 %v840_v11, 0.0  ;;  %v5166_v1 = vld [vmem:[%s5335_s25 + $0x1b8] sm:$0xff] }
 0x12a   : > { %v845_v43 = vpop.f32.mrf.mxu0  ;;  %2037 = vmatmul.mubr.f32.gmra.mxu0 %v1625_v9 }
 0x12b   : > { %v6246_v59 = vpop.f32.mrf.mxu1  ;;  %4582 = vmatmul.mubr.msk.f32.gmra.mxu1 %vm454_vm0, %v5165_v6  ;;  %v1630_v40 = vmax.f32 %v842_v35, 0.0  ;;  %v846_v54 = vadd.f32 %v845_v43, %v6043_v16 }
 0x12c   : > { %1490 = vmatprep.mubr.f32.mxu1 %v7794_v5  ;;  %v847_v56 = vpop.f32.mrf.mxu0 }
 0x12d   : > { %v6252_v51 = vpop.f32.mrf.mxu1  ;;  %v848_v12 = vadd.f32 %v847_v56, %v6046_v17  ;;  %2041 = vmatprep.mubr.f32.mxu0 %v1630_v40  ;;  %v1633_v24 = vmax.f32 %v846_v54, 0.0 }
 0x12e   : > { %v851_v20 = vpop.f32.mrf.mxu0  ;;  %2042 = vmatmul.mubr.f32.gmra.mxu0 %v1629_v57 }
 0x12f   : > { %v6255_v11 = vpop.f32.mrf.mxu1  ;;  %4583 = vmatmul.mubr.msk.f32.gmra.mxu1 %vm454_vm0, %v5166_v1  ;;  %v1634_v9 = vmax.f32 %v848_v12, 0.0  ;;  %v852_v35 = vadd.f32 %v851_v20, %v6043_v16 }
 0x130   : > { %1496 = vmatprep.mubr.f32.mxu1 %v7794_v5  ;;  %v853_v43 = vpop.f32.mrf.mxu0 }
 0x131   : > { %v6261_v6 = vpop.f32.mrf.mxu1  ;;  %v854_v56 = vadd.f32 %v853_v43, %v6046_v17  ;;  %2046 = vmatprep.mubr.f32.mxu0 %v1634_v9  ;;  %v1637_v40 = vmax.f32 %v852_v35, 0.0 }
 0x132   : > { %v857_v54 = vpop.f32.mrf.mxu0  ;;  %2047 = vmatmul.mubr.f32.gmra.mxu0 %v1633_v24 }
 0x133   : > { %v6264_v7 = vpop.f32.mrf.mxu1  ;;  %4584 = vmatmul.mubr.msk.f32.gmra.mxu1 %vm454_vm0, %v5167_v63  ;;  %v1638_v57 = vmax.f32 %v854_v56, 0.0  ;;  %v858_v12 = vadd.f32 %v857_v54, %v6043_v16 }
 0x134   : > { %1502 = vmatprep.mubr.f32.mxu1 %v7794_v5  ;;  %v859_v20 = vpop.f32.mrf.mxu0 }
 0x135   : > { %v6270_v1 = vpop.f32.mrf.mxu1  ;;  %v860_v43 = vadd.f32 %v859_v20, %v6046_v17  ;;  %2051 = vmatprep.mubr.f32.mxu0 %v1638_v57  ;;  %v1641_v9 = vmax.f32 %v858_v12, 0.0 }
 0x136   : > { %v863_v35 = vpop.f32.mrf.mxu0  ;;  %2052 = vmatmul.mubr.f32.gmra.mxu0 %v1637_v40 }
 0x137   : > { %v6273_v50 = vpop.f32.mrf.mxu1  ;;  %4585 = vmatmul.mubr.msk.f32.gmra.mxu1 %vm454_vm0, %v5168_v60  ;;  %v1642_v63 = vmax.f32 %v860_v43, 0.0  ;;  %v864_v24 = vadd.f32 %v863_v35, %v6043_v16  ;;  %v3219_v43 = vld [vmem:[%s7789_s5 + $0x8] sm:$0xff] }
 0x138   : > { %1508 = vmatprep.mubr.f32.mxu1 %v7794_v5  ;;  %v865_v56 = vpop.f32.mrf.mxu0  ;;  %4790 = vmatprep.subr.mxu0 %v3219_v43 }
 0x139   : > { %v6279_v54 = vpop.f32.mrf.mxu1  ;;  %v866_v20 = vadd.f32 %v865_v56, %v6046_v17  ;;  %2056 = vmatprep.mubr.f32.mxu0 %v1642_v63  ;;  %v1645_v57 = vmax.f32 %v864_v24, 0.0  ;;  %4791 = vmatpush3.msra.mxu0 %v3219_v43 }
 0x13a   : > { %v869_v12 = vpop.f32.mrf.mxu0  ;;  %2057 = vmatmul.mubr.f32.gmra.mxu0 %v1641_v9 }
 0x13b   : > { %v6282_v39 = vpop.f32.mrf.mxu1  ;;  %4586 = vmatmul.mubr.msk.f32.gmra.mxu1 %vm454_vm0, %v5169_v44  ;;  %v1646_v60 = vmax.f32 %v866_v20, 0.0  ;;  %v870_v40 = vadd.f32 %v869_v12, %v6043_v16  ;;  %v5170_v20 = vld [vmem:[%s5335_s25 + $0x1d8] sm:$0xff] }
 0x13c   : > { %1514 = vmatprep.mubr.f32.mxu1 %v7794_v5  ;;  %v871_v35 = vpop.f32.mrf.mxu0 }
 0x13d   : > { %v6291_v63 = vpop.f32.mrf.mxu1  ;;  %v872_v24 = vadd.f32 %v871_v35, %v6046_v17  ;;  %2061 = vmatprep.mubr.f32.mxu0 %v1646_v60  ;;  %v1649_v56 = vmax.f32 %v870_v40, 0.0  ;;  %v448_v60 = vsub.s32 3, %v6015_v10 }
 0x13e   : > { %v875_v44 = vpop.f32.mrf.mxu0  ;;  %2062 = vmatmul.mubr.f32.gmra.mxu0 %v1645_v57 }
 0x13f   : > { %v6294_v9 = vpop.f32.mrf.mxu1  ;;  %4587 = vmatmul.mubr.msk.f32.gmra.mxu1 %vm454_vm0, %v5170_v20  ;;  %v1650_v12 = vmax.f32 %v872_v24, 0.0  ;;  %v876_v5 = vadd.f32 %v875_v44, %v6043_v16  ;;  %v5171_v20 = vld [vmem:[%s5335_s25 + $0x1e0] sm:$0xff]  ;;  %v444_v44 = vsub.s32 2, %v6015_v10 }
 0x140   : > { %1520 = vmatprep.mubr.f32.mxu1 %v7814_v55  ;;  %v877_v33 = vpop.f32.mrf.mxu0 }
 0x141   : > { %v6300_v14 = vpop.f32.mrf.mxu1  ;;  %v878_v40 = vadd.f32 %v877_v33, %v6046_v17  ;;  %2066 = vmatprep.mubr.f32.mxu0 %v1650_v12  ;;  %v1653_v43 = vmax.f32 %v876_v5, 0.0  ;;  %v6314_v5 = vrot.slane %v6039_v15, %v448_v60  ;;  %v6324_v60 = vrot.slane %v6039_v15, %v444_v44 }
 0x142   : > { %v881_v35 = vpop.f32.mrf.mxu0  ;;  %2067 = vmatmul.mubr.f32.gmra.mxu0 %v1649_v56  ;;  %v5172_v56 = vld [vmem:[%s5335_s25 + $0x1e8] sm:$0xff] }
 0x143   : > { %v6304_v21 = vpop.f32.mrf.mxu1  ;;  %4588 = vmatmul.mubr.msk.f32.gmra.mxu1 %vm454_vm0, %v5171_v20  ;;  %v1654_v57 = vmax.f32 %v878_v40, 0.0  ;;  %v882_v24 = vadd.f32 %v881_v35, %v6043_v16 }
 0x144   : > { %1526 = vmatprep.mubr.f32.mxu1 %v7814_v55  ;;  %v883_v62 = vpop.f32.mrf.mxu0 }
 0x145   : > { %v6311_v4 = vpop.f32.mrf.mxu1  ;;  %v884_v33 = vadd.f32 %v883_v62, %v6046_v17  ;;  %2071 = vmatprep.mubr.f32.mxu0 %v1654_v57  ;;  %v1657_v12 = vmax.f32 %v882_v24, 0.0  ;;  %v1165_v57 = vadd.f32 %v6198_v31, %v6314_v5  ;;  %v1163_v31 = vadd.f32 %v6192_v25, %v6324_v60 }
 0x146   : > { %v887_v47 = vpop.f32.mrf.mxu0  ;;  %2072 = vmatmul.mubr.f32.gmra.mxu0 %v1653_v43 }
 0x147   : > { %v6317_v20 = vpop.f32.mrf.mxu1  ;;  %4589 = vmatmul.mubr.msk.f32.gmra.mxu1 %vm454_vm0, %v5172_v56  ;;  %v1658_v40 = vmax.f32 %v884_v33, 0.0  ;;  %v888_v10 = vadd.f32 %v887_v47, %v6043_v16  ;;  %v5173_v33 = vld [vmem:[%s5335_s25 + $0x1f0] sm:$0xff]  ;;  %v1547_v41 = vmax.f32 %v1163_v31, 0.0 }
 0x148   : > { %1532 = vmatprep.mubr.f32.mxu1 %v7814_v55  ;;  %v889_v35 = vpop.f32.mrf.mxu0 }
 0x149   : > { %v6326_v62 = vpop.f32.mrf.mxu1  ;;  %v890_v24 = vadd.f32 %v889_v35, %v6046_v17  ;;  %2076 = vmatprep.mubr.f32.mxu0 %v1658_v40  ;;  %v1661_v49 = vmax.f32 %v888_v10, 0.0  ;;  %v1548_v40 = vmax.f32 %v1165_v57, 0.0  ;;  %v1171_v10 = vadd.f32 %v6207_v48, %v6314_v5 }
 0x14a   : > { %v893_v56 = vpop.f32.mrf.mxu0  ;;  %2077 = vmatmul.mubr.f32.gmra.mxu0 %v1657_v12  ;;  %v1169_v57 = vadd.f32 %v6201_v3, %v6324_v60 }
 0x14b   : > { %v6331_v43 = vpop.f32.mrf.mxu1  ;;  %4590 = vmatmul.mubr.msk.f32.gmra.mxu1 %vm454_vm0, %v5173_v33  ;;  %v1662_v15 = vmax.f32 %v890_v24, 0.0  ;;  %v894_v47 = vadd.f32 %v893_v56, %v6043_v16  ;;  %v5174_v56 = vld [vmem:[%s5335_s25 + $0x1f8] sm:$0xff] }
 0x14c   : > { %1538 = vmatprep.mubr.f32.mxu1 %v7814_v55  ;;  %v895_v44 = vpop.f32.mrf.mxu0  ;;  %v1551_v3 = vmax.f32 %v1169_v57, 0.0 }
 0x14d   : > { %v6339_v35 = vpop.f32.mrf.mxu1  ;;  %v896_v37 = vadd.f32 %v895_v44, %v6046_v17  ;;  %2081 = vmatprep.mubr.f32.mxu0 %v1662_v15  ;;  %v1665_v33 = vmax.f32 %v894_v47, 0.0  ;;  %v1552_v15 = vmax.f32 %v1171_v10, 0.0  ;;  %v1177_v47 = vadd.f32 %v6216_v13, %v6314_v5 }
 0x14e   : > { %v899_v12 = vpop.f32.mrf.mxu0  ;;  %2082 = vmatmul.mubr.f32.gmra.mxu0 %v1661_v49  ;;  %v1175_v10 = vadd.f32 %v6210_v61, %v6324_v60 }
 0x14f   : > { %v6344_v24 = vpop.f32.mrf.mxu1  ;;  %4591 = vmatmul.mubr.msk.f32.gmra.mxu1 %vm454_vm0, %v5174_v56  ;;  %v1666_v55 = vmax.f32 %v896_v37, 0.0  ;;  %v900_v25 = vadd.f32 %v899_v12, %v6043_v16  ;;  %v1556_v13 = vmax.f32 %v1177_v47, 0.0  ;;  %v1181_v47 = vadd.f32 %v6219_v27, %v6324_v60 }
 0x150   : > { %2321 = vmatprep.mubr.f32.mxu1 %v1548_v40  ;;  %v901_v48 = vpop.f32.mrf.mxu0  ;;  %v1555_v61 = vmax.f32 %v1175_v10, 0.0 }
 0x151   : > { %v6351_v28 = vpop.f32.mrf.mxu1  ;;  %v902_v44 = vadd.f32 %v901_v48, %v6046_v17  ;;  %2086 = vmatprep.mubr.f32.mxu0 %v1666_v55  ;;  %v1669_v56 = vmax.f32 %v900_v25, 0.0  ;;  %v1183_v55 = vadd.f32 %v6225_v36, %v6314_v5  ;;  %v1559_v27 = vmax.f32 %v1181_v47, 0.0 }
 0x152   : > { %v905_v49 = vpop.f32.mrf.mxu0  ;;  %2087 = vmatmul.mubr.f32.gmra.mxu0 %v1665_v33 }
 0x153   : > { %v6356_v37 = vpop.f32.mrf.mxu1  ;;  %2322 = vmatmul.mubr.f32.vlgmr.msra.gmra.mxu1 %v1547_v41  ;;  %v1670_v31 = vmax.f32 %v902_v44, 0.0  ;;  %v906_v40 = vadd.f32 %v905_v49, %v6043_v16  ;;  %v1560_v36 = vmax.f32 %v1183_v55, 0.0  ;;  %v1187_v55 = vadd.f32 %v6228_v45, %v6324_v60 }
 0x154   : > { %2326 = vmatprep.mubr.f32.mxu1 %v1552_v15  ;;  %v907_v12 = vpop.f32.mrf.mxu0 }
 0x155   : > { %v6361_v32 = vpop.f32.mrf.mxu1  ;;  %v908_v25 = vadd.f32 %v907_v12, %v6046_v17  ;;  %2091 = vmatprep.mubr.f32.mxu0 %v1670_v31  ;;  %v1673_v33 = vmax.f32 %v906_v40, 0.0  ;;  %v1189_v31 = vadd.f32 %v6234_v0, %v6314_v5  ;;  %v1563_v45 = vmax.f32 %v1187_v55, 0.0 }
 0x156   : > { %v911_v41 = vpop.f32.mrf.mxu0  ;;  %2092 = vmatmul.mubr.f32.gmra.mxu0 %v1669_v56 }
 0x157   : > { %v6366_v48 = vpop.f32.mrf.mxu1  ;;  %2327 = vmatmul.mubr.f32.gmra.mxu1 %v1551_v3  ;;  %v1674_v57 = vmax.f32 %v908_v25, 0.0  ;;  %v912_v15 = vadd.f32 %v911_v41, %v6043_v16  ;;  %v1564_v0 = vmax.f32 %v1189_v31, 0.0  ;;  %v1193_v31 = vadd.f32 %v6237_v53, %v6324_v60 }
 0x158   : > { %2331 = vmatprep.mubr.f32.mxu1 %v1556_v13  ;;  %v913_v44 = vpop.f32.mrf.mxu0 }
 0x159   : > { %v6371_v49 = vpop.f32.mrf.mxu1  ;;  %v914_v40 = vadd.f32 %v913_v44, %v6046_v17  ;;  %2096 = vmatprep.mubr.f32.mxu0 %v1674_v57  ;;  %v1677_v56 = vmax.f32 %v912_v15, 0.0  ;;  %v1195_v57 = vadd.f32 %v6243_v29, %v6314_v5  ;;  %v1567_v53 = vmax.f32 %v1193_v31, 0.0 }
 0x15a   : > { %v917_v3 = vpop.f32.mrf.mxu0  ;;  %2097 = vmatmul.mubr.f32.gmra.mxu0 %v1673_v33 }
 0x15b   : > { %v6376_v12 = vpop.f32.mrf.mxu1  ;;  %2332 = vmatmul.mubr.f32.gmra.mxu1 %v1555_v61  ;;  %v1678_v10 = vmax.f32 %v914_v40, 0.0  ;;  %v918_v13 = vadd.f32 %v917_v3, %v6043_v16  ;;  %v1568_v29 = vmax.f32 %v1195_v57, 0.0  ;;  %v1199_v57 = vadd.f32 %v6246_v59, %v6324_v60 }
 0x15c   : > { %2336 = vmatprep.mubr.f32.mxu1 %v1560_v36  ;;  %v919_v25 = vpop.f32.mrf.mxu0 }
 0x15d   : > { %v6381_v41 = vpop.f32.mrf.mxu1  ;;  %v920_v15 = vadd.f32 %v919_v25, %v6046_v17  ;;  %2101 = vmatprep.mubr.f32.mxu0 %v1678_v10  ;;  %v1681_v33 = vmax.f32 %v918_v13, 0.0  ;;  %v1201_v10 = vadd.f32 %v6252_v51, %v6314_v5  ;;  %v1571_v59 = vmax.f32 %v1199_v57, 0.0 }
 0x15e   : > { %v923_v61 = vpop.f32.mrf.mxu0  ;;  %2102 = vmatmul.mubr.f32.gmra.mxu0 %v1677_v56 }
 0x15f   : > { %v6386_v44 = vpop.f32.mrf.mxu1  ;;  %2337 = vmatmul.mubr.f32.gmra.mxu1 %v1559_v27  ;;  %v1682_v47 = vmax.f32 %v920_v15, 0.0  ;;  %v924_v36 = vadd.f32 %v923_v61, %v6043_v16  ;;  %v1572_v51 = vmax.f32 %v1201_v10, 0.0  ;;  %v1205_v10 = vadd.f32 %v6255_v11, %v6324_v60 }
 0x160   : > { %2341 = vmatprep.mubr.f32.mxu1 %v1564_v0  ;;  %v925_v40 = vpop.f32.mrf.mxu0 }
 0x161   : > { %v6391_v3 = vpop.f32.mrf.mxu1  ;;  %v926_v13 = vadd.f32 %v925_v40, %v6046_v17  ;;  %2106 = vmatprep.mubr.f32.mxu0 %v1682_v47  ;;  %v1685_v56 = vmax.f32 %v924_v36, 0.0  ;;  %v1207_v47 = vadd.f32 %v6261_v6, %v6314_v5  ;;  %v1575_v11 = vmax.f32 %v1205_v10, 0.0 }
 0x162   : > { %v929_v27 = vpop.f32.mrf.mxu0  ;;  %2107 = vmatmul.mubr.f32.gmra.mxu0 %v1681_v33 }
 0x163   : > { %v6396_v25 = vpop.f32.mrf.mxu1  ;;  %2342 = vmatmul.mubr.f32.gmra.mxu1 %v1563_v45  ;;  %v1686_v55 = vmax.f32 %v926_v13, 0.0  ;;  %v930_v0 = vadd.f32 %v929_v27, %v6043_v16  ;;  %v1576_v6 = vmax.f32 %v1207_v47, 0.0  ;;  %v1211_v47 = vadd.f32 %v6264_v7, %v6324_v60 }
 0x164   : > { %2346 = vmatprep.mubr.f32.mxu1 %v1568_v29  ;;  %v931_v15 = vpop.f32.mrf.mxu0 }
 0x165   : > { %v6401_v61 = vpop.f32.mrf.mxu1  ;;  %v932_v36 = vadd.f32 %v931_v15, %v6046_v17  ;;  %2111 = vmatprep.mubr.f32.mxu0 %v1686_v55  ;;  %v1689_v33 = vmax.f32 %v930_v0, 0.0  ;;  %v1213_v55 = vadd.f32 %v6270_v1, %v6314_v5  ;;  %v1579_v7 = vmax.f32 %v1211_v47, 0.0 }
 0x166   : > { %v935_v45 = vpop.f32.mrf.mxu0  ;;  %2112 = vmatmul.mubr.f32.gmra.mxu0 %v1685_v56 }
 0x167   : > { %v6406_v40 = vpop.f32.mrf.mxu1  ;;  %2347 = vmatmul.mubr.f32.gmra.mxu1 %v1567_v53  ;;  %v1690_v31 = vmax.f32 %v932_v36, 0.0  ;;  %v936_v29 = vadd.f32 %v935_v45, %v6043_v16  ;;  %v1580_v1 = vmax.f32 %v1213_v55, 0.0  ;;  %v1217_v55 = vadd.f32 %v6273_v50, %v6324_v60 }
 0x168   : > { %2351 = vmatprep.mubr.f32.mxu1 %v1572_v51  ;;  %v937_v13 = vpop.f32.mrf.mxu0 }
 0x169   : > { %v6411_v27 = vpop.f32.mrf.mxu1  ;;  %v938_v0 = vadd.f32 %v937_v13, %v6046_v17  ;;  %2116 = vmatprep.mubr.f32.mxu0 %v1690_v31  ;;  %v1693_v56 = vmax.f32 %v936_v29, 0.0  ;;  %v1219_v31 = vadd.f32 %v6279_v54, %v6314_v5  ;;  %v1583_v50 = vmax.f32 %v1217_v55, 0.0 }
 0x16a   : > { %v941_v53 = vpop.f32.mrf.mxu0  ;;  %2117 = vmatmul.mubr.f32.gmra.mxu0 %v1689_v33 }
 0x16b   : > { %v6416_v15 = vpop.f32.mrf.mxu1  ;;  %2352 = vmatmul.mubr.f32.gmra.mxu1 %v1571_v59  ;;  %v1694_v57 = vmax.f32 %v938_v0, 0.0  ;;  %v942_v51 = vadd.f32 %v941_v53, %v6043_v16  ;;  %v1584_v54 = vmax.f32 %v1219_v31, 0.0  ;;  %v1223_v31 = vadd.f32 %v6282_v39, %v6324_v60 }
 0x16c   : > { %2356 = vmatprep.mubr.f32.mxu1 %v1576_v6  ;;  %v943_v36 = vpop.f32.mrf.mxu0 }
 0x16d   : > { %v6421_v45 = vpop.f32.mrf.mxu1  ;;  %v944_v29 = vadd.f32 %v943_v36, %v6046_v17  ;;  %2121 = vmatprep.mubr.f32.mxu0 %v1694_v57  ;;  %v1697_v33 = vmax.f32 %v942_v51, 0.0  ;;  %v1225_v57 = vadd.f32 %v6291_v63, %v6314_v5  ;;  %v1587_v39 = vmax.f32 %v1223_v31, 0.0 }
 0x16e   : > { %v947_v59 = vpop.f32.mrf.mxu0  ;;  %2122 = vmatmul.mubr.f32.gmra.mxu0 %v1693_v56 }
 0x16f   : > { %v6426_v13 = vpop.f32.mrf.mxu1  ;;  %2357 = vmatmul.mubr.f32.gmra.mxu1 %v1575_v11  ;;  %v1698_v10 = vmax.f32 %v944_v29, 0.0  ;;  %v948_v6 = vadd.f32 %v947_v59, %v6043_v16  ;;  %v1588_v63 = vmax.f32 %v1225_v57, 0.0  ;;  %v1229_v57 = vadd.f32 %v6294_v9, %v6324_v60 }
 0x170   : > { %2361 = vmatprep.mubr.f32.mxu1 %v1580_v1  ;;  %v949_v0 = vpop.f32.mrf.mxu0 }
 0x171   : > { %v6431_v53 = vpop.f32.mrf.mxu1  ;;  %v950_v51 = vadd.f32 %v949_v0, %v6046_v17  ;;  %2126 = vmatprep.mubr.f32.mxu0 %v1698_v10  ;;  %v1701_v56 = vmax.f32 %v948_v6, 0.0  ;;  %v1231_v10 = vadd.f32 %v6300_v14, %v6314_v5  ;;  %v1591_v9 = vmax.f32 %v1229_v57, 0.0 }
 0x172   : > { %v953_v11 = vpop.f32.mrf.mxu0  ;;  %2127 = vmatmul.mubr.f32.gmra.mxu0 %v1697_v33 }
 0x173   : > { %v6436_v36 = vpop.f32.mrf.mxu1  ;;  %2362 = vmatmul.mubr.f32.gmra.mxu1 %v1579_v7  ;;  %v1702_v47 = vmax.f32 %v950_v51, 0.0  ;;  %v954_v1 = vadd.f32 %v953_v11, %v6043_v16  ;;  %v1592_v14 = vmax.f32 %v1231_v10, 0.0  ;;  %v1235_v10 = vadd.f32 %v6304_v21, %v6324_v60 }
 0x174   : > { %2366 = vmatprep.mubr.f32.mxu1 %v1584_v54  ;;  %v955_v29 = vpop.f32.mrf.mxu0 }
 0x175   : > { %v6441_v59 = vpop.f32.mrf.mxu1  ;;  %v956_v6 = vadd.f32 %v955_v29, %v6046_v17  ;;  %2131 = vmatprep.mubr.f32.mxu0 %v1702_v47  ;;  %v1705_v33 = vmax.f32 %v954_v1, 0.0  ;;  %v1237_v47 = vadd.f32 %v6311_v4, %v6314_v5  ;;  %v1595_v21 = vmax.f32 %v1235_v10, 0.0 }
 0x176   : > { %v959_v7 = vpop.f32.mrf.mxu0  ;;  %2132 = vmatmul.mubr.f32.gmra.mxu0 %v1701_v56 }
 0x177   : > { %v6446_v0 = vpop.f32.mrf.mxu1  ;;  %2367 = vmatmul.mubr.f32.gmra.mxu1 %v1583_v50  ;;  %v1706_v55 = vmax.f32 %v956_v6, 0.0  ;;  %v960_v54 = vadd.f32 %v959_v7, %v6043_v16  ;;  %v1596_v4 = vmax.f32 %v1237_v47, 0.0  ;;  %v1241_v47 = vadd.f32 %v6317_v20, %v6324_v60 }
 0x178   : > { %2371 = vmatprep.mubr.f32.mxu1 %v1588_v63  ;;  %v961_v51 = vpop.f32.mrf.mxu0 }
 0x179   : > { %v6451_v11 = vpop.f32.mrf.mxu1  ;;  %v962_v1 = vadd.f32 %v961_v51, %v6046_v17  ;;  %2136 = vmatprep.mubr.f32.mxu0 %v1706_v55  ;;  %v1709_v56 = vmax.f32 %v960_v54, 0.0  ;;  %v1243_v55 = vadd.f32 %v6326_v62, %v6314_v5  ;;  %v1599_v20 = vmax.f32 %v1241_v47, 0.0 }
 0x17a   : > { %v965_v50 = vpop.f32.mrf.mxu0  ;;  %2137 = vmatmul.mubr.f32.gmra.mxu0 %v1705_v33 }
 0x17b   : > { %v6456_v29 = vpop.f32.mrf.mxu1  ;;  %2372 = vmatmul.mubr.f32.gmra.mxu1 %v1587_v39  ;;  %v1710_v31 = vmax.f32 %v962_v1, 0.0  ;;  %v966_v63 = vadd.f32 %v965_v50, %v6043_v16  ;;  %v1600_v62 = vmax.f32 %v1243_v55, 0.0  ;;  %v1247_v55 = vadd.f32 %v6331_v43, %v6324_v60 }
 0x17c   : > { %2376 = vmatprep.mubr.f32.mxu1 %v1592_v14  ;;  %v967_v6 = vpop.f32.mrf.mxu0 }
 0x17d   : > { %v6461_v7 = vpop.f32.mrf.mxu1  ;;  %v968_v54 = vadd.f32 %v967_v6, %v6046_v17  ;;  %2141 = vmatprep.mubr.f32.mxu0 %v1710_v31  ;;  %v1713_v33 = vmax.f32 %v966_v63, 0.0  ;;  %v1249_v31 = vadd.f32 %v6339_v35, %v6314_v5  ;;  %v1603_v43 = vmax.f32 %v1247_v55, 0.0 }
 0x17e   : > { %v971_v39 = vpop.f32.mrf.mxu0  ;;  %2142 = vmatmul.mubr.f32.gmra.mxu0 %v1709_v56 }
 0x17f   : > { %v6466_v51 = vpop.f32.mrf.mxu1  ;;  %2377 = vmatmul.mubr.f32.gmra.mxu1 %v1591_v9  ;;  %v1714_v57 = vmax.f32 %v968_v54, 0.0  ;;  %v972_v14 = vadd.f32 %v971_v39, %v6043_v16  ;;  %v1604_v35 = vmax.f32 %v1249_v31, 0.0  ;;  %v1253_v31 = vadd.f32 %v6344_v24, %v6324_v60 }
 0x180   : > { %2381 = vmatprep.mubr.f32.mxu1 %v1596_v4  ;;  %v973_v1 = vpop.f32.mrf.mxu0 }
 0x181   : > { %v6471_v50 = vpop.f32.mrf.mxu1  ;;  %v974_v63 = vadd.f32 %v973_v1, %v6046_v17  ;;  %2146 = vmatprep.mubr.f32.mxu0 %v1714_v57  ;;  %v1717_v56 = vmax.f32 %v972_v14, 0.0  ;;  %v1255_v57 = vadd.f32 %v6351_v28, %v6314_v5  ;;  %v1607_v24 = vmax.f32 %v1253_v31, 0.0 }
 0x182   : > { %v977_v9 = vpop.f32.mrf.mxu0  ;;  %2147 = vmatmul.mubr.f32.gmra.mxu0 %v1713_v33 }
 0x183   : > { %v6476_v6 = vpop.f32.mrf.mxu1  ;;  %2382 = vmatmul.mubr.f32.gmra.mxu1 %v1595_v21  ;;  %v1718_v10 = vmax.f32 %v974_v63, 0.0  ;;  %v978_v4 = vadd.f32 %v977_v9, %v6043_v16  ;;  %v1608_v28 = vmax.f32 %v1255_v57, 0.0  ;;  %v1259_v57 = vadd.f32 %v6356_v37, %v6324_v60 }
 0x184   : > { %2386 = vmatprep.mubr.f32.mxu1 %v1600_v62  ;;  %v979_v54 = vpop.f32.mrf.mxu0 }
 0x185   : > { %v6481_v39 = vpop.f32.mrf.mxu1  ;;  %v980_v14 = vadd.f32 %v979_v54, %v6046_v17  ;;  %2151 = vmatprep.mubr.f32.mxu0 %v1718_v10  ;;  %v1721_v33 = vmax.f32 %v978_v4, 0.0  ;;  %v1261_v10 = vadd.f32 %v6361_v32, %v6314_v5  ;;  %v1611_v37 = vmax.f32 %v1259_v57, 0.0 }
 0x186   : > { %v983_v21 = vpop.f32.mrf.mxu0  ;;  %2152 = vmatmul.mubr.f32.gmra.mxu0 %v1717_v56 }
 0x187   : > { %v6486_v1 = vpop.f32.mrf.mxu1  ;;  %2387 = vmatmul.mubr.f32.gmra.mxu1 %v1599_v20  ;;  %v1722_v47 = vmax.f32 %v980_v14, 0.0  ;;  %v984_v62 = vadd.f32 %v983_v21, %v6043_v16  ;;  %v1612_v32 = vmax.f32 %v1261_v10, 0.0  ;;  %v1265_v10 = vadd.f32 %v6366_v48, %v6324_v60 }
 0x188   : > { %2391 = vmatprep.mubr.f32.mxu1 %v1604_v35  ;;  %v985_v63 = vpop.f32.mrf.mxu0  ;;  %v1002_v48 = vadd.f32 %v6048_v19, %v6043_v16 }
 0x189   : > { %v6491_v9 = vpop.f32.mrf.mxu1  ;;  %v986_v4 = vadd.f32 %v985_v63, %v6046_v17  ;;  %2156 = vmatprep.mubr.f32.mxu0 %v1722_v47  ;;  %v1725_v56 = vmax.f32 %v984_v62, 0.0  ;;  %v1267_v47 = vadd.f32 %v6371_v49, %v6314_v5  ;;  %v1004_v49 = vadd.f32 %v6054_v22, %v6046_v17 }
 0x18a   : > { %v989_v20 = vpop.f32.mrf.mxu0  ;;  %2157 = vmatmul.mubr.f32.gmra.mxu0 %v1721_v33  ;;  %v1271_v22 = vadd.f32 %v6376_v12, %v6324_v60  ;;  %v1737_v19 = vmax.f32 %v1002_v48, 0.0  ;;  %v1008_v12 = vadd.f32 %v6057_v26, %v6043_v16  ;;  %v1022_v48 = vadd.f32 %v6081_v46, %v6046_v17 }
 0x18b   : > { %v6496_v54 = vpop.f32.mrf.mxu1  ;;  %2392 = vmatmul.mubr.f32.gmra.mxu1 %v1603_v43  ;;  %v1726_v55 = vmax.f32 %v986_v4, 0.0  ;;  %v990_v35 = vadd.f32 %v989_v20, %v6043_v16  ;;  %v1289_v46 = vadd.f32 %v6406_v40, %v6324_v60  ;;  %v1026_v40 = vadd.f32 %v6084_v52, %v6043_v16 }
 0x18c   : > { %2396 = vmatprep.mubr.f32.mxu1 %v1608_v28  ;;  %v991_v14 = vpop.f32.mrf.mxu0  ;;  %v1741_v26 = vmax.f32 %v1008_v12, 0.0  ;;  %v1028_v12 = vadd.f32 %v6090_v58, %v6046_v17  ;;  %v1295_v58 = vadd.f32 %v6416_v15, %v6324_v60  ;;  %v1032_v15 = vadd.f32 %v6093_v2, %v6043_v16 }
 0x18d   : > { %v6501_v21 = vpop.f32.mrf.mxu1  ;;  %v992_v62 = vadd.f32 %v991_v14, %v6046_v17  ;;  %2161 = vmatprep.mubr.f32.mxu0 %v1726_v55  ;;  %v1729_v33 = vmax.f32 %v990_v35, 0.0  ;;  %v1616_v55 = vmax.f32 %v1267_v47, 0.0  ;;  %v1273_v35 = vadd.f32 %v6381_v41, %v6314_v5 }
 0x18e   : > { %v995_v43 = vpop.f32.mrf.mxu0  ;;  %2162 = vmatmul.mubr.f32.gmra.mxu0 %v1725_v56  ;;  %v1738_v41 = vmax.f32 %v1004_v49, 0.0  ;;  %v1285_v49 = vadd.f32 %v6401_v61, %v6314_v5  ;;  %v1753_v52 = vmax.f32 %v1026_v40, 0.0  ;;  %v1757_v2 = vmax.f32 %v1032_v15, 0.0  ;;  %v7817_v15 = vld [vmem:[#allocation5_spill] sm:$0xff] }
 0x18f   : > { %v6506_v63 = vpop.f32.mrf.mxu1  ;;  %2397 = vmatmul.mubr.f32.gmra.mxu1 %v1607_v24  ;;  %v1730_v31 = vmax.f32 %v992_v62, 0.0  ;;  %v996_v28 = vadd.f32 %v995_v43, %v6043_v16  ;;  %v1010_v62 = vadd.f32 %v6063_v30, %v6046_v17  ;;  %v1620_v43 = vmax.f32 %v1273_v35, 0.0 }
 0x190   : > { %2401 = vmatprep.mubr.f32.mxu1 %v1612_v32  ;;  %v997_v4 = vpop.f32.mrf.mxu0  ;;  %v1615_v32 = vmax.f32 %v1265_v10, 0.0 }
 0x191   : > { %v6511_v20 = vpop.f32.mrf.mxu1  ;;  %v998_v56 = vadd.f32 %v997_v4, %v6046_v17  ;;  %2166 = vmatprep.mubr.f32.mxu0 %v1730_v31  ;;  %v1733_v24 = vmax.f32 %v996_v28, 0.0  ;;  %v1619_v28 = vmax.f32 %v1271_v22, 0.0  ;;  %v1742_v10 = vmax.f32 %v1010_v62, 0.0 }
 0x192   : > { %2167 = vmatmul.mubr.f32.gmra.mxu0 %v1729_v33  ;;  %v1279_v33 = vadd.f32 %v6391_v3, %v6314_v5  ;;  %v1016_v3 = vadd.f32 %v6072_v38, %v6046_v17  ;;  %v1283_v38 = vadd.f32 %v6396_v25, %v6324_v60  ;;  %v1291_v22 = vadd.f32 %v6411_v27, %v6314_v5 }
 0x193   : > { %v6518_v14 = vpop.f32.mrf.mxu1  ;;  %2402 = vmatmul.mubr.f32.gmra.mxu1 %v1611_v37  ;;  %v1734_v57 = vmax.f32 %v998_v56, 0.0  ;;  %v1277_v37 = vadd.f32 %v6386_v44, %v6324_v60  ;;  %v1014_v44 = vadd.f32 %v6066_v34, %v6043_v16  ;;  %v1020_v25 = vadd.f32 %v6075_v42, %v6043_v16 }
 0x194   : > { %2406 = vmatprep.mubr.f32.mxu1 %v1616_v55  ;;  %v1624_v4 = vmax.f32 %v1279_v33, 0.0  ;;  %v1746_v61 = vmax.f32 %v1016_v3, 0.0  ;;  %v1750_v27 = vmax.f32 %v1022_v48, 0.0  ;;  %v1635_v48 = vmax.f32 %v1295_v58, 0.0 }
 0x195   : > { %v6524_v47 = vpop.f32.mrf.mxu1  ;;  %2171 = vmatprep.mubr.f32.mxu0 %v1734_v57  ;;  %v1623_v56 = vmax.f32 %v1277_v37, 0.0  ;;  %v1745_v34 = vmax.f32 %v1014_v44, 0.0  ;;  %v1297_v37 = vadd.f32 %v6421_v45, %v6314_v5  ;;  %v1749_v42 = vmax.f32 %v1020_v25, 0.0 }
 0x196   : > { %2172 = vmatmul.mubr.f32.gmra.mxu0 %v1733_v24  ;;  %v1754_v45 = vmax.f32 %v1028_v12, 0.0  ;;  %v1034_v44 = vadd.f32 %v6099_v8, %v6046_v17  ;;  %v1301_v8 = vadd.f32 %v6426_v13, %v6324_v60  ;;  %v1038_v13 = vadd.f32 %v6102_v18, %v6043_v16 }
 0x197   : > { %v6530_v31 = vpop.f32.mrf.mxu1  ;;  %2407 = vmatmul.mubr.f32.gmra.mxu1 %v1615_v32  ;;  %2176 = vmatprep.mubr.f32.mxu0 %v1738_v41  ;;  %v1628_v32 = vmax.f32 %v1285_v49, 0.0 }
 0x198   : > { %2411 = vmatprep.mubr.f32.mxu1 %v1620_v43  ;;  %v1627_v43 = vmax.f32 %v1283_v38, 0.0  ;;  %v1303_v38 = vadd.f32 %v6431_v53, %v6314_v5  ;;  %v1758_v53 = vmax.f32 %v1034_v44, 0.0  ;;  %v1761_v18 = vmax.f32 %v1038_v13, 0.0 }
 0x199   : > { %v6536_v30 = vpop.f32.mrf.mxu1  ;;  %v1319_v13 = vadd.f32 %v6456_v29, %v6324_v60 }
 0x19a   : > { %v6544_v35 = vpop.f32.mrf.mxu0  ;;  %2177 = vmatmul.mubr.f32.gmra.mxu0 %v1737_v19  ;;  %v1640_v25 = vmax.f32 %v1303_v38, 0.0 }
 0x19b   : > { %v6542_v55 = vpop.f32.mrf.mxu1  ;;  %2412 = vmatmul.mubr.f32.gmra.mxu1 %v1619_v28  ;;  %2181 = vmatprep.mubr.f32.mxu0 %v1742_v10  ;;  %v1632_v28 = vmax.f32 %v1291_v22, 0.0 }
 0x19c   : > { %2416 = vmatprep.mubr.f32.mxu1 %v1624_v4  ;;  %v1940_v57 = vpop.f32.mrf.mxu0  ;;  %v1631_v4 = vmax.f32 %v1289_v46, 0.0 }
 0x19d   : > { %v6550_v24 = vpop.f32.mrf.mxu1 }
 0x19e   : > { %v6558_v62 = vpop.f32.mrf.mxu0  ;;  %2182 = vmatmul.mubr.f32.gmra.mxu0 %v1741_v26 }
 0x19f   : > { %v6556_v41 = vpop.f32.mrf.mxu1  ;;  %2417 = vmatmul.mubr.f32.gmra.mxu1 %v1623_v56  ;;  %2186 = vmatprep.mubr.f32.mxu0 %v1746_v61  ;;  %v1636_v56 = vmax.f32 %v1297_v37, 0.0  ;;  %v7815_v37 = vld [vmem:[#allocation3_spill] sm:$0xff] }
 0x1a0   : > { %2421 = vmatprep.mubr.f32.mxu1 %v1628_v32  ;;  %v1945_v19 = vpop.f32.mrf.mxu0 }
 0x1a1   : > { %v6564_v33 = vpop.f32.mrf.mxu1 }
 0x1a2   : > { %v6572_v3 = vpop.f32.mrf.mxu0  ;;  %2187 = vmatmul.mubr.f32.gmra.mxu0 %v1745_v34  ;;  %v1040_v34 = vadd.f32 %v6108_v23, %v6046_v17  ;;  %v1307_v23 = vadd.f32 %v6436_v36, %v6324_v60  ;;  %v7816_v36 = vld [vmem:[#allocation2_spill] sm:$0xff] }
 0x1a3   : > { %v6570_v10 = vpop.f32.mrf.mxu1  ;;  %2422 = vmatmul.mubr.f32.gmra.mxu1 %v1627_v43  ;;  %2191 = vmatprep.mubr.f32.mxu0 %v1750_v27  ;;  %v1309_v43 = vadd.f32 %v6441_v59, %v6314_v5  ;;  %v1639_v27 = vmax.f32 %v1301_v8, 0.0 }
 0x1a4   : > { %2426 = vmatprep.mubr.f32.mxu1 %v1632_v28  ;;  %v1950_v26 = vpop.f32.mrf.mxu0  ;;  %v1762_v59 = vmax.f32 %v1040_v34, 0.0  ;;  %v1643_v44 = vmax.f32 %v1307_v23, 0.0 }
 0x1a5   : > { %v6578_v49 = vpop.f32.mrf.mxu1  ;;  %v1644_v40 = vmax.f32 %v1309_v43, 0.0 }
 0x1a6   : > { %v6586_v61 = vpop.f32.mrf.mxu0  ;;  %2192 = vmatmul.mubr.f32.gmra.mxu0 %v1749_v42  ;;  %v1046_v42 = vadd.f32 %v7815_v37, %v6046_v17 }
 0x1a7   : > { %v6584_v57 = vpop.f32.mrf.mxu1  ;;  %2427 = vmatmul.mubr.f32.gmra.mxu1 %v1631_v4  ;;  %2196 = vmatprep.mubr.f32.mxu0 %v1754_v45  ;;  %v1315_v4 = vadd.f32 %v6451_v11, %v6314_v5  ;;  %v1044_v45 = vadd.f32 %v7816_v36, %v6043_v16 }
 0x1a8   : > { %2431 = vmatprep.mubr.f32.mxu1 %v1636_v56  ;;  %v1955_v22 = vpop.f32.mrf.mxu0  ;;  %v1313_v56 = vadd.f32 %v6446_v0, %v6324_v60  ;;  %v1766_v11 = vmax.f32 %v1046_v42, 0.0  ;;  %v1327_v42 = vadd.f32 %v6471_v50, %v6314_v5 }
 0x1a9   : > { %v6592_v32 = vpop.f32.mrf.mxu1  ;;  %v1648_v8 = vmax.f32 %v1315_v4, 0.0  ;;  %v1321_v22 = vadd.f32 %v6461_v7, %v6314_v5  ;;  %v1765_v0 = vmax.f32 %v1044_v45, 0.0  ;;  %v1651_v45 = vmax.f32 %v1319_v13, 0.0 }
 0x1aa   : > { %v6600_v19 = vpop.f32.mrf.mxu0  ;;  %2197 = vmatmul.mubr.f32.gmra.mxu0 %v1753_v52 }
 0x1ab   : > { %v6598_v46 = vpop.f32.mrf.mxu1  ;;  %2432 = vmatmul.mubr.f32.gmra.mxu1 %v1635_v48  ;;  %2201 = vmatprep.mubr.f32.mxu0 %v1758_v53  ;;  %v1052_v48 = vadd.f32 %v7817_v15, %v6046_v17  ;;  %v1652_v37 = vmax.f32 %v1321_v22, 0.0 }
 0x1ac   : > { %2436 = vmatprep.mubr.f32.mxu1 %v1640_v25  ;;  %v1960_v28 = vpop.f32.mrf.mxu0  ;;  %v7818_v25 = vld [vmem:[#allocation4_spill] sm:$0xff] }
 0x1ad   : > { %v6606_v12 = vpop.f32.mrf.mxu1  ;;  %v1050_v43 = vadd.f32 %v7818_v25, %v6043_v16  ;;  %v1770_v7 = vmax.f32 %v1052_v48, 0.0  ;;  %v7819_v28 = vld [vmem:[#allocation7_spill] sm:$0xff]  ;;  %v1656_v48 = vmax.f32 %v1327_v42, 0.0 }
 0x1ae   : > { %v6614_v26 = vpop.f32.mrf.mxu0  ;;  %2202 = vmatmul.mubr.f32.gmra.mxu0 %v1757_v2  ;;  %v1647_v2 = vmax.f32 %v1313_v56, 0.0 }
 0x1af   : > { %v6612_v58 = vpop.f32.mrf.mxu1  ;;  %2437 = vmatmul.mubr.f32.gmra.mxu1 %v1639_v27  ;;  %2206 = vmatprep.mubr.f32.mxu0 %v1762_v59  ;;  %v1058_v59 = vadd.f32 %v7819_v28, %v6046_v17  ;;  %v1769_v29 = vmax.f32 %v1050_v43, 0.0  ;;  %v7822_v43 = vld [vmem:[#allocation8_spill] sm:$0xff] }
 0x1b0   : > { %2441 = vmatprep.mubr.f32.mxu1 %v1644_v40  ;;  %v1965_v52 = vpop.f32.mrf.mxu0 }
 0x1b1   : > { %v6620_v38 = vpop.f32.mrf.mxu1  ;;  %v1774_v50 = vmax.f32 %v1058_v59, 0.0  ;;  %v7823_v59 = vld [vmem:[#allocation11_spill] sm:$0xff] }
 0x1b2   : > { %v6628_v34 = vpop.f32.mrf.mxu0  ;;  %2207 = vmatmul.mubr.f32.gmra.mxu0 %v1761_v18  ;;  %v7820_v18 = vld [vmem:[#allocation6_spill] sm:$0xff] }
 0x1b3   : > { %v6626_v53 = vpop.f32.mrf.mxu1  ;;  %2442 = vmatmul.mubr.f32.gmra.mxu1 %v1643_v44  ;;  %2211 = vmatprep.mubr.f32.mxu0 %v1766_v11  ;;  %v1056_v36 = vadd.f32 %v7820_v18, %v6043_v16  ;;  %v1325_v44 = vadd.f32 %v6466_v51, %v6324_v60  ;;  %v7821_v11 = vld [vmem:[#allocation9_spill] sm:$0xff]  ;;  %v3218_v51 = vld [vmem:[%s7789_s5] sm:$0xff] }
 0x1b4   : > { %2446 = vmatprep.mubr.f32.mxu1 %v1648_v8  ;;  %v1970_v23 = vpop.f32.mrf.mxu0  ;;  %v1064_v15 = vadd.f32 %v7821_v11, %v6046_v17  ;;  %v1333_v8 = vadd.f32 %v6481_v39, %v6314_v5  ;;  %v1331_v39 = vadd.f32 %v6476_v6, %v6324_v60  ;;  %4792 = vmatprep.subr.mxu0 %v3218_v51 }
 0x1b5   : > { %v6634_v27 = vpop.f32.mrf.mxu1  ;;  %v1773_v25 = vmax.f32 %v1056_v36, 0.0  ;;  %v1655_v13 = vmax.f32 %v1325_v44, 0.0  ;;  %4793 = vmatpush3.msra.mxu0 %v3218_v51 }
 0x1b6   : > { %v6642_v4 = vpop.f32.mrf.mxu0  ;;  %2212 = vmatmul.mubr.f32.gmra.mxu0 %v1765_v0  ;;  %v1778_v28 = vmax.f32 %v1064_v15, 0.0  ;;  %v1660_v42 = vmax.f32 %v1333_v8, 0.0 }
 0x1b7   : > { %v6640_v40 = vpop.f32.mrf.mxu1  ;;  %2447 = vmatmul.mubr.f32.gmra.mxu1 %v1647_v2  ;;  %2216 = vmatprep.mubr.f32.mxu0 %v1770_v7  ;;  %v1062_v2 = vadd.f32 %v7822_v43, %v6043_v16 }
 0x1b8   : > { %2451 = vmatprep.mubr.f32.mxu1 %v1652_v37  ;;  %v1975_v52 = vpop.f32.mrf.mxu0  ;;  %v1070_v37 = vadd.f32 %v7823_v59, %v6046_v17 }
 0x1b9   : > { %v6648_v56 = vpop.f32.mrf.mxu1  ;;  %v1777_v6 = vmax.f32 %v1062_v2, 0.0  ;;  %v1659_v52 = vmax.f32 %v1331_v39, 0.0 }
 0x1ba   : > { %v6656_v0 = vpop.f32.mrf.mxu0  ;;  %2217 = vmatmul.mubr.f32.gmra.mxu0 %v1769_v29  ;;  %v1339_v29 = vadd.f32 %v6491_v9, %v6314_v5  ;;  %v1782_v15 = vmax.f32 %v1070_v37, 0.0 }
 0x1bb   : > { %v6654_v22 = vpop.f32.mrf.mxu1  ;;  %2452 = vmatmul.mubr.f32.gmra.mxu1 %v1651_v45  ;;  %2221 = vmatprep.mubr.f32.mxu0 %v1774_v50  ;;  %v7824_v45 = vld [vmem:[#allocation10_spill] sm:$0xff]  ;;  %v1337_v50 = vadd.f32 %v6486_v1, %v6324_v60 }
 0x1bc   : > { %2456 = vmatprep.mubr.f32.mxu1 %v1656_v48  ;;  %v1980_v7 = vpop.f32.mrf.mxu0  ;;  %v1068_v44 = vadd.f32 %v7824_v45, %v6043_v16  ;;  %v7825_v48 = vld [vmem:[#allocation13_spill] sm:$0xff]  ;;  %v1664_v51 = vmax.f32 %v1339_v29, 0.0 }
 0x1bd   : > { %v6665_v23 = vpop.f32.mrf.mxu1  ;;  %v1076_v8 = vadd.f32 %v7825_v48, %v6046_v17  ;;  %v1663_v7 = vmax.f32 %v1337_v50, 0.0  ;;  %v7828_v50 = vld [vmem:[#allocation14_spill] sm:$0xff]  ;;  %v1349_v48 = vadd.f32 %v6506_v63, %v6324_v60 }
 0x1be   : > { %v6673_v36 = vpop.f32.mrf.mxu0  ;;  %2222 = vmatmul.mubr.f32.gmra.mxu0 %v1773_v25  ;;  %v1345_v25 = vadd.f32 %v6501_v21, %v6314_v5  ;;  %v1781_v1 = vmax.f32 %v1068_v44, 0.0 }
 0x1bf   : > { %v6671_v18 = vpop.f32.mrf.mxu1  ;;  %2457 = vmatmul.mubr.f32.gmra.mxu1 %v1655_v13  ;;  %2226 = vmatprep.mubr.f32.mxu0 %v1778_v28  ;;  %v7826_v13 = vld [vmem:[#allocation12_spill] sm:$0xff]  ;;  %v1343_v28 = vadd.f32 %v6496_v54, %v6324_v60  ;;  %v1786_v21 = vmax.f32 %v1076_v8, 0.0 }
 0x1c0   : > { %2461 = vmatprep.mubr.f32.mxu1 %v1660_v42  ;;  %v1985_v9 = vpop.f32.mrf.mxu0  ;;  %v1074_v39 = vadd.f32 %v7826_v13, %v6043_v16  ;;  %v7827_v42 = vld [vmem:[#allocation15_spill] sm:$0xff]  ;;  %v1668_v45 = vmax.f32 %v1345_v25, 0.0  ;;  %v7829_v25 = vld [vmem:[#allocation17_spill] sm:$0xff] }
 0x1c1   : > { %v6679_v11 = vpop.f32.mrf.mxu1  ;;  %v1082_v29 = vadd.f32 %v7827_v42, %v6046_v17  ;;  %v1080_v9 = vadd.f32 %v7828_v50, %v6043_v16  ;;  %v1088_v13 = vadd.f32 %v7829_v25, %v6046_v17  ;;  %v1671_v42 = vmax.f32 %v1349_v48, 0.0  ;;  %v7831_v50 = vld [vmem:[#allocation19_spill] sm:$0xff]  ;;  %v7832_v48 = vld [vmem:[#allocation18_spill] sm:$0xff] }
 0x1c2   : > { %v6687_v2 = vpop.f32.mrf.mxu0  ;;  %2227 = vmatmul.mubr.f32.gmra.mxu0 %v1777_v6  ;;  %v1351_v6 = vadd.f32 %v6511_v20, %v6314_v5  ;;  %v1785_v54 = vmax.f32 %v1074_v39, 0.0 }
 0x1c3   : > { %v6685_v43 = vpop.f32.mrf.mxu1  ;;  %2462 = vmatmul.mubr.f32.gmra.mxu1 %v1659_v52  ;;  %2231 = vmatprep.mubr.f32.mxu0 %v1782_v15  ;;  %v1667_v15 = vmax.f32 %v1343_v28, 0.0  ;;  %v1790_v20 = vmax.f32 %v1082_v29, 0.0  ;;  %v1789_v63 = vmax.f32 %v1080_v9, 0.0  ;;  %v7830_v28 = vld [vmem:[#allocation16_spill] sm:$0xff]  ;;  %v1355_v29 = vadd.f32 %v6518_v14, %v6324_v60 }
 0x1c4   : > { %2466 = vmatprep.mubr.f32.mxu1 %v1664_v51  ;;  %v1990_v37 = vpop.f32.mrf.mxu0 }
 0x1c5   : > { %v6693_v59 = vpop.f32.mrf.mxu1  ;;  %v1672_v37 = vmax.f32 %v1351_v6, 0.0 }
 0x1c6   : > { %v6701_v44 = vpop.f32.mrf.mxu0  ;;  %2232 = vmatmul.mubr.f32.gmra.mxu0 %v1781_v1  ;;  %v1357_v1 = vadd.f32 %v6524_v47, %v6314_v5  ;;  %v1794_v47 = vmax.f32 %v1088_v13, 0.0  ;;  %v1675_v13 = vmax.f32 %v1355_v29, 0.0 }
 0x1c7   : > { %v6699_v52 = vpop.f32.mrf.mxu1  ;;  %2467 = vmatmul.mubr.f32.gmra.mxu1 %v1663_v7  ;;  %2236 = vmatprep.mubr.f32.mxu0 %v1786_v21  ;;  %v1086_v21 = vadd.f32 %v7830_v28, %v6043_v16 }
 0x1c8   : > { %2471 = vmatprep.mubr.f32.mxu1 %v1668_v45  ;;  %v1995_v51 = vpop.f32.mrf.mxu0  ;;  %v1676_v25 = vmax.f32 %v1357_v1, 0.0 }
 0x1c9   : > { %v6707_v8 = vpop.f32.mrf.mxu1  ;;  %v1094_v51 = vadd.f32 %v7831_v50, %v6046_v17  ;;  %v1793_v14 = vmax.f32 %v1086_v21, 0.0  ;;  %v1361_v17 = vadd.f32 %v6530_v31, %v6324_v60  ;;  %v1367_v31 = vadd.f32 %v6542_v55, %v6324_v60 }
 0x1ca   : > { %v6715_v39 = vpop.f32.mrf.mxu0  ;;  %2237 = vmatmul.mubr.f32.gmra.mxu0 %v1785_v54  ;;  %v1363_v54 = vadd.f32 %v6536_v30, %v6314_v5 }
 0x1cb   : > { %v6713_v7 = vpop.f32.mrf.mxu1  ;;  %2472 = vmatmul.mubr.f32.gmra.mxu1 %v1667_v15  ;;  %2241 = vmatprep.mubr.f32.mxu0 %v1790_v20  ;;  %v1092_v20 = vadd.f32 %v7832_v48, %v6043_v16  ;;  %v1798_v30 = vmax.f32 %v1094_v51, 0.0  ;;  %v1679_v21 = vmax.f32 %v1361_v17, 0.0 }
 0x1cc   : > { %2476 = vmatprep.mubr.f32.mxu1 %v1672_v37  ;;  %v2000_v6 = vpop.f32.mrf.mxu0  ;;  %v1680_v28 = vmax.f32 %v1363_v54, 0.0  ;;  %v1683_v54 = vmax.f32 %v1367_v31, 0.0 }
 0x1cd   : > { %v6721_v45 = vpop.f32.mrf.mxu1  ;;  %v1369_v6 = vadd.f32 %v6550_v24, %v6314_v5  ;;  %v1797_v16 = vmax.f32 %v1092_v20, 0.0  ;;  %v1375_v24 = vadd.f32 %v6564_v33, %v6314_v5 }
 0x1ce   : > { %v6729_v9 = vpop.f32.mrf.mxu0  ;;  %2242 = vmatmul.mubr.f32.gmra.mxu0 %v1789_v63 }
 0x1cf   : > { %v6727_v15 = vpop.f32.mrf.mxu1  ;;  %2477 = vmatmul.mubr.f32.gmra.mxu1 %v1671_v42  ;;  %2246 = vmatprep.mubr.f32.mxu0 %v1794_v47  ;;  %v1684_v50 = vmax.f32 %v1369_v6, 0.0  ;;  %v1688_v20 = vmax.f32 %v1375_v24, 0.0 }
 0x1d0   : > { %2481 = vmatprep.mubr.f32.mxu1 %v1676_v25  ;;  %v2005_v1 = vpop.f32.mrf.mxu0 }
 0x1d1   : > { %v6735_v37 = vpop.f32.mrf.mxu1 }
 0x1d2   : > { %v6741_v42 = vpop.f32.mrf.mxu0  ;;  %2247 = vmatmul.mubr.f32.gmra.mxu0 %v1793_v14  ;;  %v1373_v14 = vadd.f32 %v6556_v41, %v6324_v60 }
 0x1d3   : > { %v6739_v63 = vpop.f32.mrf.mxu1  ;;  %2482 = vmatmul.mubr.f32.gmra.mxu1 %v1675_v13  ;;  %2251 = vmatprep.mubr.f32.mxu0 %v1798_v30  ;;  %v1381_v13 = vadd.f32 %v6578_v49, %v6314_v5  ;;  %v1379_v30 = vadd.f32 %v6570_v10, %v6324_v60 }
 0x1d4   : > { %2486 = vmatprep.mubr.f32.mxu1 %v1680_v28  ;;  %v2010_v47 = vpop.f32.mrf.mxu0  ;;  %v1687_v1 = vmax.f32 %v1373_v14, 0.0 }
 0x1d5   : > { %v6745_v29 = vpop.f32.mrf.mxu1  ;;  %v1692_v6 = vmax.f32 %v1381_v13, 0.0  ;;  %v1691_v31 = vmax.f32 %v1379_v30, 0.0  ;;  %v1385_v47 = vadd.f32 %v6584_v57, %v6324_v60  ;;  %v1399_v30 = vadd.f32 %v6620_v38, %v6314_v5 }
 0x1d6   : > { %v6751_v25 = vpop.f32.mrf.mxu0  ;;  %2252 = vmatmul.mubr.f32.gmra.mxu0 %v1797_v16  ;;  %v1387_v16 = vadd.f32 %v6592_v32, %v6314_v5 }
 0x1d7   : > { %v6749_v51 = vpop.f32.mrf.mxu1  ;;  %2487 = vmatmul.mubr.f32.gmra.mxu1 %v1679_v21 }
 0x1d8   : > { %2491 = vmatprep.mubr.f32.mxu1 %v1684_v50  ;;  %v2015_v55 = vpop.f32.mrf.mxu0  ;;  %v1696_v24 = vmax.f32 %v1387_v16, 0.0  ;;  %v1397_v16 = vadd.f32 %v6612_v58, %v6324_v60 }
 0x1d9   : > { %v6755_v48 = vpop.f32.mrf.mxu1  ;;  %v1695_v55 = vmax.f32 %v1385_v47, 0.0  ;;  %v1704_v47 = vmax.f32 %v1399_v30, 0.0 }
 0x1da   : > { %v6761_v33 = vpop.f32.mrf.mxu0 }
 0x1db   : > { %v6759_v17 = vpop.f32.mrf.mxu1  ;;  %2492 = vmatmul.mubr.f32.gmra.mxu1 %v1683_v54  ;;  %v1393_v54 = vadd.f32 %v6606_v12, %v6314_v5 }
 0x1dc   : > { %2496 = vmatprep.mubr.f32.mxu1 %v1688_v20  ;;  %v2020_v41 = vpop.f32.mrf.mxu0  ;;  %v1391_v20 = vadd.f32 %v6598_v46, %v6324_v60 }
 0x1dd   : > { %v6765_v28 = vpop.f32.mrf.mxu1 }
 0x1de   : > { %v6771_v49 = vpop.f32.mrf.mxu0 }
 0x1df   : > { %v6769_v21 = vpop.f32.mrf.mxu1  ;;  %2497 = vmatmul.mubr.f32.gmra.mxu1 %v1687_v1  ;;  %v1700_v1 = vmax.f32 %v1393_v54, 0.0  ;;  %v1703_v54 = vmax.f32 %v1397_v16, 0.0 }
 0x1e0   : > { %2501 = vmatprep.mubr.f32.mxu1 %v1692_v6  ;;  %v2025_v10 = vpop.f32.mrf.mxu0  ;;  %v1699_v6 = vmax.f32 %v1391_v20, 0.0 }
 0x1e1   : > { %v6775_v50 = vpop.f32.mrf.mxu1  ;;  %v1405_v10 = vadd.f32 %v6634_v27, %v6314_v5 }
 0x1e2   : > { %v6781_v32 = vpop.f32.mrf.mxu0 }
 0x1e3   : > { %v6779_v14 = vpop.f32.mrf.mxu1  ;;  %7833 = vst [vmem:[#allocation3_spill] sm:$0xff] %v6781_v32  ;;  %2502 = vmatmul.mubr.f32.gmra.mxu1 %v1691_v31 }
 0x1e4   : > { %2506 = vmatprep.mubr.f32.mxu1 %v1696_v24  ;;  %v2030_v57 = vpop.f32.mrf.mxu0 }
 0x1e5   : > { %v6785_v13 = vpop.f32.mrf.mxu1  ;;  %v1708_v57 = vmax.f32 %v1405_v10, 0.0  ;;  %v1417_v10 = vadd.f32 %v6665_v23, %v6314_v5 }
 0x1e6   : > { %v6791_v12 = vpop.f32.mrf.mxu0 }
 0x1e7   : > { %v6789_v41 = vpop.f32.mrf.mxu1  ;;  %7834 = vst [vmem:[#allocation2_spill] sm:$0xff] %v6791_v12  ;;  %2507 = vmatmul.mubr.f32.gmra.mxu1 %v1695_v55  ;;  %v1403_v55 = vadd.f32 %v6626_v53, %v6324_v60 }
 0x1e8   : > { %2511 = vmatprep.mubr.f32.mxu1 %v1700_v1  ;;  %v2035_v46 = vpop.f32.mrf.mxu0  ;;  %v1411_v1 = vadd.f32 %v6648_v56, %v6314_v5 }
 0x1e9   : > { %v6795_v31 = vpop.f32.mrf.mxu1  ;;  %v1707_v46 = vmax.f32 %v1403_v55, 0.0 }
 0x1ea   : > { %v6801_v38 = vpop.f32.mrf.mxu0 }
 0x1eb   : > { %v6799_v24 = vpop.f32.mrf.mxu1  ;;  %7835 = vst [vmem:[#allocation5_spill] sm:$0xff] %v6801_v38  ;;  %2512 = vmatmul.mubr.f32.gmra.mxu1 %v1699_v6  ;;  %v1409_v6 = vadd.f32 %v6640_v40, %v6324_v60 }
 0x1ec   : > { %2516 = vmatprep.mubr.f32.mxu1 %v1704_v47  ;;  %v2040_v58 = vpop.f32.mrf.mxu0  ;;  %v1712_v47 = vmax.f32 %v1411_v1, 0.0  ;;  %v1423_v1 = vadd.f32 %v6679_v11, %v6314_v5 }
 0x1ed   : > { %v6805_v20 = vpop.f32.mrf.mxu1 }
 0x1ee   : > { %v6811_v27 = vpop.f32.mrf.mxu0 }
 0x1ef   : > { %v6809_v30 = vpop.f32.mrf.mxu1  ;;  %7836 = vst [vmem:[#allocation4_spill] sm:$0xff] %v6811_v27  ;;  %2517 = vmatmul.mubr.f32.gmra.mxu1 %v1703_v54  ;;  %v1711_v27 = vmax.f32 %v1409_v6, 0.0  ;;  %v1415_v54 = vadd.f32 %v6654_v22, %v6324_v60 }
 0x1f0   : > { %2521 = vmatprep.mubr.f32.mxu1 %v1708_v57  ;;  %v2045_v53 = vpop.f32.mrf.mxu0  ;;  %v1716_v57 = vmax.f32 %v1417_v10, 0.0  ;;  %v1429_v10 = vadd.f32 %v6693_v59, %v6314_v5 }
 0x1f1   : > { %v6815_v16 = vpop.f32.mrf.mxu1 }
 0x1f2   : > { %v6821_v56 = vpop.f32.mrf.mxu0 }
 0x1f3   : > { %v6819_v58 = vpop.f32.mrf.mxu1  ;;  %7837 = vst [vmem:[#allocation7_spill] sm:$0xff] %v6821_v56  ;;  %2522 = vmatmul.mubr.f32.gmra.mxu1 %v1707_v46  ;;  %v1715_v56 = vmax.f32 %v1415_v54, 0.0  ;;  %v1421_v46 = vadd.f32 %v6671_v18, %v6324_v60 }
 0x1f4   : > { %2526 = vmatprep.mubr.f32.mxu1 %v1712_v47  ;;  %v2050_v40 = vpop.f32.mrf.mxu0  ;;  %v1720_v47 = vmax.f32 %v1423_v1, 0.0  ;;  %v1435_v1 = vadd.f32 %v6707_v8, %v6314_v5 }
 0x1f5   : > { %v6825_v55 = vpop.f32.mrf.mxu1 }
 0x1f6   : > { %v6831_v23 = vpop.f32.mrf.mxu0 }
 0x1f7   : > { %v6829_v53 = vpop.f32.mrf.mxu1  ;;  %7838 = vst [vmem:[#allocation6_spill] sm:$0xff] %v6831_v23  ;;  %2527 = vmatmul.mubr.f32.gmra.mxu1 %v1711_v27  ;;  %v1719_v23 = vmax.f32 %v1421_v46, 0.0  ;;  %v1427_v27 = vadd.f32 %v6685_v43, %v6324_v60 }
 0x1f8   : > { %2531 = vmatprep.mubr.f32.mxu1 %v1716_v57  ;;  %v2055_v22 = vpop.f32.mrf.mxu0  ;;  %v1724_v57 = vmax.f32 %v1429_v10, 0.0  ;;  %v1441_v10 = vadd.f32 %v6721_v45, %v6314_v5 }
 0x1f9   : > { %v6835_v6 = vpop.f32.mrf.mxu1 }
 0x1fa   : > { %v6841_v11 = vpop.f32.mrf.mxu0 }
 0x1fb   : > { %v6839_v40 = vpop.f32.mrf.mxu1  ;;  %7839 = vst [vmem:[#allocation9_spill] sm:$0xff] %v6841_v11  ;;  %2532 = vmatmul.mubr.f32.gmra.mxu1 %v1715_v56  ;;  %v1723_v11 = vmax.f32 %v1427_v27, 0.0  ;;  %v1433_v56 = vadd.f32 %v6699_v52, %v6324_v60 }
 0x1fc   : > { %2536 = vmatprep.mubr.f32.mxu1 %v1720_v47  ;;  %v2060_v18 = vpop.f32.mrf.mxu0  ;;  %v1728_v47 = vmax.f32 %v1435_v1, 0.0  ;;  %v1447_v1 = vadd.f32 %v6735_v37, %v6314_v5 }
 0x1fd   : > { %v6845_v54 = vpop.f32.mrf.mxu1 }
 0x1fe   : > { %v6851_v59 = vpop.f32.mrf.mxu0 }
 0x1ff   : > { %v6849_v22 = vpop.f32.mrf.mxu1  ;;  %7840 = vst [vmem:[#allocation8_spill] sm:$0xff] %v6851_v59  ;;  %2537 = vmatmul.mubr.f32.gmra.mxu1 %v1719_v23  ;;  %v1727_v59 = vmax.f32 %v1433_v56, 0.0  ;;  %v1439_v23 = vadd.f32 %v6713_v7, %v6324_v60 }
 0x200   : > { %2541 = vmatprep.mubr.f32.mxu1 %v1724_v57  ;;  %v2065_v43 = vpop.f32.mrf.mxu0  ;;  %v1732_v57 = vmax.f32 %v1441_v10, 0.0  ;;  %v1453_v10 = vadd.f32 %v6745_v29, %v6314_v5  ;;  %v6892_v29 = vld [vmem:[%s7788_s4] ss:$0 sm:$0xff] }
 0x201   : > { %v6855_v46 = vpop.f32.mrf.mxu1 }
 0x202   : > { %v6861_v8 = vpop.f32.mrf.mxu0 }
 0x203   : > { %v6859_v18 = vpop.f32.mrf.mxu1  ;;  %7841 = vst [vmem:[#allocation11_spill] sm:$0xff] %v6861_v8  ;;  %2542 = vmatmul.mubr.f32.gmra.mxu1 %v1723_v11  ;;  %v1731_v8 = vmax.f32 %v1439_v23, 0.0  ;;  %v1445_v11 = vadd.f32 %v6727_v15, %v6324_v60 }
 0x204   : > { %2546 = vmatprep.mubr.f32.mxu1 %v1728_v47  ;;  %v2070_v52 = vpop.f32.mrf.mxu0  ;;  %v1736_v47 = vmax.f32 %v1447_v1, 0.0  ;;  %v1459_v1 = vadd.f32 %v6755_v48, %v6314_v5  ;;  %v1939_v48 = vadd.f32 %v6892_v29, %v6544_v35 }
 0x205   : > { %v6865_v27 = vpop.f32.mrf.mxu1 }
 0x206   : > { %v6871_v45 = vpop.f32.mrf.mxu0 }
 0x207   : > { %v6869_v43 = vpop.f32.mrf.mxu1  ;;  %7842 = vst [vmem:[#allocation10_spill] sm:$0xff] %v6871_v45  ;;  %2547 = vmatmul.mubr.f32.gmra.mxu1 %v1727_v59  ;;  %v1735_v45 = vmax.f32 %v1445_v11, 0.0  ;;  %v1451_v59 = vadd.f32 %v6739_v63, %v6324_v60  ;;  %v1457_v63 = vadd.f32 %v6749_v51, %v6324_v60  ;;  %v1463_v51 = vadd.f32 %v6759_v17, %v6324_v60 }
 0x208   : > { %2551 = vmatprep.mubr.f32.mxu1 %v1732_v57  ;;  %v2075_v7 = vpop.f32.mrf.mxu0  ;;  %v1740_v57 = vmax.f32 %v1453_v10, 0.0  ;;  %v1469_v17 = vadd.f32 %v6769_v21, %v6324_v60  ;;  %v1475_v21 = vadd.f32 %v6779_v14, %v6324_v60  ;;  %v1481_v14 = vadd.f32 %v6789_v41, %v6324_v60 }
 0x209   : > { %v6875_v56 = vpop.f32.mrf.mxu1  ;;  %v1739_v11 = vmax.f32 %v1451_v59, 0.0  ;;  %v1743_v59 = vmax.f32 %v1457_v63, 0.0  ;;  %v1964_v41 = vadd.f32 %v6892_v29, %v6614_v26 }
 0x20a   : > { %v6881_v37 = vpop.f32.mrf.mxu0 }
 0x20b   : > { %v6879_v52 = vpop.f32.mrf.mxu1  ;;  %7843 = vst [vmem:[#allocation13_spill] sm:$0xff] %v6881_v37  ;;  %2552 = vmatmul.mubr.f32.gmra.mxu1 %v1731_v8  ;;  %v1465_v37 = vadd.f32 %v6765_v28, %v6314_v5 }
 0x20c   : > { %2556 = vmatprep.mubr.f32.mxu1 %v1736_v47  ;;  %v2080_v15 = vpop.f32.mrf.mxu0 }
 0x20d   : > { %v6885_v23 = vpop.f32.mrf.mxu1  ;;  %v1744_v15 = vmax.f32 %v1459_v1, 0.0  ;;  %v1748_v35 = vmax.f32 %v1465_v37, 0.0  ;;  %v1471_v1 = vadd.f32 %v6775_v50, %v6314_v5  ;;  %v1477_v50 = vadd.f32 %v6785_v13, %v6314_v5 }
 0x20e   : > { %v6896_v8 = vpop.f32.mrf.mxu0  ;;  %v1483_v13 = vadd.f32 %v6795_v31, %v6314_v5  ;;  %v1489_v31 = vadd.f32 %v6805_v20, %v6314_v5  ;;  %v1495_v20 = vadd.f32 %v6815_v16, %v6314_v5 }
 0x20f   : > { %v6894_v7 = vpop.f32.mrf.mxu1  ;;  %7844 = vst [vmem:[#allocation12_spill] sm:$0xff] %v6896_v8  ;;  %2557 = vmatmul.mubr.f32.gmra.mxu1 %v1735_v45  ;;  %v1752_v37 = vmax.f32 %v1471_v1, 0.0 }
 0x210   : > { %2561 = vmatprep.mubr.f32.mxu1 %v1740_v57  ;;  %v2085_v10 = vpop.f32.mrf.mxu0 }
 0x211   : > { %v6900_v47 = vpop.f32.mrf.mxu1  ;;  %v1944_v10 = vadd.f32 %v6892_v29, %v6558_v62  ;;  %v1949_v62 = vadd.f32 %v6892_v29, %v6572_v3  ;;  %v1954_v3 = vadd.f32 %v6892_v29, %v6586_v61  ;;  %v1959_v61 = vadd.f32 %v6892_v29, %v6600_v19 }
 0x212   : > { %v6906_v38 = vpop.f32.mrf.mxu0  ;;  %v1487_v19 = vadd.f32 %v6799_v24, %v6324_v60 }
 0x213   : > { %7845 = vst [vmem:[#allocation15_spill] sm:$0xff] %v6906_v38  ;;  %v2323_v12 = vpop.f32.mrf.mxu1  ;;  %2562 = vmatmul.mubr.f32.gmra.mxu1 %v1739_v11  ;;  %v1747_v11 = vmax.f32 %v1463_v51, 0.0 }
 0x214   : > { %v2324_v45 = vadd.f32 %v2323_v12, %v1939_v48  ;;  %2566 = vmatprep.mubr.f32.mxu1 %v1744_v15  ;;  %v2090_v57 = vpop.f32.mrf.mxu0  ;;  %v1763_v24 = vmax.f32 %v1487_v19, 0.0 }
 0x215   : > { %v2325_v8 = vpop.f32.mrf.mxu1 }
 0x216   : > { %v4593_v28 = vmul.f32 -1.442695, %v2324_v45  ;;  %v6914_v32 = vpop.f32.mrf.mxu0 }
 0x217   : > { %v2328_v38 = vpop.f32.mrf.mxu1  ;;  %2567 = vmatmul.mubr.f32.gmra.mxu1 %v1743_v59  ;;  %v1751_v59 = vmax.f32 %v1469_v17, 0.0 }
 0x218   : > { %4903 = vpow2.f32 %v4593_v28  ;;  %v2329_v12 = vadd.f32 %v2328_v38, %v1944_v10  ;;  %2571 = vmatprep.mubr.f32.mxu1 %v1748_v35  ;;  %v2095_v8 = vpop.f32.mrf.mxu0  ;;  %v1756_v10 = vmax.f32 %v1477_v50, 0.0 }
 0x219   : > { %v2330_v63 = vpop.f32.mrf.mxu1 }
 0x21a   : > { %v4594_v48 = vmul.f32 -1.442695, %v2329_v12  ;;  %v6922_v15 = vpop.f32.mrf.mxu0  ;;  %v1760_v63 = vmax.f32 %v1483_v13, 0.0 }
 0x21b   : > { %v2333_v45 = vpop.f32.mrf.mxu1  ;;  %2572 = vmatmul.mubr.f32.gmra.mxu1 %v1747_v11  ;;  %v1755_v11 = vmax.f32 %v1475_v21, 0.0 }
 0x21c   : > { %4905 = vpow2.f32 %v4594_v48  ;;  %v2334_v38 = vadd.f32 %v2333_v45, %v1949_v62  ;;  %2576 = vmatprep.mubr.f32.mxu1 %v1752_v37  ;;  %v2100_v51 = vpop.f32.mrf.mxu0 }
 0x21d   : > { %v2335_v57 = vpop.f32.mrf.mxu1  ;;  %v1764_v51 = vmax.f32 %v1489_v31, 0.0 }
 0x21e   : > { %v4595_v35 = vmul.f32 -1.442695, %v2334_v38  ;;  %v6930_v1 = vpop.f32.mrf.mxu0  ;;  %v1759_v38 = vmax.f32 %v1481_v14, 0.0  ;;  %v1768_v14 = vmax.f32 %v1495_v20, 0.0 }
 0x21f   : > { %v2338_v28 = vpop.f32.mrf.mxu1  ;;  %2577 = vmatmul.mubr.f32.gmra.mxu1 %v1751_v59 }
 0x220   : > { %4907 = vpow2.f32 %v4595_v35  ;;  %v2339_v12 = vadd.f32 %v2338_v28, %v1954_v3  ;;  %2581 = vmatprep.mubr.f32.mxu1 %v1756_v10  ;;  %v2105_v17 = vpop.f32.mrf.mxu0  ;;  %v1969_v28 = vadd.f32 %v6892_v29, %v6628_v34 }
 0x221   : > { %v2340_v8 = vpop.f32.mrf.mxu1  ;;  %v1501_v17 = vadd.f32 %v6825_v55, %v6314_v5 }
 0x222   : > { %v4596_v62 = vmul.f32 -1.442695, %v2339_v12  ;;  %v6938_v37 = vpop.f32.mrf.mxu0  ;;  %v1493_v12 = vadd.f32 %v6809_v30, %v6324_v60  ;;  %v1974_v30 = vadd.f32 %v6892_v29, %v6642_v4 }
 0x223   : > { %v2343_v50 = vpop.f32.mrf.mxu1  ;;  %2582 = vmatmul.mubr.f32.gmra.mxu1 %v1755_v11 }
 0x224   : > { %4909 = vpow2.f32 %v4596_v62  ;;  %v2344_v48 = vadd.f32 %v2343_v50, %v1959_v61  ;;  %2586 = vmatprep.mubr.f32.mxu1 %v1760_v63  ;;  %v2110_v59 = vpop.f32.mrf.mxu0  ;;  %v1767_v50 = vmax.f32 %v1493_v12, 0.0 }
 0x225   : > { %v4904_v45 = vpop.eup %4903  ;;  %v2345_v21 = vpop.f32.mrf.mxu1 }
 0x226   : > { %v2834_v57 = vadd.f32 1.0, %v4904_v45  ;;  %v4597_v3 = vmul.f32 -1.442695, %v2344_v48  ;;  %v6946_v10 = vpop.f32.mrf.mxu0  ;;  %v1499_v48 = vadd.f32 %v6819_v58, %v6324_v60  ;;  %v1979_v58 = vadd.f32 %v6892_v29, %v6656_v0 }
 0x227   : > { %v2348_v13 = vpop.f32.mrf.mxu1  ;;  %2587 = vmatmul.mubr.f32.gmra.mxu1 %v1759_v38  ;;  %v1507_v38 = vadd.f32 %v6835_v6, %v6314_v5 }
 0x228   : > { %4911 = vrcp.f32 %v2834_v57  ;;  %v2349_v35 = vadd.f32 %v2348_v13, %v1964_v41  ;;  %2591 = vmatprep.mubr.f32.mxu1 %v1764_v51  ;;  %v2115_v11 = vpop.f32.mrf.mxu0  ;;  %v1772_v41 = vmax.f32 %v1501_v17, 0.0  ;;  %v1771_v57 = vmax.f32 %v1499_v48, 0.0 }
 0x229   : > { %v4906_v26 = vpop.eup %4905  ;;  %4913 = vpow2.f32 %v4597_v3  ;;  %v2350_v16 = vpop.f32.mrf.mxu1  ;;  %v1505_v3 = vadd.f32 %v6829_v53, %v6324_v60 }
 0x22a   : > { %v2835_v8 = vadd.f32 1.0, %v4906_v26  ;;  %v4598_v61 = vmul.f32 -1.442695, %v2349_v35  ;;  %v6954_v63 = vpop.f32.mrf.mxu0  ;;  %v1776_v35 = vmax.f32 %v1507_v38, 0.0  ;;  %v1513_v26 = vadd.f32 %v6845_v54, %v6314_v5 }
 0x22b   : > { %v2353_v31 = vpop.f32.mrf.mxu1  ;;  %2592 = vmatmul.mubr.f32.gmra.mxu1 %v1763_v24  ;;  %v1984_v16 = vadd.f32 %v6892_v29, %v6673_v36  ;;  %v1775_v54 = vmax.f32 %v1505_v3, 0.0 }
 0x22c   : > { %4915 = vrcp.f32 %v2835_v8  ;;  %v2354_v62 = vadd.f32 %v2353_v31, %v1969_v28  ;;  %2596 = vmatprep.mubr.f32.mxu1 %v1768_v14  ;;  %v2120_v45 = vpop.f32.mrf.mxu0  ;;  %v1511_v14 = vadd.f32 %v6839_v40, %v6324_v60  ;;  %v1780_v31 = vmax.f32 %v1513_v26, 0.0 }
 0x22d   : > { %v4908_v34 = vpop.eup %4907  ;;  %4917 = vpow2.f32 %v4598_v61  ;;  %v2355_v55 = vpop.f32.mrf.mxu1  ;;  %v5175_v45 = vld [vmem:[%s5335_s25] sm:$0xff] }
 0x22e   : > { %v2836_v19 = vadd.f32 1.0, %v4908_v34  ;;  %v4599_v59 = vmul.f32 -1.442695, %v2354_v62  ;;  %v6962_v21 = vpop.f32.mrf.mxu0  ;;  %v1519_v62 = vadd.f32 %v6855_v46, %v6314_v5  ;;  %v1989_v46 = vadd.f32 %v6892_v29, %v6687_v2 }
 0x22f   : > { %v2358_v51 = vpop.f32.mrf.mxu1  ;;  %2597 = vmatmul.mubr.f32.gmra.mxu1 %v1767_v50  ;;  %v1779_v38 = vmax.f32 %v1511_v14, 0.0  ;;  %v1531_v14 = vadd.f32 %v6875_v56, %v6314_v5  ;;  %v1999_v56 = vadd.f32 %v6892_v29, %v6715_v39 }
 0x230   : > { %4919 = vrcp.f32 %v2836_v19  ;;  %v2359_v4 = vadd.f32 %v2358_v51, %v1974_v30  ;;  %2601 = vmatprep.mubr.f32.mxu1 %v1772_v41  ;;  %v2125_v6 = vpop.f32.mrf.mxu0  ;;  %v1517_v19 = vadd.f32 %v6849_v22, %v6324_v60 }
 0x231   : > { %v4910_v20 = vpop.eup %4909  ;;  %4921 = vpow2.f32 %v4599_v59  ;;  %v2360_v13 = vpop.f32.mrf.mxu1 }
 0x232   : > { %v2837_v28 = vadd.f32 1.0, %v4910_v20  ;;  %v4600_v24 = vmul.f32 -1.442695, %v2359_v4  ;;  %v6976_v12 = vpop.f32.mrf.mxu0  ;;  %v1784_v20 = vmax.f32 %v1519_v62, 0.0  ;;  %v5177_v62 = vld [vmem:[%s5335_s25 + $0x10] sm:$0xff] }
 0x233   : > { %v2363_v0 = vpop.f32.mrf.mxu1  ;;  %2602 = vmatmul.mubr.f32.gmra.mxu1 %v1771_v57 }
 0x234   : > { %4923 = vrcp.f32 %v2837_v28  ;;  %v2364_v53 = vadd.f32 %v2363_v0, %v1979_v58  ;;  %2606 = vmatprep.mubr.f32.mxu1 %v1776_v35  ;;  %v2130_v17 = vpop.f32.mrf.mxu0  ;;  %v1525_v58 = vadd.f32 %v6865_v27, %v6314_v5  ;;  %v5176_v35 = vld [vmem:[%s5335_s25 + $0x8] sm:$0xff]  ;;  %v1994_v27 = vadd.f32 %v6892_v29, %v6701_v44 }
 0x235   : > { %v4912_v11 = vpop.eup %4911  ;;  %4925 = vpow2.f32 %v4600_v24  ;;  %v2365_v8 = vpop.f32.mrf.mxu1  ;;  %v1783_v24 = vmax.f32 %v1517_v19, 0.0  ;;  %v1523_v0 = vadd.f32 %v6859_v18, %v6324_v60 }
 0x236   : > { %v4914_v61 = vpop.eup %4913  ;;  %3868 = vst.msk [vmem:[%s6974_s15] sm:$0xff] %vm454_vm0, %v4912_v11  ;;  %v4601_v34 = vmul.f32 -1.442695, %v2364_v53  ;;  %vm3026_vm1 = vcmp.lt.f32.partialorder %v4912_v11, 0.1  ;;  %v6986_v50 = vpop.f32.mrf.mxu0 }
 0x237   : > { %v2838_v30 = vadd.f32 1.0, %v4914_v61  ;;  %v2368_v36 = vpop.f32.mrf.mxu1  ;;  %2607 = vmatmul.mubr.f32.gmra.mxu1 %v1775_v54  ;;  %v3090_v48 = vsel %vm3026_vm1, 0.0, %v4912_v11  ;;  %v1788_v54 = vmax.f32 %v1525_v58, 0.0 }
 0x238   : > { %4927 = vpow2.f32 %v4601_v34  ;;  %v2369_v40 = vadd.f32 %v2368_v36, %v1984_v16  ;;  %2611 = vmatprep.mubr.f32.mxu1 %v1780_v31  ;;  %v3154_v55 = vmul.f32 %v5175_v45, %v3090_v48  ;;  %v2135_v59 = vpop.f32.mrf.mxu0  ;;  %v1787_v36 = vmax.f32 %v1523_v0, 0.0 }
 0x239   : > { %v4916_v41 = vpop.eup %4915  ;;  %4929 = vrcp.f32 %v2838_v30  ;;  %v2370_v51 = vpop.f32.mrf.mxu1  ;;  %v1529_v48 = vadd.f32 %v6869_v43, %v6324_v60 }
 0x23a   : > { %v4918_v4 = vpop.eup %4917  ;;  %3869 = vst.msk [vmem:[%s6974_s15 + $0x8] sm:$0xff] %vm454_vm0, %v4916_v41  ;;  %v4602_v57 = vmul.f32 -1.442695, %v2369_v40  ;;  %4794 = vmatprep.mubr.msk.f32.mxu0 %vm454_vm0, %v3154_v55  ;;  %vm3027_vm2 = vcmp.lt.f32.partialorder %v4916_v41, 0.1  ;;  %v6998_v3 = vpop.f32.mrf.mxu0 }
 0x23b   : > { %v2839_v2 = vadd.f32 1.0, %v4918_v4  ;;  %v2373_v6 = vpop.f32.mrf.mxu1  ;;  %2612 = vmatmul.mubr.f32.gmra.mxu1 %v1779_v38  ;;  %v3091_v22 = vsel %vm3027_vm2, 0.0, %v4916_v41  ;;  %v1792_v41 = vmax.f32 %v1531_v14, 0.0  ;;  %v5178_v4 = vld [vmem:[%s5335_s25 + $0x18] sm:$0xff] }
 0x23c   : > { %4931 = vpow2.f32 %v4602_v57  ;;  %v2374_v13 = vadd.f32 %v2373_v6, %v1989_v46  ;;  %2616 = vmatprep.mubr.f32.mxu1 %v1784_v20  ;;  %v3155_v26 = vmul.f32 %v5176_v35, %v3091_v22  ;;  %v2140_v53 = vpop.f32.mrf.mxu0  ;;  %v1537_v46 = vadd.f32 %v6885_v23, %v6314_v5 }
 0x23d   : > { %v4920_v28 = vpop.eup %4919  ;;  %4933 = vrcp.f32 %v2839_v2  ;;  %v2375_v11 = vpop.f32.mrf.mxu1  ;;  %v2004_v23 = vadd.f32 %v6892_v29, %v6729_v9  ;;  %v1791_v57 = vmax.f32 %v1529_v48, 0.0  ;;  %v1535_v2 = vadd.f32 %v6879_v52, %v6324_v60  ;;  %v5180_v48 = vld [vmem:[%s5335_s25 + $0x28] sm:$0xff] }
 0x23e   : > { %v4922_v16 = vpop.eup %4921  ;;  %3870 = vst.msk [vmem:[%s6974_s15 + $0x10] sm:$0xff] %vm454_vm0, %v4920_v28  ;;  %v4603_v17 = vmul.f32 -1.442695, %v2374_v13  ;;  %4795 = vmatmul.mubr.msk.f32.vlgmr.msra.gmra.mxu0 %vm454_vm0, %v3155_v26  ;;  %vm3028_vm3 = vcmp.lt.f32.partialorder %v4920_v28, 0.1  ;;  %v7010_v8 = vpop.f32.mrf.mxu0  ;;  %v1796_v35 = vmax.f32 %v1537_v46, 0.0  ;;  %v1543_v26 = vadd.f32 %v6900_v47, %v6314_v5 }
 0x23f   : > { %v2840_v44 = vadd.f32 1.0, %v4922_v16  ;;  %v2378_v61 = vpop.f32.mrf.mxu1  ;;  %2617 = vmatmul.mubr.f32.gmra.mxu1 %v1783_v24  ;;  %v3092_v18 = vsel %vm3028_vm3, 0.0, %v4920_v28  ;;  %v1795_v11 = vmax.f32 %v1535_v2, 0.0  ;;  %v1541_v5 = vadd.f32 %v6894_v7, %v6324_v60 }
 0x240   : > { %4935 = vpow2.f32 %v4603_v17  ;;  %v2379_v31 = vadd.f32 %v2378_v61, %v1994_v27  ;;  %2621 = vmatprep.mubr.f32.mxu1 %v1788_v54  ;;  %v3156_v34 = vmul.f32 %v5177_v62, %v3092_v18  ;;  %v2145_v40 = vpop.f32.mrf.mxu0  ;;  %v5179_v54 = vld [vmem:[%s5335_s25 + $0x20] sm:$0xff]  ;;  %v1800_v61 = vmax.f32 %v1543_v26, 0.0 }
 0x241   : > { %v4924_v30 = vpop.eup %4923  ;;  %4937 = vrcp.f32 %v2840_v44  ;;  %v2380_v45 = vpop.f32.mrf.mxu1  ;;  %v2009_v44 = vadd.f32 %v6892_v29, %v6741_v42  ;;  %v1799_v42 = vmax.f32 %v1541_v5, 0.0 }
 0x242   : > { %v4926_v55 = vpop.eup %4925  ;;  %3871 = vst.msk [vmem:[%s6974_s15 + $0x18] sm:$0xff] %vm454_vm0, %v4924_v30  ;;  %v4604_v38 = vmul.f32 -1.442695, %v2379_v31  ;;  %4797 = vmatprep.mubr.msk.f32.mxu0 %vm454_vm0, %v3156_v34  ;;  %vm3029_vm4 = vcmp.lt.f32.partialorder %v4924_v30, 0.1  ;;  %v7022_v19 = vpop.f32.mrf.mxu0 }
 0x243   : > { %v2841_v39 = vadd.f32 1.0, %v4926_v55  ;;  %v2383_v59 = vpop.f32.mrf.mxu1  ;;  %2622 = vmatmul.mubr.f32.gmra.mxu1 %v1787_v36  ;;  %v3093_v43 = vsel %vm3029_vm4, 0.0, %v4924_v30  ;;  %v2014_v55 = vadd.f32 %v6892_v29, %v6751_v25 }
 0x244   : > { %4939 = vpow2.f32 %v4604_v38  ;;  %v2384_v51 = vadd.f32 %v2383_v59, %v1999_v56  ;;  %2626 = vmatprep.mubr.f32.mxu1 %v1792_v41  ;;  %v3157_v20 = vmul.f32 %v5178_v4, %v3093_v43  ;;  %v2150_v6 = vpop.f32.mrf.mxu0 }
 0x245   : > { %v4928_v58 = vpop.eup %4927  ;;  %4941 = vrcp.f32 %v2841_v39  ;;  %v2385_v22 = vpop.f32.mrf.mxu1 }
 0x246   : > { %v4930_v13 = vpop.eup %4929  ;;  %v2842_v28 = vadd.f32 1.0, %v4928_v58  ;;  %v4605_v27 = vmul.f32 -1.442695, %v2384_v51  ;;  %4798 = vmatmul.mubr.msk.f32.gmra.mxu0 %vm454_vm0, %v3157_v20  ;;  %v7034_v9 = vpop.f32.mrf.mxu0  ;;  %v5181_v20 = vld [vmem:[%s5335_s25 + $0x30] sm:$0xff] }
 0x247   : > { %3872 = vst.msk [vmem:[%s6974_s15 + $0x20] sm:$0xff] %vm454_vm0, %v4930_v13  ;;  %v2388_v24 = vpop.f32.mrf.mxu1  ;;  %2627 = vmatmul.mubr.f32.gmra.mxu1 %v1791_v57  ;;  %vm3030_vm5 = vcmp.lt.f32.partialorder %v4930_v13, 0.1  ;;  %v2019_v57 = vadd.f32 %v6892_v29, %v6761_v33  ;;  %v5182_v33 = vld [vmem:[%s5335_s25 + $0x38] sm:$0xff] }
 0x248   : > { %4943 = vrcp.f32 %v2842_v28  ;;  %v2389_v52 = vadd.f32 %v2388_v24, %v2004_v23  ;;  %2631 = vmatprep.mubr.f32.mxu1 %v1796_v35  ;;  %v3094_v0 = vsel %vm3030_vm5, 0.0, %v4930_v13  ;;  %v2155_v47 = vpop.f32.mrf.mxu0 }
 0x249   : > { %v4932_v53 = vpop.eup %4931  ;;  %4945 = vpow2.f32 %v4605_v27  ;;  %v2390_v16 = vpop.f32.mrf.mxu1  ;;  %v3158_v14 = vmul.f32 %v5179_v54, %v3094_v0 }
 0x24a   : > { %v4934_v17 = vpop.eup %4933  ;;  %v2843_v18 = vadd.f32 1.0, %v4932_v53  ;;  %v4606_v31 = vmul.f32 -1.442695, %v2389_v52  ;;  %v7044_v62 = vpop.f32.mrf.mxu0  ;;  %v2024_v53 = vadd.f32 %v6892_v29, %v6771_v49 }
 0x24b   : > { %3873 = vst.msk [vmem:[%s6974_s15 + $0x28] sm:$0xff] %vm454_vm0, %v4934_v17  ;;  %4800 = vmatprep.mubr.msk.f32.mxu0 %vm454_vm0, %v3158_v14  ;;  %v2393_v60 = vpop.f32.mrf.mxu1  ;;  %2632 = vmatmul.mubr.f32.gmra.mxu1 %v1795_v11  ;;  %vm3031_vm6 = vcmp.lt.f32.partialorder %v4934_v17, 0.1 }
 0x24c   : > { %4947 = vrcp.f32 %v2843_v18  ;;  %v2394_v7 = vadd.f32 %v2393_v60, %v2009_v44  ;;  %2636 = vmatprep.mubr.f32.mxu1 %v1800_v61  ;;  %v3095_v34 = vsel %vm3031_vm6, 0.0, %v4934_v17  ;;  %v2160_v56 = vpop.f32.mrf.mxu0  ;;  %v5183_v17 = vld [vmem:[%s5335_s25 + $0x40] sm:$0xff]  ;;  %v7846_v60 = vld [vmem:[#allocation3_spill] sm:$0xff] }
 0x24d   : > { %v4936_v30 = vpop.eup %4935  ;;  %4949 = vpow2.f32 %v4606_v31  ;;  %v2395_v36 = vpop.f32.mrf.mxu1  ;;  %v3159_v40 = vmul.f32 %v5180_v48, %v3095_v34 }
 0x24e   : > { %v4938_v45 = vpop.eup %4937  ;;  %v2844_v41 = vadd.f32 1.0, %v4936_v30  ;;  %v4607_v46 = vmul.f32 -1.442695, %v2394_v7  ;;  %v7052_v38 = vpop.f32.mrf.mxu0  ;;  %v2029_v7 = vadd.f32 %v6892_v29, %v7846_v60 }
 0x24f   : > { %3874 = vst.msk [vmem:[%s6974_s15 + $0x30] sm:$0xff] %vm454_vm0, %v4938_v45  ;;  %4801 = vmatmul.mubr.msk.f32.gmra.mxu0 %vm454_vm0, %v3159_v40  ;;  %v2398_v39 = vpop.f32.mrf.mxu1  ;;  %2637 = vmatmul.mubr.f32.gmra.mxu1 %v1799_v42  ;;  %vm3032_vm7 = vcmp.lt.f32.partialorder %v4938_v45, 0.1  ;;  %v5184_v40 = vld [vmem:[%s5335_s25 + $0x48] sm:$0xff] }
 0x250   : > { %4951 = vrcp.f32 %v2844_v41  ;;  %v2399_v59 = vadd.f32 %v2398_v39, %v2014_v55  ;;  %v3096_v43 = vsel %vm3032_vm7, 0.0, %v4938_v45  ;;  %v2165_v4 = vpop.f32.mrf.mxu0 }
 0x251   : > { %v4940_v51 = vpop.eup %4939  ;;  %4953 = vpow2.f32 %v4607_v46  ;;  %v2400_v25 = vpop.f32.mrf.mxu1  ;;  %v3160_v58 = vmul.f32 %v5181_v20, %v3096_v43 }
 0x252   : > { %v4942_v23 = vpop.eup %4941  ;;  %v2845_v2 = vadd.f32 1.0, %v4940_v51  ;;  %v4608_v6 = vmul.f32 -1.442695, %v2399_v59  ;;  %v7060_v22 = vpop.f32.mrf.mxu0  ;;  %v7847_v59 = vld [vmem:[#allocation2_spill] sm:$0xff] }
 0x253   : > { %3875 = vst.msk [vmem:[%s6974_s15 + $0x38] sm:$0xff] %vm454_vm0, %v4942_v23  ;;  %4803 = vmatprep.mubr.msk.f32.mxu0 %vm454_vm0, %v3160_v58  ;;  %v2403_v13 = vpop.f32.mrf.mxu1  ;;  %vm3033_vm8 = vcmp.lt.f32.partialorder %v4942_v23, 0.1  ;;  %v2034_v43 = vadd.f32 %v6892_v29, %v7847_v59 }
 0x254   : > { %4955 = vrcp.f32 %v2845_v2  ;;  %v2404_v35 = vadd.f32 %v2403_v13, %v2019_v57  ;;  %v3097_v26 = vsel %vm3033_vm8, 0.0, %v4942_v23  ;;  %v2170_v27 = vpop.f32.mrf.mxu0  ;;  %v5185_v57 = vld [vmem:[%s5335_s25 + $0x50] sm:$0xff] }
 0x255   : > { %v4944_v28 = vpop.eup %4943  ;;  %4957 = vpow2.f32 %v4608_v6  ;;  %v2405_v24 = vpop.f32.mrf.mxu1  ;;  %v3161_v52 = vmul.f32 %v5182_v33, %v3097_v26 }
 0x256   : > { %v4946_v0 = vpop.eup %4945  ;;  %3876 = vst.msk [vmem:[%s6974_s15 + $0x40] sm:$0xff] %vm454_vm0, %v4944_v28  ;;  %v4609_v11 = vmul.f32 -1.442695, %v2404_v35  ;;  %vm3034_vm9 = vcmp.lt.f32.partialorder %v4944_v28, 0.1  ;;  %v7068_v47 = vpop.f32.mrf.mxu0 }
 0x257   : > { %v2846_v5 = vadd.f32 1.0, %v4946_v0  ;;  %4804 = vmatmul.mubr.msk.f32.gmra.mxu0 %vm454_vm0, %v3161_v52  ;;  %v2408_v16 = vpop.f32.mrf.mxu1  ;;  %v3098_v54 = vsel %vm3034_vm9, 0.0, %v4944_v28  ;;  %v7848_v28 = vld [vmem:[#allocation5_spill] sm:$0xff] }
 0x258   : > { %4959 = vpow2.f32 %v4609_v11  ;;  %v2409_v14 = vadd.f32 %v2408_v16, %v2024_v53  ;;  %v3162_v44 = vmul.f32 %v5183_v17, %v3098_v54  ;;  %v2175_v49 = vpop.f32.mrf.mxu0  ;;  %v2039_v27 = vadd.f32 %v6892_v29, %v7848_v28 }
 0x259   : > { %v4948_v61 = vpop.eup %4947  ;;  %4961 = vrcp.f32 %v2846_v5  ;;  %v2410_v18 = vpop.f32.mrf.mxu1  ;;  %v5186_v5 = vld [vmem:[%s5335_s25 + $0x58] sm:$0xff] }
 0x25a   : > { %v4950_v31 = vpop.eup %4949  ;;  %3877 = vst.msk [vmem:[%s6974_s15 + $0x48] sm:$0xff] %vm454_vm0, %v4948_v61  ;;  %v4610_v34 = vmul.f32 -1.442695, %v2409_v14  ;;  %4806 = vmatprep.mubr.msk.f32.mxu0 %vm454_vm0, %v3162_v44  ;;  %vm3035_vm10 = vcmp.lt.f32.partialorder %v4948_v61, 0.1  ;;  %v7076_v42 = vpop.f32.mrf.mxu0 }
 0x25b   : > { %v2847_v30 = vadd.f32 1.0, %v4950_v31  ;;  %v2413_v56 = vpop.f32.mrf.mxu1  ;;  %v3099_v36 = vsel %vm3035_vm10, 0.0, %v4948_v61  ;;  %v7849_v61 = vld [vmem:[#allocation4_spill] sm:$0xff] }
 0x25c   : > { %4963 = vpow2.f32 %v4610_v34  ;;  %v2414_v48 = vadd.f32 %v2413_v56, %v2029_v7  ;;  %v3163_v45 = vmul.f32 %v5184_v40, %v3099_v36  ;;  %v2180_v41 = vpop.f32.mrf.mxu0  ;;  %v2044_v49 = vadd.f32 %v6892_v29, %v7849_v61  ;;  %v5187_v40 = vld [vmem:[%s5335_s25 + $0x60] sm:$0xff] }
 0x25d   : > { %v4952_v55 = vpop.eup %4951  ;;  %4965 = vrcp.f32 %v2847_v30  ;;  %v2415_v46 = vpop.f32.mrf.mxu1  ;;  %v7850_v41 = vld [vmem:[#allocation7_spill] sm:$0xff] }
 0x25e   : > { %v4954_v39 = vpop.eup %4953  ;;  %3878 = vst.msk [vmem:[%s6974_s15 + $0x50] sm:$0xff] %vm454_vm0, %v4952_v55  ;;  %v4611_v51 = vmul.f32 -1.442695, %v2414_v48  ;;  %4807 = vmatmul.mubr.msk.f32.gmra.mxu0 %vm454_vm0, %v3163_v45  ;;  %vm3036_vm11 = vcmp.lt.f32.partialorder %v4952_v55, 0.1  ;;  %v7084_v25 = vpop.f32.mrf.mxu0  ;;  %v2049_v46 = vadd.f32 %v6892_v29, %v7850_v41  ;;  %v7853_v41 = vld [vmem:[#allocation8_spill] sm:$0xff] }
 0x25f   : > { %v2848_v4 = vadd.f32 1.0, %v4954_v39  ;;  %v2418_v20 = vpop.f32.mrf.mxu1  ;;  %v3100_v58 = vsel %vm3036_vm11, 0.0, %v4952_v55 }
 0x260   : > { %4967 = vpow2.f32 %v4611_v51  ;;  %v2419_v23 = vadd.f32 %v2418_v20, %v2034_v43  ;;  %v3164_v2 = vmul.f32 %v5185_v57, %v3100_v58  ;;  %v2185_v13 = vpop.f32.mrf.mxu0 }
 0x261   : > { %v4956_v6 = vpop.eup %4955  ;;  %4969 = vrcp.f32 %v2848_v4  ;;  %v2420_v35 = vpop.f32.mrf.mxu1 }
 0x262   : > { %v4958_v26 = vpop.eup %4957  ;;  %3879 = vst.msk [vmem:[%s6974_s15 + $0x58] sm:$0xff] %vm454_vm0, %v4956_v6  ;;  %v4612_v24 = vmul.f32 -1.442695, %v2419_v23  ;;  %4809 = vmatprep.mubr.msk.f32.mxu0 %vm454_vm0, %v3164_v2  ;;  %vm3037_vm12 = vcmp.lt.f32.partialorder %v4956_v6, 0.1  ;;  %v7092_v52 = vpop.f32.mrf.mxu0  ;;  %v5188_v2 = vld [vmem:[%s5335_s25 + $0x68] sm:$0xff] }
 0x263   : > { %v2849_v33 = vadd.f32 1.0, %v4958_v26  ;;  %v2423_v0 = vpop.f32.mrf.mxu1  ;;  %v3101_v53 = vsel %vm3037_vm12, 0.0, %v4956_v6  ;;  %v7851_v35 = vld [vmem:[#allocation6_spill] sm:$0xff] }
 0x264   : > { %4971 = vpow2.f32 %v4612_v24  ;;  %v2424_v11 = vadd.f32 %v2423_v0, %v2039_v27  ;;  %v3165_v16 = vmul.f32 %v5186_v5, %v3101_v53  ;;  %v2190_v14 = vpop.f32.mrf.mxu0  ;;  %v2054_v26 = vadd.f32 %v6892_v29, %v7851_v35 }
 0x265   : > { %v4960_v54 = vpop.eup %4959  ;;  %4973 = vrcp.f32 %v2849_v33  ;;  %v2425_v17 = vpop.f32.mrf.mxu1 }
 0x266   : > { %v4962_v44 = vpop.eup %4961  ;;  %v2850_v18 = vadd.f32 1.0, %v4960_v54  ;;  %v4613_v31 = vmul.f32 -1.442695, %v2424_v11  ;;  %4810 = vmatmul.mubr.msk.f32.gmra.mxu0 %vm454_vm0, %v3165_v16  ;;  %v7100_v60 = vpop.f32.mrf.mxu0  ;;  %v5189_v54 = vld [vmem:[%s5335_s25 + $0x70] sm:$0xff] }
 0x267   : > { %3880 = vst.msk [vmem:[%s6974_s15 + $0x60] sm:$0xff] %vm454_vm0, %v4962_v44  ;;  %v2428_v7 = vpop.f32.mrf.mxu1  ;;  %vm3038_vm13 = vcmp.lt.f32.partialorder %v4962_v44, 0.1 }
 0x268   : > { %4975 = vrcp.f32 %v2850_v18  ;;  %v2429_v34 = vadd.f32 %v2428_v7, %v2044_v49  ;;  %v3102_v30 = vsel %vm3038_vm13, 0.0, %v4962_v44  ;;  %v2195_v36 = vpop.f32.mrf.mxu0  ;;  %v7852_v44 = vld [vmem:[#allocation9_spill] sm:$0xff] }
 0x269   : > { %v4964_v56 = vpop.eup %4963  ;;  %4977 = vpow2.f32 %v4613_v31  ;;  %v2430_v48 = vpop.f32.mrf.mxu1  ;;  %v3166_v45 = vmul.f32 %v5187_v40, %v3102_v30  ;;  %v2059_v61 = vadd.f32 %v6892_v29, %v7852_v44  ;;  %v5190_v40 = vld [vmem:[%s5335_s25 + $0x78] sm:$0xff] }
 0x26a   : > { %v4966_v55 = vpop.eup %4965  ;;  %v2851_v39 = vadd.f32 1.0, %v4964_v56  ;;  %v4614_v59 = vmul.f32 -1.442695, %v2429_v34  ;;  %v7108_v43 = vpop.f32.mrf.mxu0 }
 0x26b   : > { %3881 = vst.msk [vmem:[%s6974_s15 + $0x68] sm:$0xff] %vm454_vm0, %v4966_v55  ;;  %4812 = vmatprep.mubr.msk.f32.mxu0 %vm454_vm0, %v3166_v45  ;;  %v2433_v51 = vpop.f32.mrf.mxu1  ;;  %vm3039_vm14 = vcmp.lt.f32.partialorder %v4966_v55, 0.1 }
 0x26c   : > { %4979 = vrcp.f32 %v2851_v39  ;;  %v2434_v4 = vadd.f32 %v2433_v51, %v2049_v46  ;;  %v3103_v20 = vsel %vm3039_vm14, 0.0, %v4966_v55  ;;  %v2200_v23 = vpop.f32.mrf.mxu0  ;;  %v2064_v46 = vadd.f32 %v6892_v29, %v7853_v41 }
 0x26d   : > { %v4968_v58 = vpop.eup %4967  ;;  %4981 = vpow2.f32 %v4614_v59  ;;  %v2435_v57 = vpop.f32.mrf.mxu1  ;;  %v3167_v6 = vmul.f32 %v5188_v2, %v3103_v20  ;;  %v5191_v23 = vld [vmem:[%s5335_s25 + $0x80] sm:$0xff] }
 0x26e   : > { %v4970_v13 = vpop.eup %4969  ;;  %v2852_v28 = vadd.f32 1.0, %v4968_v58  ;;  %v4615_v27 = vmul.f32 -1.442695, %v2434_v4  ;;  %v7116_v24 = vpop.f32.mrf.mxu0 }
 0x26f   : > { %3882 = vst.msk [vmem:[%s6974_s15 + $0x70] sm:$0xff] %vm454_vm0, %v4970_v13  ;;  %4813 = vmatmul.mubr.msk.f32.gmra.mxu0 %vm454_vm0, %v3167_v6  ;;  %v2438_v33 = vpop.f32.mrf.mxu1  ;;  %vm3040_vm15 = vcmp.lt.f32.partialorder %v4970_v13, 0.1 }
 0x270   : > { %4983 = vrcp.f32 %v2852_v28  ;;  %v2439_v0 = vadd.f32 %v2438_v33, %v2054_v26  ;;  %v3104_v53 = vsel %vm3040_vm15, 0.0, %v4970_v13  ;;  %v2205_v5 = vpop.f32.mrf.mxu0  ;;  %v7854_v26 = vld [vmem:[#allocation11_spill] sm:$0xff] }
 0x271   : > { %v4972_v11 = vpop.eup %4971  ;;  %4985 = vpow2.f32 %v4615_v27  ;;  %v2440_v16 = vpop.f32.mrf.mxu1  ;;  %v3168_v14 = vmul.f32 %v5189_v54, %v3104_v53  ;;  %v2069_v28 = vadd.f32 %v6892_v29, %v7854_v26 }
 0x272   : > { %v4974_v17 = vpop.eup %4973  ;;  %v2853_v49 = vadd.f32 1.0, %v4972_v11  ;;  %v4616_v18 = vmul.f32 -1.442695, %v2439_v0  ;;  %v7124_v31 = vpop.f32.mrf.mxu0  ;;  %v5192_v16 = vld [vmem:[%s5335_s25 + $0x88] sm:$0xff] }
 0x273   : > { %3883 = vst.msk [vmem:[%s6974_s15 + $0x78] sm:$0xff] %vm454_vm0, %v4974_v17  ;;  %4815 = vmatprep.mubr.msk.f32.mxu0 %vm454_vm0, %v3168_v14  ;;  %v2443_v7 = vpop.f32.mrf.mxu1  ;;  %vm3041_vm1 = vcmp.lt.f32.partialorder %v4974_v17, 0.1 }
 0x274   : > { %4987 = vrcp.f32 %v2853_v49  ;;  %v2444_v34 = vadd.f32 %v2443_v7, %v2059_v61  ;;  %v3105_v30 = vsel %vm3041_vm1, 0.0, %v4974_v17  ;;  %v2210_v36 = vpop.f32.mrf.mxu0  ;;  %v7855_v49 = vld [vmem:[#allocation10_spill] sm:$0xff] }
 0x275   : > { %v4976_v56 = vpop.eup %4975  ;;  %4989 = vpow2.f32 %v4616_v18  ;;  %v2445_v48 = vpop.f32.mrf.mxu1  ;;  %v3169_v45 = vmul.f32 %v5190_v40, %v3105_v30  ;;  %v2074_v18 = vadd.f32 %v6892_v29, %v7855_v49  ;;  %v5193_v40 = vld [vmem:[%s5335_s25 + $0x90] sm:$0xff] }
 0x276   : > { %v4978_v55 = vpop.eup %4977  ;;  %3884 = vst.msk [vmem:[%s6974_s15 + $0x80] sm:$0xff] %vm454_vm0, %v4976_v56  ;;  %v4617_v39 = vmul.f32 -1.442695, %v2444_v34  ;;  %vm3042_vm2 = vcmp.lt.f32.partialorder %v4976_v56, 0.1  ;;  %v7132_v51 = vpop.f32.mrf.mxu0 }
 0x277   : > { %v2854_v59 = vadd.f32 1.0, %v4978_v55  ;;  %4816 = vmatmul.mubr.msk.f32.gmra.mxu0 %vm454_vm0, %v3169_v45  ;;  %v2448_v4 = vpop.f32.mrf.mxu1  ;;  %v3106_v20 = vsel %vm3042_vm2, 0.0, %v4976_v56 }
 0x278   : > { %4991 = vpow2.f32 %v4617_v39  ;;  %v2449_v58 = vadd.f32 %v2448_v4, %v2064_v46  ;;  %v3170_v57 = vmul.f32 %v5191_v23, %v3106_v20  ;;  %v2215_v6 = vpop.f32.mrf.mxu0 }
 0x279   : > { %v4980_v2 = vpop.eup %4979  ;;  %4993 = vrcp.f32 %v2854_v59  ;;  %v2450_v13 = vpop.f32.mrf.mxu1  ;;  %v7856_v59 = vld [vmem:[#allocation13_spill] sm:$0xff] }
 0x27a   : > { %v4982_v35 = vpop.eup %4981  ;;  %3885 = vst.msk [vmem:[%s6974_s15 + $0x88] sm:$0xff] %vm454_vm0, %v4980_v2  ;;  %v4618_v27 = vmul.f32 -1.442695, %v2449_v58  ;;  %4818 = vmatprep.mubr.msk.f32.mxu0 %vm454_vm0, %v3170_v57  ;;  %vm3043_vm3 = vcmp.lt.f32.partialorder %v4980_v2, 0.1  ;;  %v7140_v0 = vpop.f32.mrf.mxu0  ;;  %v2079_v4 = vadd.f32 %v6892_v29, %v7856_v59  ;;  %v5194_v13 = vld [vmem:[%s5335_s25 + $0x98] sm:$0xff] }
 0x27b   : > { %v2855_v33 = vadd.f32 1.0, %v4982_v35  ;;  %v2453_v53 = vpop.f32.mrf.mxu1  ;;  %v3107_v11 = vsel %vm3043_vm3, 0.0, %v4980_v2 }
 0x27c   : > { %4995 = vpow2.f32 %v4618_v27  ;;  %v2454_v5 = vadd.f32 %v2453_v53, %v2069_v28  ;;  %v3171_v54 = vmul.f32 %v5192_v16, %v3107_v11  ;;  %v2220_v17 = vpop.f32.mrf.mxu0  ;;  %v7857_v53 = vld [vmem:[#allocation12_spill] sm:$0xff] }
 0x27d   : > { %v4984_v14 = vpop.eup %4983  ;;  %4997 = vrcp.f32 %v2855_v33  ;;  %v2455_v44 = vpop.f32.mrf.mxu1  ;;  %v7162_v33 = vld [vmem:[%s7788_s4] ss:$0 sm:$0xff] }
 0x27e   : > { %v4986_v61 = vpop.eup %4985  ;;  %3886 = vst.msk [vmem:[%s6974_s15 + $0x90] sm:$0xff] %vm454_vm0, %v4984_v14  ;;  %v4619_v7 = vmul.f32 -1.442695, %v2454_v5  ;;  %4819 = vmatmul.mubr.msk.f32.gmra.mxu0 %vm454_vm0, %v3171_v54  ;;  %vm3044_vm4 = vcmp.lt.f32.partialorder %v4984_v14, 0.1  ;;  %v7148_v30 = vpop.f32.mrf.mxu0  ;;  %v2084_v11 = vadd.f32 %v7162_v33, %v7857_v53 }
 0x27f   : > { %v2856_v34 = vadd.f32 1.0, %v4986_v61  ;;  %v2458_v56 = vpop.f32.mrf.mxu1  ;;  %v3108_v36 = vsel %vm3044_vm4, 0.0, %v4984_v14 }
 0x280   : > { %4999 = vpow2.f32 %v4619_v7  ;;  %v2459_v48 = vadd.f32 %v2458_v56, %v2074_v18  ;;  %v3172_v45 = vmul.f32 %v5193_v40, %v3108_v36  ;;  %v2225_v41 = vpop.f32.mrf.mxu0  ;;  %v5196_v7 = vld [vmem:[%s5335_s25 + $0xa0] sm:$0xff]  ;;  %v7858_v36 = vld [vmem:[#allocation15_spill] sm:$0xff] }
 0x281   : > { %v4988_v55 = vpop.eup %4987  ;;  %5001 = vrcp.f32 %v2856_v34  ;;  %v2460_v46 = vpop.f32.mrf.mxu1 }
 0x282   : > { %v4990_v39 = vpop.eup %4989  ;;  %3887 = vst.msk [vmem:[%s6974_s15 + $0x98] sm:$0xff] %vm454_vm0, %v4988_v55  ;;  %v4620_v20 = vmul.f32 -1.442695, %v2459_v48  ;;  %4821 = vmatprep.mubr.msk.f32.mxu0 %vm454_vm0, %v3172_v45  ;;  %vm3045_vm5 = vcmp.lt.f32.partialorder %v4988_v55, 0.1  ;;  %v7156_v23 = vpop.f32.mrf.mxu0  ;;  %v2089_v48 = vadd.f32 %v7162_v33, %v7858_v36 }
 0x283   : > { %v2857_v58 = vadd.f32 1.0, %v4990_v39  ;;  %v2463_v57 = vpop.f32.mrf.mxu1  ;;  %v3109_v2 = vsel %vm3045_vm5, 0.0, %v4988_v55 }
 0x284   : > { %5003 = vpow2.f32 %v4620_v20  ;;  %v2464_v6 = vadd.f32 %v2463_v57, %v2079_v4  ;;  %v3173_v35 = vmul.f32 %v5194_v13, %v3109_v2  ;;  %v2230_v28 = vpop.f32.mrf.mxu0 }
 0x285   : > { %v4992_v26 = vpop.eup %4991  ;;  %5005 = vrcp.f32 %v2857_v58  ;;  %v2465_v29 = vpop.f32.mrf.mxu1  ;;  %v5197_v58 = vld [vmem:[%s5335_s25 + $0xa8] sm:$0xff] }
 0x286   : > { %v4994_v27 = vpop.eup %4993  ;;  %v2858_v5 = vadd.f32 1.0, %v4992_v26  ;;  %v4621_v16 = vmul.f32 -1.442695, %v2464_v6  ;;  %4822 = vmatmul.mubr.msk.f32.gmra.mxu0 %vm454_vm0, %v3173_v35  ;;  %v7169_v54 = vpop.f32.mrf.mxu0  ;;  %v2094_v6 = vadd.f32 %v7162_v33, %v6914_v32 }
 0x287   : > { %3888 = vst.msk [vmem:[%s6974_s15 + $0xa0] sm:$0xff] %vm454_vm0, %v4994_v27  ;;  %v2468_v14 = vpop.f32.mrf.mxu1  ;;  %vm3046_vm6 = vcmp.lt.f32.partialorder %v4994_v27, 0.1 }
 0x288   : > { %5007 = vrcp.f32 %v2858_v5  ;;  %v2469_v17 = vadd.f32 %v2468_v14, %v2084_v11  ;;  %v3110_v44 = vsel %vm3046_vm6, 0.0, %v4994_v27  ;;  %v2235_v49 = vpop.f32.mrf.mxu0 }
 0x289   : > { %v4996_v61 = vpop.eup %4995  ;;  %5009 = vpow2.f32 %v4621_v16  ;;  %v2470_v18 = vpop.f32.mrf.mxu1  ;;  %v3174_v34 = vmul.f32 %v5196_v7, %v3110_v44  ;;  %v5198_v16 = vld [vmem:[%s5335_s25 + $0xb0] sm:$0xff] }
 0x28a   : > { %v4998_v56 = vpop.eup %4997  ;;  %v2859_v40 = vadd.f32 1.0, %v4996_v61  ;;  %v4622_v45 = vmul.f32 -1.442695, %v2469_v17  ;;  %v7177_v55 = vpop.f32.mrf.mxu0  ;;  %v2099_v17 = vadd.f32 %v7162_v33, %v6922_v15  ;;  %v5199_v15 = vld [vmem:[%s5335_s25 + $0xb8] sm:$0xff] }
 0x28b   : > { %3889 = vst.msk [vmem:[%s6974_s15 + $0xa8] sm:$0xff] %vm454_vm0, %v4998_v56  ;;  %4824 = vmatprep.mubr.msk.f32.mxu0 %vm454_vm0, %v3174_v34  ;;  %v2473_v41 = vpop.f32.mrf.mxu1  ;;  %vm3047_vm7 = vcmp.lt.f32.partialorder %v4998_v56, 0.1 }
 0x28c   : > { %5011 = vrcp.f32 %v2859_v40  ;;  %v2474_v46 = vadd.f32 %v2473_v41, %v2089_v48  ;;  %v3111_v39 = vsel %vm3047_vm7, 0.0, %v4998_v56  ;;  %v2240_v4 = vpop.f32.mrf.mxu0  ;;  %v2104_v41 = vadd.f32 %v7162_v33, %v6930_v1 }
 0x28d   : > { %v5000_v59 = vpop.eup %4999  ;;  %5013 = vpow2.f32 %v4622_v45  ;;  %v2475_v20 = vpop.f32.mrf.mxu1  ;;  %v3175_v57 = vmul.f32 %v5197_v58, %v3111_v39 }
 0x28e   : > { %v5002_v2 = vpop.eup %5001  ;;  %v2860_v13 = vadd.f32 1.0, %v5000_v59  ;;  %v4623_v35 = vmul.f32 -1.442695, %v2474_v46  ;;  %v7185_v26 = vpop.f32.mrf.mxu0 }
 0x28f   : > { %3890 = vst.msk [vmem:[%s6974_s15 + $0xb0] sm:$0xff] %vm454_vm0, %v5002_v2  ;;  %4825 = vmatmul.mubr.msk.f32.gmra.mxu0 %vm454_vm0, %v3175_v57  ;;  %v2478_v28 = vpop.f32.mrf.mxu1  ;;  %vm3048_vm8 = vcmp.lt.f32.partialorder %v5002_v2, 0.1  ;;  %v5200_v57 = vld [vmem:[%s5335_s25 + $0xc0] sm:$0xff] }
 0x290   : > { %5015 = vrcp.f32 %v2860_v13  ;;  %v2479_v29 = vadd.f32 %v2478_v28, %v2094_v6  ;;  %v3112_v27 = vsel %vm3048_vm8, 0.0, %v5002_v2  ;;  %v2245_v11 = vpop.f32.mrf.mxu0  ;;  %v2109_v28 = vadd.f32 %v7162_v33, %v6938_v37 }
 0x291   : > { %v5004_v53 = vpop.eup %5003  ;;  %5017 = vpow2.f32 %v4623_v35  ;;  %v2480_v5 = vpop.f32.mrf.mxu1  ;;  %v3176_v32 = vmul.f32 %v5198_v16, %v3112_v27  ;;  %v5201_v16 = vld [vmem:[%s5335_s25 + $0xc8] sm:$0xff]  ;;  %v2114_v37 = vadd.f32 %v7162_v33, %v6946_v10  ;;  %v2119_v10 = vadd.f32 %v7162_v33, %v6954_v63 }
 0x292   : > { %v5006_v14 = vpop.eup %5005  ;;  %v2861_v44 = vadd.f32 1.0, %v5004_v53  ;;  %v4624_v61 = vmul.f32 -1.442695, %v2479_v29  ;;  %v7193_v49 = vpop.f32.mrf.mxu0  ;;  %v2124_v63 = vadd.f32 %v7162_v33, %v6962_v21  ;;  %v2129_v21 = vadd.f32 %v7162_v33, %v6976_v12 }
 0x293   : > { %3891 = vst.msk [vmem:[%s6974_s15 + $0xb8] sm:$0xff] %vm454_vm0, %v5006_v14  ;;  %4827 = vmatprep.mubr.msk.f32.mxu0 %vm454_vm0, %v3176_v32  ;;  %v2483_v18 = vpop.f32.mrf.mxu1  ;;  %vm3049_vm9 = vcmp.lt.f32.partialorder %v5006_v14, 0.1  ;;  %v2134_v12 = vadd.f32 %v7162_v33, %v6986_v50  ;;  %v2139_v50 = vadd.f32 %v7162_v33, %v6998_v3  ;;  %v2144_v3 = vadd.f32 %v7162_v33, %v7010_v8 }
 0x294   : > { %5019 = vrcp.f32 %v2861_v44  ;;  %v2484_v7 = vadd.f32 %v2483_v18, %v2099_v17  ;;  %v3113_v34 = vsel %vm3049_vm9, 0.0, %v5006_v14  ;;  %v2250_v36 = vpop.f32.mrf.mxu0  ;;  %v2149_v8 = vadd.f32 %v7162_v33, %v7022_v19 }
 0x295   : > { %v5008_v56 = vpop.eup %5007  ;;  %5021 = vpow2.f32 %v4624_v61  ;;  %v2485_v48 = vpop.f32.mrf.mxu1  ;;  %v3177_v40 = vmul.f32 %v5199_v15, %v3113_v34  ;;  %v5202_v36 = vld [vmem:[%s5335_s25 + $0xd0] sm:$0xff]  ;;  %v2154_v19 = vadd.f32 %v7162_v33, %v7034_v9  ;;  %v2159_v9 = vadd.f32 %v7162_v33, %v7044_v62 }
 0x296   : > { %v5010_v45 = vpop.eup %5009  ;;  %3892 = vst.msk [vmem:[%s6974_s15 + $0xc0] sm:$0xff] %vm454_vm0, %v5008_v56  ;;  %v4625_v46 = vmul.f32 -1.442695, %v2484_v7  ;;  %vm3050_vm10 = vcmp.lt.f32.partialorder %v5008_v56, 0.1  ;;  %v7201_v59 = vpop.f32.mrf.mxu0  ;;  %v2164_v62 = vadd.f32 %v7162_v33, %v7052_v38  ;;  %v2169_v38 = vadd.f32 %v7162_v33, %v7060_v22 }
 0x297   : > { %v2862_v39 = vadd.f32 1.0, %v5010_v45  ;;  %4828 = vmatmul.mubr.msk.f32.gmra.mxu0 %vm454_vm0, %v3177_v40  ;;  %v2488_v4 = vpop.f32.mrf.mxu1  ;;  %v3114_v20 = vsel %vm3050_vm10, 0.0, %v5008_v56  ;;  %v2174_v22 = vadd.f32 %v7162_v33, %v7068_v47  ;;  %v2179_v47 = vadd.f32 %v7162_v33, %v7076_v42 }
 0x298   : > { %5023 = vpow2.f32 %v4625_v46  ;;  %v2489_v58 = vadd.f32 %v2488_v4, %v2104_v41  ;;  %v3178_v2 = vmul.f32 %v5200_v57, %v3114_v20  ;;  %v2255_v1 = vpop.f32.mrf.mxu0  ;;  %v2184_v42 = vadd.f32 %v7162_v33, %v7084_v25 }
 0x299   : > { %v5012_v6 = vpop.eup %5011  ;;  %5025 = vrcp.f32 %v2862_v39  ;;  %v2490_v13 = vpop.f32.mrf.mxu1  ;;  %v2189_v25 = vadd.f32 %v7162_v33, %v7092_v52  ;;  %v2194_v52 = vadd.f32 %v7162_v33, %v7100_v60  ;;  %v2199_v60 = vadd.f32 %v7162_v33, %v7108_v43 }
 0x29a   : > { %v5014_v35 = vpop.eup %5013  ;;  %3893 = vst.msk [vmem:[%s6974_s15 + $0xc8] sm:$0xff] %vm454_vm0, %v5012_v6  ;;  %v4626_v29 = vmul.f32 -1.442695, %v2489_v58  ;;  %4830 = vmatprep.mubr.msk.f32.mxu0 %vm454_vm0, %v3178_v2  ;;  %vm3051_vm11 = vcmp.lt.f32.partialorder %v5012_v6, 0.1  ;;  %v5203_v58 = vld [vmem:[%s5335_s25 + $0xd8] sm:$0xff]  ;;  %v2204_v43 = vadd.f32 %v7162_v33, %v7116_v24  ;;  %v2209_v24 = vadd.f32 %v7162_v33, %v7124_v31 }
 0x29b   : > { %v2863_v27 = vadd.f32 1.0, %v5014_v35  ;;  %v2493_v53 = vpop.f32.mrf.mxu1  ;;  %v3115_v11 = vsel %vm3051_vm11, 0.0, %v5012_v6  ;;  %v2214_v31 = vadd.f32 %v7162_v33, %v7132_v51  ;;  %v2219_v51 = vadd.f32 %v7162_v33, %v7140_v0 }
 0x29c   : > { %5027 = vpow2.f32 %v4626_v29  ;;  %v2494_v5 = vadd.f32 %v2493_v53, %v2109_v28  ;;  %v3179_v32 = vmul.f32 %v5201_v16, %v3115_v11  ;;  %v2224_v0 = vadd.f32 %v7162_v33, %v7148_v30 }
 0x29d   : > { %v5016_v14 = vpop.eup %5015  ;;  %5029 = vrcp.f32 %v2863_v27  ;;  %v2495_v17 = vpop.f32.mrf.mxu1  ;;  %v2229_v30 = vadd.f32 %v7162_v33, %v7156_v23 }
 0x29e   : > { %v5018_v44 = vpop.eup %5017  ;;  %3894 = vst.msk [vmem:[%s6974_s15 + $0xd0] sm:$0xff] %vm454_vm0, %v5016_v14  ;;  %v4627_v61 = vmul.f32 -1.442695, %v2494_v5  ;;  %4831 = vmatmul.mubr.msk.f32.gmra.mxu0 %vm454_vm0, %v3179_v32  ;;  %vm3052_vm12 = vcmp.lt.f32.partialorder %v5016_v14, 0.1  ;;  %v5204_v5 = vld [vmem:[%s5335_s25 + $0xe0] sm:$0xff] }
 0x29f   : > { %v2864_v18 = vadd.f32 1.0, %v5018_v44  ;;  %v2498_v7 = vpop.f32.mrf.mxu1  ;;  %v3116_v34 = vsel %vm3052_vm12, 0.0, %v5016_v14 }
 0x2a0   : > { %5031 = vpow2.f32 %v4627_v61  ;;  %v2499_v56 = vadd.f32 %v2498_v7, %v2114_v37  ;;  %v3180_v48 = vmul.f32 %v5202_v36, %v3116_v34  ;;  %v5205_v34 = vld [vmem:[%s5335_s25 + $0xe8] sm:$0xff] }
 0x2a1   : > { %v5020_v15 = vpop.eup %5019  ;;  %5033 = vrcp.f32 %v2864_v18  ;;  %v2500_v40 = vpop.f32.mrf.mxu1 }
 0x2a2   : > { %v5022_v45 = vpop.eup %5021  ;;  %3895 = vst.msk [vmem:[%s6974_s15 + $0xd8] sm:$0xff] %vm454_vm0, %v5020_v15  ;;  %v4628_v41 = vmul.f32 -1.442695, %v2499_v56  ;;  %4833 = vmatprep.mubr.msk.f32.mxu0 %vm454_vm0, %v3180_v48  ;;  %vm3053_vm13 = vcmp.lt.f32.partialorder %v5020_v15, 0.1 }
 0x2a3   : > { %v2865_v46 = vadd.f32 1.0, %v5022_v45  ;;  %v2503_v39 = vpop.f32.mrf.mxu1  ;;  %v3117_v4 = vsel %vm3053_vm13, 0.0, %v5020_v15 }
 0x2a4   : > { %5035 = vpow2.f32 %v4628_v41  ;;  %v2504_v20 = vadd.f32 %v2503_v39, %v2119_v10  ;;  %v3181_v57 = vmul.f32 %v5203_v58, %v3117_v4  ;;  %v5206_v39 = vld [vmem:[%s5335_s25 + $0xf0] sm:$0xff] }
 0x2a5   : > { %v5024_v2 = vpop.eup %5023  ;;  %5037 = vrcp.f32 %v2865_v46  ;;  %v2505_v6 = vpop.f32.mrf.mxu1 }
 0x2a6   : > { %v5026_v1 = vpop.eup %5025  ;;  %v2866_v13 = vadd.f32 1.0, %v5024_v2  ;;  %v4629_v35 = vmul.f32 -1.442695, %v2504_v20  ;;  %4834 = vmatmul.mubr.msk.f32.gmra.mxu0 %vm454_vm0, %v3181_v57 }
 0x2a7   : > { %3896 = vst.msk [vmem:[%s6974_s15 + $0xe0] sm:$0xff] %vm454_vm0, %v5026_v1  ;;  %v2508_v28 = vpop.f32.mrf.mxu1  ;;  %vm3054_vm14 = vcmp.lt.f32.partialorder %v5026_v1, 0.1 }
 0x2a8   : > { %5039 = vrcp.f32 %v2866_v13  ;;  %v2509_v29 = vadd.f32 %v2508_v28, %v2124_v63  ;;  %v3118_v27 = vsel %vm3054_vm14, 0.0, %v5026_v1 }
 0x2a9   : > { %v5028_v53 = vpop.eup %5027  ;;  %5041 = vpow2.f32 %v4629_v35  ;;  %v2510_v11 = vpop.f32.mrf.mxu1  ;;  %v3182_v16 = vmul.f32 %v5204_v5, %v3118_v27  ;;  %v5207_v35 = vld [vmem:[%s5335_s25 + $0xf8] sm:$0xff] }
 0x2aa   : > { %v5030_v32 = vpop.eup %5029  ;;  %v2867_v14 = vadd.f32 1.0, %v5028_v53  ;;  %v4630_v17 = vmul.f32 -1.442695, %v2509_v29 }
 0x2ab   : > { %3897 = vst.msk [vmem:[%s6974_s15 + $0xe8] sm:$0xff] %vm454_vm0, %v5030_v32  ;;  %4836 = vmatprep.mubr.msk.f32.mxu0 %vm454_vm0, %v3182_v16  ;;  %v2513_v44 = vpop.f32.mrf.mxu1  ;;  %vm3055_vm15 = vcmp.lt.f32.partialorder %v5030_v32, 0.1 }
 0x2ac   : > { %5043 = vrcp.f32 %v2867_v14  ;;  %v2514_v37 = vadd.f32 %v2513_v44, %v2129_v21  ;;  %v3119_v61 = vsel %vm3055_vm15, 0.0, %v5030_v32  ;;  %v5208_v32 = vld [vmem:[%s5335_s25 + $0x100] sm:$0xff] }
 0x2ad   : > { %v5032_v18 = vpop.eup %5031  ;;  %5045 = vpow2.f32 %v4630_v17  ;;  %v2515_v7 = vpop.f32.mrf.mxu1  ;;  %v3183_v56 = vmul.f32 %v5205_v34, %v3119_v61 }
 0x2ae   : > { %v5034_v36 = vpop.eup %5033  ;;  %v2868_v48 = vadd.f32 1.0, %v5032_v18  ;;  %v4631_v15 = vmul.f32 -1.442695, %v2514_v37 }
 0x2af   : > { %3898 = vst.msk [vmem:[%s6974_s15 + $0xf0] sm:$0xff] %vm454_vm0, %v5034_v36  ;;  %4837 = vmatmul.mubr.msk.f32.gmra.mxu0 %vm454_vm0, %v3183_v56  ;;  %v2518_v40 = vpop.f32.mrf.mxu1  ;;  %vm3056_vm1 = vcmp.lt.f32.partialorder %v5034_v36, 0.1  ;;  %v5209_v56 = vld [vmem:[%s5335_s25 + $0x108] sm:$0xff] }
 0x2b0   : > { %5047 = vrcp.f32 %v2868_v48  ;;  %v2519_v45 = vadd.f32 %v2518_v40, %v2134_v12  ;;  %v3120_v10 = vsel %vm3056_vm1, 0.0, %v5034_v36 }
 0x2b1   : > { %v5036_v41 = vpop.eup %5035  ;;  %5049 = vpow2.f32 %v4631_v15  ;;  %v2520_v46 = vpop.f32.mrf.mxu1  ;;  %v3184_v4 = vmul.f32 %v5206_v39, %v3120_v10  ;;  %v5210_v39 = vld [vmem:[%s5335_s25 + $0x110] sm:$0xff] }
 0x2b2   : > { %v5038_v20 = vpop.eup %5037  ;;  %v2869_v58 = vadd.f32 1.0, %v5036_v41  ;;  %v4632_v57 = vmul.f32 -1.442695, %v2519_v45 }
 0x2b3   : > { %3899 = vst.msk [vmem:[%s6974_s15 + $0xf8] sm:$0xff] %vm454_vm0, %v5038_v20  ;;  %4839 = vmatprep.mubr.msk.f32.mxu0 %vm454_vm0, %v3184_v4  ;;  %v2523_v2 = vpop.f32.mrf.mxu1  ;;  %vm3057_vm2 = vcmp.lt.f32.partialorder %v5038_v20, 0.1 }
 0x2b4   : > { %5051 = vrcp.f32 %v2869_v58  ;;  %v2524_v6 = vadd.f32 %v2523_v2, %v2139_v50  ;;  %v3121_v1 = vsel %vm3057_vm2, 0.0, %v5038_v20 }
 0x2b5   : > { %v5040_v63 = vpop.eup %5039  ;;  %5053 = vpow2.f32 %v4632_v57  ;;  %v2525_v13 = vpop.f32.mrf.mxu1  ;;  %v3185_v28 = vmul.f32 %v5207_v35, %v3121_v1 }
 0x2b6   : > { %v5042_v29 = vpop.eup %5041  ;;  %3900 = vst.msk [vmem:[%s6974_s15 + $0x100] sm:$0xff] %vm454_vm0, %v5040_v63  ;;  %v4633_v27 = vmul.f32 -1.442695, %v2524_v6  ;;  %vm3058_vm3 = vcmp.lt.f32.partialorder %v5040_v63, 0.1  ;;  %v5211_v13 = vld [vmem:[%s5335_s25 + $0x118] sm:$0xff] }
 0x2b7   : > { %v2870_v53 = vadd.f32 1.0, %v5042_v29  ;;  %4840 = vmatmul.mubr.msk.f32.gmra.mxu0 %vm454_vm0, %v3185_v28  ;;  %v2528_v11 = vpop.f32.mrf.mxu1  ;;  %v3122_v5 = vsel %vm3058_vm3, 0.0, %v5040_v63 }
 0x2b8   : > { %5055 = vpow2.f32 %v4633_v27  ;;  %v2529_v16 = vadd.f32 %v2528_v11, %v2144_v3  ;;  %v3186_v21 = vmul.f32 %v5208_v32, %v3122_v5 }
 0x2b9   : > { %v5044_v14 = vpop.eup %5043  ;;  %5057 = vrcp.f32 %v2870_v53  ;;  %v2530_v17 = vpop.f32.mrf.mxu1 }
 0x2ba   : > { %v5046_v44 = vpop.eup %5045  ;;  %3901 = vst.msk [vmem:[%s6974_s15 + $0x108] sm:$0xff] %vm454_vm0, %v5044_v14  ;;  %v4634_v37 = vmul.f32 -1.442695, %v2529_v16  ;;  %4842 = vmatprep.mubr.msk.f32.mxu0 %vm454_vm0, %v3186_v21  ;;  %vm3059_vm4 = vcmp.lt.f32.partialorder %v5044_v14, 0.1 }
 0x2bb   : > { %v2871_v61 = vadd.f32 1.0, %v5046_v44  ;;  %v2533_v18 = vpop.f32.mrf.mxu1  ;;  %v3123_v7 = vsel %vm3059_vm4, 0.0, %v5044_v14  ;;  %v5212_v14 = vld [vmem:[%s5335_s25 + $0x120] sm:$0xff] }
 0x2bc   : > { %5059 = vpow2.f32 %v4634_v37  ;;  %v2534_v34 = vadd.f32 %v2533_v18, %v2149_v8  ;;  %v3187_v36 = vmul.f32 %v5209_v56, %v3123_v7 }
 0x2bd   : > { %v5048_v12 = vpop.eup %5047  ;;  %5061 = vrcp.f32 %v2871_v61  ;;  %v2535_v48 = vpop.f32.mrf.mxu1 }
 0x2be   : > { %v5050_v15 = vpop.eup %5049  ;;  %3902 = vst.msk [vmem:[%s6974_s15 + $0x110] sm:$0xff] %vm454_vm0, %v5048_v12  ;;  %v4635_v40 = vmul.f32 -1.442695, %v2534_v34  ;;  %4843 = vmatmul.mubr.msk.f32.gmra.mxu0 %vm454_vm0, %v3187_v36  ;;  %vm3060_vm5 = vcmp.lt.f32.partialorder %v5048_v12, 0.1  ;;  %v5213_v36 = vld [vmem:[%s5335_s25 + $0x128] sm:$0xff] }
 0x2bf   : > { %v2872_v45 = vadd.f32 1.0, %v5050_v15  ;;  %v2538_v10 = vpop.f32.mrf.mxu1  ;;  %v3124_v41 = vsel %vm3060_vm5, 0.0, %v5048_v12 }
 0x2c0   : > { %5063 = vpow2.f32 %v4635_v40  ;;  %v2539_v46 = vadd.f32 %v2538_v10, %v2154_v19  ;;  %v3188_v4 = vmul.f32 %v5210_v39, %v3124_v41  ;;  %v5214_v39 = vld [vmem:[%s5335_s25 + $0x130] sm:$0xff] }
 0x2c1   : > { %v5052_v20 = vpop.eup %5051  ;;  %5065 = vrcp.f32 %v2872_v45  ;;  %v2540_v50 = vpop.f32.mrf.mxu1 }
 0x2c2   : > { %v5054_v58 = vpop.eup %5053  ;;  %3903 = vst.msk [vmem:[%s6974_s15 + $0x118] sm:$0xff] %vm454_vm0, %v5052_v20  ;;  %v4636_v57 = vmul.f32 -1.442695, %v2539_v46  ;;  %4845 = vmatprep.mubr.msk.f32.mxu0 %vm454_vm0, %v3188_v4  ;;  %vm3061_vm6 = vcmp.lt.f32.partialorder %v5052_v20, 0.1 }
 0x2c3   : > { %v2873_v2 = vadd.f32 1.0, %v5054_v58  ;;  %v2543_v6 = vpop.f32.mrf.mxu1  ;;  %v3125_v1 = vsel %vm3061_vm6, 0.0, %v5052_v20 }
 0x2c4   : > { %5067 = vpow2.f32 %v4636_v57  ;;  %v2544_v63 = vadd.f32 %v2543_v6, %v2159_v9  ;;  %v3189_v35 = vmul.f32 %v5211_v13, %v3125_v1 }
 0x2c5   : > { %v5056_v28 = vpop.eup %5055  ;;  %5069 = vrcp.f32 %v2873_v2  ;;  %v2545_v29 = vpop.f32.mrf.mxu1 }
 0x2c6   : > { %v5058_v3 = vpop.eup %5057  ;;  %v2874_v27 = vadd.f32 1.0, %v5056_v28  ;;  %v4637_v53 = vmul.f32 -1.442695, %v2544_v63  ;;  %4846 = vmatmul.mubr.msk.f32.gmra.mxu0 %vm454_vm0, %v3189_v35  ;;  %v5215_v63 = vld [vmem:[%s5335_s25 + $0x138] sm:$0xff] }
 0x2c7   : > { %3904 = vst.msk [vmem:[%s6974_s15 + $0x120] sm:$0xff] %vm454_vm0, %v5058_v3  ;;  %v2548_v11 = vpop.f32.mrf.mxu1  ;;  %vm3062_vm7 = vcmp.lt.f32.partialorder %v5058_v3, 0.1 }
 0x2c8   : > { %5071 = vrcp.f32 %v2874_v27  ;;  %v2549_v5 = vadd.f32 %v2548_v11, %v2164_v62  ;;  %v3126_v16 = vsel %vm3062_vm7, 0.0, %v5058_v3  ;;  %vm3932_vm7 = vcmask 261120  }
 0x2c9   : > { %v5060_v32 = vpop.eup %5059  ;;  %5073 = vpow2.f32 %v4637_v53  ;;  %v2550_v21 = vpop.f32.mrf.mxu1  ;;  %v3190_v17 = vmul.f32 %v5212_v14, %v3126_v16  ;;  %v5216_v53 = vld [vmem:[%s5335_s25 + $0x140] sm:$0xff] }
 0x2ca   : > { %v5062_v44 = vpop.eup %5061  ;;  %v2875_v8 = vadd.f32 1.0, %v5060_v32  ;;  %v4638_v37 = vmul.f32 -1.442695, %v2549_v5 }
 0x2cb   : > { %3905 = vst.msk [vmem:[%s6974_s15 + $0x128] sm:$0xff] %vm454_vm0, %v5062_v44  ;;  %4848 = vmatprep.mubr.msk.f32.mxu0 %vm454_vm0, %v3190_v17  ;;  %v2553_v61 = vpop.f32.mrf.mxu1  ;;  %vm3063_vm8 = vcmp.lt.f32.partialorder %v5062_v44, 0.1 }
 0x2cc   : > { %5075 = vrcp.f32 %v2875_v8  ;;  %v2554_v18 = vadd.f32 %v2553_v61, %v2169_v38  ;;  %v3127_v7 = vsel %vm3063_vm8, 0.0, %v5062_v44  ;;  %v5217_v8 = vld [vmem:[%s5335_s25 + $0x148] sm:$0xff] }
 0x2cd   : > { %v5064_v34 = vpop.eup %5063  ;;  %5077 = vpow2.f32 %v4638_v37  ;;  %v2555_v56 = vpop.f32.mrf.mxu1  ;;  %v3191_v12 = vmul.f32 %v5213_v36, %v3127_v7 }
 0x2ce   : > { %v5066_v48 = vpop.eup %5065  ;;  %v2876_v15 = vadd.f32 1.0, %v5064_v34  ;;  %v4639_v19 = vmul.f32 -1.442695, %v2554_v18 }
 0x2cf   : > { %3906 = vst.msk [vmem:[%s6974_s15 + $0x130] sm:$0xff] %vm454_vm0, %v5066_v48  ;;  %4849 = vmatmul.mubr.msk.f32.gmra.mxu0 %vm454_vm0, %v3191_v12  ;;  %v2558_v40 = vpop.f32.mrf.mxu1  ;;  %vm3064_vm9 = vcmp.lt.f32.partialorder %v5066_v48, 0.1 }
 0x2d0   : > { %5079 = vrcp.f32 %v2876_v15  ;;  %v2559_v45 = vadd.f32 %v2558_v40, %v2174_v22  ;;  %v3128_v10 = vsel %vm3064_vm9, 0.0, %v5066_v48  ;;  %v5218_v22 = vld [vmem:[%s5335_s25 + $0x150] sm:$0xff] }
 0x2d1   : > { %v5068_v41 = vpop.eup %5067  ;;  %5081 = vpow2.f32 %v4639_v19  ;;  %v2560_v46 = vpop.f32.mrf.mxu1  ;;  %v3192_v4 = vmul.f32 %v5214_v39, %v3128_v10 }
 0x2d2   : > { %v5070_v20 = vpop.eup %5069  ;;  %v2877_v50 = vadd.f32 1.0, %v5068_v41  ;;  %v4640_v58 = vmul.f32 -1.442695, %v2559_v45 }
 0x2d3   : > { %3907 = vst.msk [vmem:[%s6974_s15 + $0x138] sm:$0xff] %vm454_vm0, %v5070_v20  ;;  %4851 = vmatprep.mubr.msk.f32.mxu0 %vm454_vm0, %v3192_v4  ;;  %v2563_v9 = vpop.f32.mrf.mxu1  ;;  %vm3065_vm10 = vcmp.lt.f32.partialorder %v5070_v20, 0.1 }
 0x2d4   : > { %5083 = vrcp.f32 %v2877_v50  ;;  %v2564_v57 = vadd.f32 %v2563_v9, %v2179_v47  ;;  %v3129_v2 = vsel %vm3065_vm10, 0.0, %v5070_v20  ;;  %v5219_v20 = vld [vmem:[%s5335_s25 + $0x158] sm:$0xff] }
 0x2d5   : > { %v5072_v6 = vpop.eup %5071  ;;  %5085 = vpow2.f32 %v4640_v58  ;;  %v2565_v1 = vpop.f32.mrf.mxu1  ;;  %v3193_v13 = vmul.f32 %v5215_v63, %v3129_v2 }
 0x2d6   : > { %v5074_v35 = vpop.eup %5073  ;;  %3908 = vst.msk [vmem:[%s6974_s15 + $0x140] sm:$0xff] %vm454_vm0, %v5072_v6  ;;  %v4641_v28 = vmul.f32 -1.442695, %v2564_v57  ;;  %vm3066_vm11 = vcmp.lt.f32.partialorder %v5072_v6, 0.1 }
 0x2d7   : > { %v2878_v29 = vadd.f32 1.0, %v5074_v35  ;;  %4852 = vmatmul.mubr.msk.f32.gmra.mxu0 %vm454_vm0, %v3193_v13  ;;  %v2568_v3 = vpop.f32.mrf.mxu1  ;;  %v3130_v62 = vsel %vm3066_vm11, 0.0, %v5072_v6 }
 0x2d8   : > { %5087 = vpow2.f32 %v4641_v28  ;;  %v2569_v27 = vadd.f32 %v2568_v3, %v2184_v42  ;;  %v3194_v11 = vmul.f32 %v5216_v53, %v3130_v62  ;;  %v5220_v42 = vld [vmem:[%s5335_s25 + $0x160] sm:$0xff] }
 0x2d9   : > { %v5076_v5 = vpop.eup %5075  ;;  %5089 = vrcp.f32 %v2878_v29  ;;  %v2570_v16 = vpop.f32.mrf.mxu1 }
 0x2da   : > { %v5078_v32 = vpop.eup %5077  ;;  %3909 = vst.msk [vmem:[%s6974_s15 + $0x148] sm:$0xff] %vm454_vm0, %v5076_v5  ;;  %v4642_v21 = vmul.f32 -1.442695, %v2569_v27  ;;  %4854 = vmatprep.mubr.msk.f32.mxu0 %vm454_vm0, %v3194_v11  ;;  %vm3067_vm12 = vcmp.lt.f32.partialorder %v5076_v5, 0.1 }
 0x2db   : > { %v2879_v14 = vadd.f32 1.0, %v5078_v32  ;;  %v2573_v17 = vpop.f32.mrf.mxu1  ;;  %v3131_v44 = vsel %vm3067_vm12, 0.0, %v5076_v5  ;;  %v5221_v32 = vld [vmem:[%s5335_s25 + $0x168] sm:$0xff] }
 0x2dc   : > { %5091 = vpow2.f32 %v4642_v21  ;;  %v2574_v38 = vadd.f32 %v2573_v17, %v2189_v25  ;;  %v3195_v37 = vmul.f32 %v5217_v8, %v3131_v44 }
 0x2dd   : > { %v5080_v61 = vpop.eup %5079  ;;  %5093 = vrcp.f32 %v2879_v14  ;;  %v2575_v18 = vpop.f32.mrf.mxu1 }
 0x2de   : > { %v5082_v7 = vpop.eup %5081  ;;  %3910 = vst.msk [vmem:[%s6974_s15 + $0x150] sm:$0xff] %vm454_vm0, %v5080_v61  ;;  %v4643_v34 = vmul.f32 -1.442695, %v2574_v38  ;;  %4855 = vmatmul.mubr.msk.f32.gmra.mxu0 %vm454_vm0, %v3195_v37  ;;  %vm3068_vm13 = vcmp.lt.f32.partialorder %v5080_v61, 0.1  ;;  %v5222_v18 = vld [vmem:[%s5335_s25 + $0x170] sm:$0xff] }
 0x2df   : > { %v2880_v56 = vadd.f32 1.0, %v5082_v7  ;;  %v2578_v36 = vpop.f32.mrf.mxu1  ;;  %v3132_v12 = vsel %vm3068_vm13, 0.0, %v5080_v61 }
 0x2e0   : > { %5095 = vpow2.f32 %v4643_v34  ;;  %v2579_v48 = vadd.f32 %v2578_v36, %v2194_v52  ;;  %v3196_v15 = vmul.f32 %v5218_v22, %v3132_v12 }
 0x2e1   : > { %v5084_v19 = vpop.eup %5083  ;;  %5097 = vrcp.f32 %v2880_v56  ;;  %v2580_v40 = vpop.f32.mrf.mxu1 }
 0x2e2   : > { %v5086_v45 = vpop.eup %5085  ;;  %3911 = vst.msk [vmem:[%s6974_s15 + $0x158] sm:$0xff] %vm454_vm0, %v5084_v19  ;;  %v4644_v10 = vmul.f32 -1.442695, %v2579_v48  ;;  %4857 = vmatprep.mubr.msk.f32.mxu0 %vm454_vm0, %v3196_v15  ;;  %vm3069_vm14 = vcmp.lt.f32.partialorder %v5084_v19, 0.1 }
 0x2e3   : > { %v2881_v41 = vadd.f32 1.0, %v5086_v45  ;;  %v2583_v46 = vpop.f32.mrf.mxu1  ;;  %v3133_v39 = vsel %vm3069_vm14, 0.0, %v5084_v19  ;;  %v5223_v19 = vld [vmem:[%s5335_s25 + $0x178] sm:$0xff] }
 0x2e4   : > { %5099 = vpow2.f32 %v4644_v10  ;;  %v2584_v4 = vadd.f32 %v2583_v46, %v2199_v60  ;;  %v3197_v47 = vmul.f32 %v5219_v20, %v3133_v39 }
 0x2e5   : > { %v5088_v50 = vpop.eup %5087  ;;  %5101 = vrcp.f32 %v2881_v41  ;;  %v2585_v58 = vpop.f32.mrf.mxu1 }
 0x2e6   : > { %v5090_v9 = vpop.eup %5089  ;;  %v2882_v57 = vadd.f32 1.0, %v5088_v50  ;;  %v4645_v2 = vmul.f32 -1.442695, %v2584_v4  ;;  %4858 = vmatmul.mubr.msk.f32.gmra.mxu0 %vm454_vm0, %v3197_v47  ;;  %v5224_v4 = vld [vmem:[%s5335_s25 + $0x180] sm:$0xff] }
 0x2e7   : > { %3912 = vst.msk [vmem:[%s6974_s15 + $0x160] sm:$0xff] %vm454_vm0, %v5090_v9  ;;  %v2588_v6 = vpop.f32.mrf.mxu1  ;;  %vm3070_vm15 = vcmp.lt.f32.partialorder %v5090_v9, 0.1 }
 0x2e8   : > { %5103 = vrcp.f32 %v2882_v57  ;;  %v2589_v1 = vadd.f32 %v2588_v6, %v2204_v43  ;;  %v3134_v63 = vsel %vm3070_vm15, 0.0, %v5090_v9 }
 0x2e9   : > { %v5092_v13 = vpop.eup %5091  ;;  %5105 = vpow2.f32 %v4645_v2  ;;  %v2590_v35 = vpop.f32.mrf.mxu1  ;;  %v3198_v28 = vmul.f32 %v5220_v42, %v3134_v63  ;;  %v5225_v63 = vld [vmem:[%s5335_s25 + $0x188] sm:$0xff] }
 0x2ea   : > { %v5094_v29 = vpop.eup %5093  ;;  %v2883_v3 = vadd.f32 1.0, %v5092_v13  ;;  %v4646_v62 = vmul.f32 -1.442695, %v2589_v1  ;;  %v7356_v1 = vld [vmem:[%s7790_s6] ss:$0 sm:$0xff] }
 0x2eb   : > { %3913 = vst.msk [vmem:[%s6974_s15 + $0x168] sm:$0xff] %vm454_vm0, %v5094_v29  ;;  %4860 = vmatprep.mubr.msk.f32.mxu0 %vm454_vm0, %v3198_v28  ;;  %v2593_v27 = vpop.f32.mrf.mxu1  ;;  %vm3071_vm1 = vcmp.lt.f32.partialorder %v5094_v29, 0.1  ;;  %v2234_v28 = vadd.f32 %v7162_v33, %v7169_v54 }
 0x2ec   : > { %5107 = vrcp.f32 %v2883_v3  ;;  %v2594_v53 = vadd.f32 %v2593_v27, %v2209_v24  ;;  %v3135_v11 = vsel %vm3071_vm1, 0.0, %v5094_v29 }
 0x2ed   : > { %v5096_v5 = vpop.eup %5095  ;;  %5109 = vpow2.f32 %v4646_v62  ;;  %v2595_v16 = vpop.f32.mrf.mxu1  ;;  %v3199_v25 = vmul.f32 %v5221_v32, %v3135_v11 }
 0x2ee   : > { %v5098_v21 = vpop.eup %5097  ;;  %v2884_v14 = vadd.f32 1.0, %v5096_v5  ;;  %v4647_v17 = vmul.f32 -1.442695, %v2594_v53  ;;  %v5226_v5 = vld [vmem:[%s5335_s25 + $0x190] sm:$0xff] }
 0x2ef   : > { %3914 = vst.msk [vmem:[%s6974_s15 + $0x170] sm:$0xff] %vm454_vm0, %v5098_v21  ;;  %4861 = vmatmul.mubr.msk.f32.gmra.mxu0 %vm454_vm0, %v3199_v25  ;;  %v2598_v44 = vpop.f32.mrf.mxu1  ;;  %vm3072_vm2 = vcmp.lt.f32.partialorder %v5098_v21, 0.1 }
 0x2f0   : > { %5111 = vrcp.f32 %v2884_v14  ;;  %v2599_v38 = vadd.f32 %v2598_v44, %v2214_v31  ;;  %v3136_v8 = vsel %vm3072_vm2, 0.0, %v5098_v21 }
 0x2f1   : > { %v5100_v37 = vpop.eup %5099  ;;  %5113 = vpow2.f32 %v4647_v17  ;;  %v2600_v61 = vpop.f32.mrf.mxu1  ;;  %v3200_v7 = vmul.f32 %v5222_v18, %v3136_v8  ;;  %v2239_v17 = vadd.f32 %v7162_v33, %v7177_v55  ;;  %v2244_v18 = vadd.f32 %v7162_v33, %v7185_v26  ;;  %v5227_v26 = vld [vmem:[%s5335_s25 + $0x198] sm:$0xff] }
 0x2f2   : > { %v5102_v52 = vpop.eup %5101  ;;  %v2885_v34 = vadd.f32 1.0, %v5100_v37  ;;  %v4648_v56 = vmul.f32 -1.442695, %v2599_v38 }
 0x2f3   : > { %3915 = vst.msk [vmem:[%s6974_s15 + $0x178] sm:$0xff] %vm454_vm0, %v5102_v52  ;;  %4863 = vmatprep.mubr.msk.f32.mxu0 %vm454_vm0, %v3200_v7  ;;  %v2603_v36 = vpop.f32.mrf.mxu1  ;;  %vm3073_vm3 = vcmp.lt.f32.partialorder %v5102_v52, 0.1 }
 0x2f4   : > { %5115 = vrcp.f32 %v2885_v34  ;;  %v2604_v12 = vadd.f32 %v2603_v36, %v2219_v51  ;;  %v3137_v48 = vsel %vm3073_vm3, 0.0, %v5102_v52 }
 0x2f5   : > { %v5104_v22 = vpop.eup %5103  ;;  %5117 = vpow2.f32 %v4648_v56  ;;  %v2605_v15 = vpop.f32.mrf.mxu1  ;;  %v3201_v40 = vmul.f32 %v5223_v19, %v3137_v48 }
 0x2f6   : > { %v5106_v45 = vpop.eup %5105  ;;  %3916 = vst.msk [vmem:[%s6974_s15 + $0x180] sm:$0xff] %vm454_vm0, %v5104_v22  ;;  %v4649_v60 = vmul.f32 -1.442695, %v2604_v12  ;;  %vm3074_vm4 = vcmp.lt.f32.partialorder %v5104_v22, 0.1 }
 0x2f7   : > { %v2886_v10 = vadd.f32 1.0, %v5106_v45  ;;  %4864 = vmatmul.mubr.msk.f32.gmra.mxu0 %vm454_vm0, %v3201_v40  ;;  %v2608_v41 = vpop.f32.mrf.mxu1  ;;  %v3138_v46 = vsel %vm3074_vm4, 0.0, %v5104_v22 }
 0x2f8   : > { %5119 = vpow2.f32 %v4649_v60  ;;  %v2609_v39 = vadd.f32 %v2608_v41, %v2224_v0  ;;  %v3202_v20 = vmul.f32 %v5224_v4, %v3138_v46 }
 0x2f9   : > { %v5108_v47 = vpop.eup %5107  ;;  %5121 = vrcp.f32 %v2886_v10  ;;  %v2610_v50 = vpop.f32.mrf.mxu1 }
 0x2fa   : > { %v5110_v58 = vpop.eup %5109  ;;  %3917 = vst.msk [vmem:[%s6974_s15 + $0x188] sm:$0xff] %vm454_vm0, %v5108_v47  ;;  %v4650_v9 = vmul.f32 -1.442695, %v2609_v39  ;;  %4866 = vmatprep.mubr.msk.f32.mxu0 %vm454_vm0, %v3202_v20  ;;  %vm3075_vm5 = vcmp.lt.f32.partialorder %v5108_v47, 0.1 }
 0x2fb   : > { %v2887_v43 = vadd.f32 1.0, %v5110_v58  ;;  %v2613_v57 = vpop.f32.mrf.mxu1  ;;  %v3139_v2 = vsel %vm3075_vm5, 0.0, %v5108_v47  ;;  %v5228_v58 = vld [vmem:[%s5335_s25 + $0x1a0] sm:$0xff] }
 0x2fc   : > { %5123 = vpow2.f32 %v4650_v9  ;;  %v2614_v6 = vadd.f32 %v2613_v57, %v2229_v30  ;;  %v3203_v13 = vmul.f32 %v5225_v63, %v3139_v2 }
 0x2fd   : > { %v5112_v23 = vpop.eup %5111  ;;  %5125 = vrcp.f32 %v2887_v43  ;;  %v2615_v35 = vpop.f32.mrf.mxu1  ;;  %v5229_v43 = vld [vmem:[%s7788_s4] ss:$0 sm:$0xff] }
 0x2fe   : > { %v5114_v42 = vpop.eup %5113  ;;  %3918 = vst.msk [vmem:[%s6974_s15 + $0x190] sm:$0xff] %vm454_vm0, %v5112_v23  ;;  %v4651_v29 = vmul.f32 -1.442695, %v2614_v6  ;;  %v4796_v24 = vpop.f32.mrf.mxu0  ;;  %4867 = vmatmul.mubr.msk.f32.gmra.mxu0 %vm454_vm0, %v3203_v13  ;;  %vm3076_vm6 = vcmp.lt.f32.partialorder %v5112_v23, 0.1  ;;  %v2249_v57 = vadd.f32 %v5229_v43, %v7193_v49 }
 0x2ff   : > { %v2888_v3 = vadd.f32 1.0, %v5114_v42  ;;  %v3491_v62 = vadd.f32 %v4796_v24, %v7356_v1  ;;  %v2618_v27 = vpop.f32.mrf.mxu1  ;;  %v3140_v53 = vsel %vm3076_vm6, 0.0, %v5112_v23  ;;  %v2254_v23 = vadd.f32 %v5229_v43, %v7201_v59 }
 0x300   : > { %5127 = vpow2.f32 %v4651_v29  ;;  %v2619_v54 = vadd.f32 %v2618_v27, %v2234_v28  ;;  %v3485_v11 = vpop.f32.mrf.mxu0  ;;  %v3204_v16 = vmul.f32 %v5226_v5, %v3140_v53  ;;  %vm4329_vm6 = vcmask 254976  }
 0x301   : > { %v5116_v32 = vpop.eup %5115  ;;  %5129 = vrcp.f32 %v2888_v3  ;;  %v3805_v25 = vmax.f32 %v3491_v62, 0.0  ;;  %v3486_v21 = vadd.f32 %v7356_v1, %v3485_v11  ;;  %v2620_v31 = vpop.f32.mrf.mxu1  ;;  %v5230_v11 = vld [vmem:[%s5335_s25 + $0x1a8] sm:$0xff] }
 0x302   : > { %v5118_v14 = vpop.eup %5117  ;;  %3919 = vst.msk [vmem:[%s6974_s15 + $0x198] sm:$0xff] %vm454_vm0, %v5116_v32  ;;  %v4652_v44 = vmul.f32 -1.442695, %v2619_v54  ;;  %4869 = vmatprep.mubr.msk.f32.mxu0 %vm454_vm0, %v3204_v16  ;;  %vm3077_vm8 = vcmp.lt.f32.partialorder %v5116_v32, 0.1 }
 0x303   : > { %v2889_v38 = vadd.f32 1.0, %v5118_v14  ;;  %3934 = vst.msk [vmem:[%s7369_s23 + $0x8] sm:$0xff] %vm3932_vm7, %v3805_v25  ;;  %v4131_v8 = vmul.f32 %v3805_v25, %v3805_v25  ;;  %v3804_v37 = vmax.f32 %v3486_v21, 0.0  ;;  %v2623_v61 = vpop.f32.mrf.mxu1  ;;  %v3141_v55 = vsel %vm3077_vm8, 0.0, %v5116_v32 }
 0x304   : > { %5131 = vpow2.f32 %v4652_v44  ;;  %v2624_v7 = vadd.f32 %v2623_v61, %v2239_v17  ;;  %v3998_v51 = vsel %vm3932_vm7, %v3805_v25, 0.0  ;;  %v3205_v19 = vmul.f32 %v5227_v26, %v3141_v55 }
 0x305   : > { %v5120_v52 = vpop.eup %5119  ;;  %5133 = vrcp.f32 %v2889_v38  ;;  %3933 = vst.msk [vmem:[%s7369_s23] sm:$0xff] %vm3932_vm7, %v3804_v37  ;;  %v3997_v34 = vsel %vm3932_vm7, %v3804_v37, 0.0  ;;  %v4130_v56 = vmul.f32 %v3804_v37, %v3804_v37  ;;  %v2625_v36 = vpop.f32.mrf.mxu1  ;;  %v4195_v40 = vsel %vm3932_vm7, %v4131_v8, 0.0 }
 0x306   : > { %v5122_v12 = vpop.eup %5121  ;;  %v2890_v48 = vadd.f32 1.0, %v5120_v52  ;;  %v3999_v22 = vadd.f32 %v3998_v51, %v3997_v34  ;;  %v4653_v15 = vmul.f32 -1.442695, %v2624_v7  ;;  %v4799_v33 = vpop.f32.mrf.mxu0  ;;  %4870 = vmatmul.mubr.msk.f32.gmra.mxu0 %vm454_vm0, %v3205_v19 }
 0x307   : > { %3920 = vst.msk [vmem:[%s6974_s15 + $0x1a0] sm:$0xff] %vm454_vm0, %v5122_v12  ;;  %v4194_v45 = vsel %vm3932_vm7, %v4130_v56, 0.0  ;;  %v3501_v0 = vadd.f32 %v4799_v33, %v7356_v1  ;;  %v2628_v60 = vpop.f32.mrf.mxu1  ;;  %vm3078_vm9 = vcmp.lt.f32.partialorder %v5122_v12, 0.1  ;;  %v5231_v56 = vld [vmem:[%s5335_s25 + $0x1b0] sm:$0xff] }
 0x308   : > { %5135 = vrcp.f32 %v2890_v48  ;;  %v4196_v10 = vadd.f32 %v4195_v40, %v4194_v45  ;;  %v2629_v41 = vadd.f32 %v2628_v60, %v2244_v18  ;;  %v3495_v46 = vpop.f32.mrf.mxu0  ;;  %v3142_v39 = vsel %vm3078_vm9, 0.0, %v5122_v12  ;;  %v5232_v40 = vld [vmem:[%s5335_s25 + $0x1b8] sm:$0xff] }
 0x309   : > { %v5124_v4 = vpop.eup %5123  ;;  %5137 = vpow2.f32 %v4653_v15  ;;  %v3807_v20 = vmax.f32 %v3501_v0, 0.0  ;;  %v3496_v47 = vadd.f32 %v7356_v1, %v3495_v46  ;;  %v2630_v50 = vpop.f32.mrf.mxu1  ;;  %v3206_v30 = vmul.f32 %v5228_v58, %v3142_v39 }
 0x30a   : > { %v5126_v9 = vpop.eup %5125  ;;  %v2891_v2 = vadd.f32 1.0, %v5124_v4  ;;  %v4654_v6 = vmul.f32 -1.442695, %v2629_v41 }
 0x30b   : > { %3921 = vst.msk [vmem:[%s6974_s15 + $0x1a8] sm:$0xff] %vm454_vm0, %v5126_v9  ;;  %v3806_v63 = vmax.f32 %v3496_v47, 0.0  ;;  %4872 = vmatprep.mubr.msk.f32.mxu0 %vm454_vm0, %v3206_v30  ;;  %v2633_v13 = vpop.f32.mrf.mxu1  ;;  %vm3079_vm10 = vcmp.lt.f32.partialorder %v5126_v9, 0.1  ;;  %v4133_v28 = vmul.f32 %v3807_v20, %v3807_v20  ;;  %v4002_v59 = vsel %vm3932_vm7, %v3807_v20, 0.0  ;;  %v5233_v30 = vld [vmem:[%s5335_s25 + $0x1c0] sm:$0xff] }
 0x30c   : > { %3936 = vst.msk [vmem:[%s7369_s23 + $0x18] sm:$0xff] %vm3932_vm7, %v3807_v20  ;;  %5139 = vrcp.f32 %v2891_v2  ;;  %v2634_v35 = vadd.f32 %v2633_v13, %v2249_v57  ;;  %v3143_v42 = vsel %vm3079_vm10, 0.0, %v5126_v9 }
 0x30d   : > { %v5128_v49 = vpop.eup %5127  ;;  %5141 = vpow2.f32 %v4654_v6  ;;  %3935 = vst.msk [vmem:[%s7369_s23 + $0x10] sm:$0xff] %vm3932_vm7, %v3806_v63  ;;  %v4000_v29 = vsel %vm3932_vm7, %v3806_v63, 0.0  ;;  %v4132_v24 = vmul.f32 %v3806_v63, %v3806_v63  ;;  %v2635_v3 = vpop.f32.mrf.mxu1  ;;  %v3207_v5 = vmul.f32 %v5230_v11, %v3143_v42  ;;  %v5234_v42 = vld [vmem:[%s5335_s25 + $0x1c8] sm:$0xff] }
 0x30e   : > { %v5130_v62 = vpop.eup %5129  ;;  %v2892_v27 = vadd.f32 1.0, %v5128_v49  ;;  %v4001_v53 = vadd.f32 %v4000_v29, %v3999_v22  ;;  %v4655_v54 = vmul.f32 -1.442695, %v2634_v35  ;;  %v4199_v44 = vsel %vm3932_vm7, %v4133_v28, 0.0 }
 0x30f   : > { %3922 = vst.msk [vmem:[%s6974_s15 + $0x1b0] sm:$0xff] %vm454_vm0, %v5130_v62  ;;  %v4197_v16 = vsel %vm3932_vm7, %v4132_v24, 0.0  ;;  %v4802_v32 = vpop.f32.mrf.mxu0  ;;  %v2638_v25 = vpop.f32.mrf.mxu1  ;;  %vm3080_vm11 = vcmp.lt.f32.partialorder %v5130_v62, 0.1  ;;  %4873 = vmatmul.mubr.msk.f32.gmra.mxu0 %vm454_vm0, %v3207_v5 }
 0x310   : > { %5143 = vrcp.f32 %v2892_v27  ;;  %v4198_v21 = vadd.f32 %v4197_v16, %v4196_v10  ;;  %v3511_v31 = vadd.f32 %v4802_v32, %v7356_v1  ;;  %v2639_v14 = vadd.f32 %v2638_v25, %v2254_v23  ;;  %v5235_v25 = vld [vmem:[%s5335_s25 + $0x1d0] sm:$0xff] }
 0x311   : > { %v5132_v17 = vpop.eup %5131  ;;  %5145 = vpow2.f32 %v4655_v54  ;;  %v3505_v38 = vpop.f32.mrf.mxu0  ;;  %v4003_v8 = vadd.f32 %v4002_v59, %v4001_v53  ;;  %v3144_v61 = vsel %vm3080_vm11, 0.0, %v5130_v62 }
 0x312   : > { %v2640_v37 = vpop.f32.mrf.mxu1  ;;  %v5134_v18 = vpop.eup %5133  ;;  %v2893_v7 = vadd.f32 1.0, %v5132_v17  ;;  %v3809_v55 = vmax.f32 %v3511_v31, 0.0  ;;  %v4656_v52 = vmul.f32 -1.442695, %v2639_v14  ;;  %v3506_v51 = vadd.f32 %v7356_v1, %v3505_v38 }
 0x313   : > { %3923 = vst.msk [vmem:[%s6974_s15 + $0x1b8] sm:$0xff] %vm454_vm0, %v5134_v18  ;;  %v4200_v34 = vadd.f32 %v4199_v44, %v4198_v21  ;;  %v3208_v36 = vmul.f32 %v5231_v56, %v3144_v61  ;;  %vm3081_vm12 = vcmp.lt.f32.partialorder %v5134_v18, 0.1 }
 0x314   : > { %5147 = vrcp.f32 %v2893_v7  ;;  %3938 = vst.msk [vmem:[%s7369_s23 + $0x28] sm:$0xff] %vm3932_vm7, %v3809_v55  ;;  %v3808_v12 = vmax.f32 %v3506_v51, 0.0  ;;  %v3145_v22 = vsel %vm3081_vm12, 0.0, %v5134_v18  ;;  %v4135_v33 = vmul.f32 %v3809_v55, %v3809_v55 }
 0x315   : > { %v5136_v48 = vpop.eup %5135  ;;  %5149 = vpow2.f32 %v4656_v52  ;;  %4875 = vmatprep.mubr.msk.f32.mxu0 %vm454_vm0, %v3208_v36  ;;  %v3209_v45 = vmul.f32 %v5232_v40, %v3145_v22  ;;  %v4006_v41 = vsel %vm3932_vm7, %v3809_v55, 0.0 }
 0x316   : > { %v5138_v15 = vpop.eup %5137  ;;  %3924 = vst.msk [vmem:[%s6974_s15 + $0x1c0] sm:$0xff] %vm454_vm0, %v5136_v48  ;;  %v4004_v26 = vsel %vm3932_vm7, %v3808_v12, 0.0  ;;  %v4134_v19 = vmul.f32 %v3808_v12, %v3808_v12  ;;  %vm3082_vm13 = vcmp.lt.f32.partialorder %v5136_v48, 0.1  ;;  %v4203_v57 = vsel %vm3932_vm7, %v4135_v33, 0.0 }
 0x317   : > { %3937 = vst.msk [vmem:[%s7369_s23 + $0x20] sm:$0xff] %vm3932_vm7, %v3808_v12  ;;  %v2894_v0 = vadd.f32 1.0, %v5138_v15  ;;  %v4005_v60 = vadd.f32 %v4004_v26, %v4003_v8  ;;  %v4805_v10 = vpop.f32.mrf.mxu0  ;;  %4876 = vmatmul.mubr.msk.f32.gmra.mxu0 %vm454_vm0, %v3209_v45  ;;  %v3146_v4 = vsel %vm3082_vm13, 0.0, %v5136_v48  ;;  %v5236_v48 = vld [vmem:[%s5335_s25 + $0x1d8] sm:$0xff] }
 0x318   : > { %v4201_v46 = vsel %vm3932_vm7, %v4134_v19, 0.0  ;;  %v3521_v39 = vadd.f32 %v4805_v10, %v7356_v1  ;;  %v3210_v9 = vmul.f32 %v5233_v30, %v3146_v4 }
 0x319   : > { %v5140_v20 = vpop.eup %5139  ;;  %5151 = vrcp.f32 %v2894_v0  ;;  %v4202_v47 = vadd.f32 %v4201_v46, %v4200_v34  ;;  %v3515_v50 = vpop.f32.mrf.mxu0  ;;  %v4007_v58 = vadd.f32 %v4006_v41, %v4005_v60  ;;  %v5237_v46 = vld [vmem:[%s5335_s25 + $0x1e0] sm:$0xff] }
 0x31a   : > { %v5142_v43 = vpop.eup %5141  ;;  %3925 = vst.msk [vmem:[%s6974_s15 + $0x1c8] sm:$0xff] %vm454_vm0, %v5140_v20  ;;  %v3811_v2 = vmax.f32 %v3521_v39, 0.0  ;;  %v3516_v6 = vadd.f32 %v7356_v1, %v3515_v50  ;;  %vm3083_vm14 = vcmp.lt.f32.partialorder %v5140_v20, 0.1  ;;  %4878 = vmatprep.mubr.msk.f32.mxu0 %vm454_vm0, %v3210_v9 }
 0x31b   : > { %v2895_v63 = vadd.f32 1.0, %v5142_v43  ;;  %v4204_v13 = vadd.f32 %v4203_v57, %v4202_v47  ;;  %v3147_v23 = vsel %vm3083_vm14, 0.0, %v5140_v20  ;;  %v5238_v43 = vld [vmem:[%s5335_s25 + $0x1e8] sm:$0xff] }
 0x31c   : > { %3940 = vst.msk [vmem:[%s7369_s23 + $0x38] sm:$0xff] %vm3932_vm7, %v3811_v2  ;;  %v3810_v35 = vmax.f32 %v3516_v6, 0.0  ;;  %v3211_v49 = vmul.f32 %v5234_v42, %v3147_v23  ;;  %v4137_v24 = vmul.f32 %v3811_v2, %v3811_v2  ;;  %v4010_v59 = vsel %vm3932_vm7, %v3811_v2, 0.0 }
 0x31d   : > { %v5144_v28 = vpop.eup %5143  ;;  %5153 = vrcp.f32 %v2895_v63 }
 0x31e   : > { %v5146_v29 = vpop.eup %5145  ;;  %3926 = vst.msk [vmem:[%s6974_s15 + $0x1d0] sm:$0xff] %vm454_vm0, %v5144_v28  ;;  %v4008_v3 = vsel %vm3932_vm7, %v3810_v35, 0.0  ;;  %v4136_v62 = vmul.f32 %v3810_v35, %v3810_v35  ;;  %v4808_v27 = vpop.f32.mrf.mxu0  ;;  %4879 = vmatmul.mubr.msk.f32.gmra.mxu0 %vm454_vm0, %v3211_v49  ;;  %vm3084_vm15 = vcmp.lt.f32.partialorder %v5144_v28, 0.1  ;;  %v4207_v61 = vsel %vm3932_vm7, %v4137_v24, 0.0 }
 0x31f   : > { %3939 = vst.msk [vmem:[%s7369_s23 + $0x30] sm:$0xff] %vm3932_vm7, %v3810_v35  ;;  %v2896_v53 = vadd.f32 1.0, %v5146_v29  ;;  %v4009_v54 = vadd.f32 %v4008_v3, %v4007_v58  ;;  %v3531_v11 = vadd.f32 %v4808_v27, %v7356_v1  ;;  %v3148_v5 = vsel %vm3084_vm15, 0.0, %v5144_v28  ;;  %v5239_v3 = vld [vmem:[%s5335_s25 + $0x1f0] sm:$0xff] }
 0x320   : > { %v4205_v16 = vsel %vm3932_vm7, %v4136_v62, 0.0  ;;  %v3525_v32 = vpop.f32.mrf.mxu0  ;;  %v3212_v21 = vmul.f32 %v5235_v25, %v3148_v5 }
 0x321   : > { %v5148_v31 = vpop.eup %5147  ;;  %5155 = vrcp.f32 %v2896_v53  ;;  %v4206_v14 = vadd.f32 %v4205_v16, %v4204_v13  ;;  %v3813_v17 = vmax.f32 %v3531_v11, 0.0  ;;  %v3526_v44 = vadd.f32 %v7356_v1, %v3525_v32  ;;  %v5240_v16 = vld [vmem:[%s5335_s25 + $0x1f8] sm:$0xff] }
 0x322   : > { %v5150_v38 = vpop.eup %5149  ;;  %3927 = vst.msk [vmem:[%s6974_s15 + $0x1d8] sm:$0xff] %vm454_vm0, %v5148_v31  ;;  %v4011_v8 = vadd.f32 %v4010_v59, %v4009_v54  ;;  %4881 = vmatprep.mubr.msk.f32.mxu0 %vm454_vm0, %v3212_v21  ;;  %vm3085_vm1 = vcmp.lt.f32.partialorder %v5148_v31, 0.1 }
 0x323   : > { %v2897_v37 = vadd.f32 1.0, %v5150_v38  ;;  %3942 = vst.msk [vmem:[%s7369_s23 + $0x48] sm:$0xff] %vm3932_vm7, %v3813_v17  ;;  %v3812_v18 = vmax.f32 %v3526_v44, 0.0  ;;  %v4208_v7 = vadd.f32 %v4207_v61, %v4206_v14  ;;  %v3149_v55 = vsel %vm3085_vm1, 0.0, %v5148_v31 }
 0x324   : > { %v4139_v52 = vmul.f32 %v3813_v17, %v3813_v17  ;;  %v3213_v22 = vmul.f32 %v5236_v48, %v3149_v55  ;;  %v4014_v15 = vsel %vm3932_vm7, %v3813_v17, 0.0 }
 0x325   : > { %5157 = vrcp.f32 %v2897_v37  ;;  %3941 = vst.msk [vmem:[%s7369_s23 + $0x40] sm:$0xff] %vm3932_vm7, %v3812_v18  ;;  %v4012_v51 = vsel %vm3932_vm7, %v3812_v18, 0.0  ;;  %v4138_v34 = vmul.f32 %v3812_v18, %v3812_v18 }
 0x326   : > { %v5152_v56 = vpop.eup %5151  ;;  %v4013_v36 = vadd.f32 %v4012_v51, %v4011_v8  ;;  %v4811_v12 = vpop.f32.mrf.mxu0  ;;  %4882 = vmatmul.mubr.msk.f32.gmra.mxu0 %vm454_vm0, %v3213_v22  ;;  %v4211_v60 = vsel %vm3932_vm7, %v4139_v52, 0.0 }
 0x327   : > { %3928 = vst.msk [vmem:[%s6974_s15 + $0x1e0] sm:$0xff] %vm454_vm0, %v5152_v56  ;;  %v4209_v33 = vsel %vm3932_vm7, %v4138_v34, 0.0  ;;  %v3541_v26 = vadd.f32 %v4811_v12, %v7356_v1  ;;  %vm3086_vm2 = vcmp.lt.f32.partialorder %v5152_v56, 0.1 }
 0x328   : > { %v4210_v19 = vadd.f32 %v4209_v33, %v4208_v7  ;;  %v3535_v40 = vpop.f32.mrf.mxu0  ;;  %v4015_v45 = vadd.f32 %v4014_v15, %v4013_v36  ;;  %v3150_v0 = vsel %vm3086_vm2, 0.0, %v5152_v56 }
 0x329   : > { %v3815_v10 = vmax.f32 %v3541_v26, 0.0  ;;  %v3536_v41 = vadd.f32 %v7356_v1, %v3535_v40  ;;  %v3214_v39 = vmul.f32 %v5237_v46, %v3150_v0 }
 0x32a   : > { %v5154_v4 = vpop.eup %5153  ;;  %v4212_v20 = vadd.f32 %v4211_v60, %v4210_v19 }
 0x32b   : > { %3929 = vst.msk [vmem:[%s6974_s15 + $0x1e8] sm:$0xff] %vm454_vm0, %v5154_v4  ;;  %v3814_v47 = vmax.f32 %v3536_v41, 0.0  ;;  %4884 = vmatprep.mubr.msk.f32.mxu0 %vm454_vm0, %v3214_v39  ;;  %vm3087_vm3 = vcmp.lt.f32.partialorder %v5154_v4, 0.1  ;;  %v4141_v58 = vmul.f32 %v3815_v10, %v3815_v10  ;;  %v4018_v63 = vsel %vm3932_vm7, %v3815_v10, 0.0 }
 0x32c   : > { %3944 = vst.msk [vmem:[%s7369_s23 + $0x58] sm:$0xff] %vm3932_vm7, %v3815_v10  ;;  %v3151_v50 = vsel %vm3087_vm3, 0.0, %v5154_v4 }
 0x32d   : > { %3943 = vst.msk [vmem:[%s7369_s23 + $0x50] sm:$0xff] %vm3932_vm7, %v3814_v47  ;;  %v4016_v30 = vsel %vm3932_vm7, %v3814_v47, 0.0  ;;  %v4140_v9 = vmul.f32 %v3814_v47, %v3814_v47  ;;  %v3215_v57 = vmul.f32 %v5238_v43, %v3151_v50  ;;  %v4215_v29 = vsel %vm3932_vm7, %v4141_v58, 0.0 }
 0x32e   : > { %v5156_v2 = vpop.eup %5155  ;;  %v4017_v6 = vadd.f32 %v4016_v30, %v4015_v45 }
 0x32f   : > { %3930 = vst.msk [vmem:[%s6974_s15 + $0x1f0] sm:$0xff] %vm454_vm0, %v5156_v2  ;;  %v4213_v13 = vsel %vm3932_vm7, %v4140_v9, 0.0  ;;  %v4814_v23 = vpop.f32.mrf.mxu0  ;;  %4885 = vmatmul.mubr.msk.f32.gmra.mxu0 %vm454_vm0, %v3215_v57  ;;  %vm3088_vm4 = vcmp.lt.f32.partialorder %v5156_v2, 0.1 }
 0x330   : > { %v4214_v35 = vadd.f32 %v4213_v13, %v4212_v20  ;;  %v3551_v42 = vadd.f32 %v4814_v23, %v7356_v1  ;;  %v4019_v49 = vadd.f32 %v4018_v63, %v4017_v6  ;;  %v3152_v28 = vsel %vm3088_vm4, 0.0, %v5156_v2 }
 0x331   : > { %v3545_v24 = vpop.f32.mrf.mxu0  ;;  %v3216_v62 = vmul.f32 %v5239_v3, %v3152_v28 }
 0x332   : > { %v5158_v27 = vpop.eup %5157  ;;  %v3817_v53 = vmax.f32 %v3551_v42, 0.0  ;;  %v3546_v54 = vadd.f32 %v7356_v1, %v3545_v24  ;;  %v4216_v11 = vadd.f32 %v4215_v29, %v4214_v35 }
 0x333   : > { %3931 = vst.msk [vmem:[%s6974_s15 + $0x1f8] sm:$0xff] %vm454_vm0, %v5158_v27  ;;  %4887 = vmatprep.mubr.msk.f32.mxu0 %vm454_vm0, %v3216_v62  ;;  %vm3089_vm5 = vcmp.lt.f32.partialorder %v5158_v27, 0.1 }
 0x334   : > { %3946 = vst.msk [vmem:[%s7369_s23 + $0x68] sm:$0xff] %vm3932_vm7, %v3817_v53  ;;  %v3816_v5 = vmax.f32 %v3546_v54, 0.0  ;;  %v3153_v59 = vsel %vm3089_vm5, 0.0, %v5158_v27  ;;  %v4143_v25 = vmul.f32 %v3817_v53, %v3817_v53  ;;  %v4022_v44 = vsel %vm3932_vm7, %v3817_v53, 0.0 }
 0x335   : > { %v3217_v32 = vmul.f32 %v5240_v16, %v3153_v59 }
 0x336   : > { %3945 = vst.msk [vmem:[%s7369_s23 + $0x60] sm:$0xff] %vm3932_vm7, %v3816_v5  ;;  %v4020_v21 = vsel %vm3932_vm7, %v3816_v5, 0.0  ;;  %v4142_v31 = vmul.f32 %v3816_v5, %v3816_v5  ;;  %v4219_v7 = vsel %vm3932_vm7, %v4143_v25, 0.0 }
 0x337   : > { %v4021_v14 = vadd.f32 %v4020_v21, %v4019_v49  ;;  %v4817_v17 = vpop.f32.mrf.mxu0  ;;  %4888 = vmatmul.mubr.msk.f32.gmra.mxu0 %vm454_vm0, %v3217_v32  ;;  %vm4327_vm0 = vcmask 1040384  }
 0x338   : > { %v4217_v38 = vsel %vm3932_vm7, %v4142_v31, 0.0  ;;  %v3561_v8 = vadd.f32 %v4817_v17, %v7356_v1 }
 0x339   : > { %v4218_v37 = vadd.f32 %v4217_v38, %v4216_v11  ;;  %v3555_v61 = vpop.f32.mrf.mxu0  ;;  %v4023_v18 = vadd.f32 %v4022_v44, %v4021_v14 }
 0x33a   : > { %v3819_v55 = vmax.f32 %v3561_v8, 0.0  ;;  %v3556_v52 = vadd.f32 %v7356_v1, %v3555_v61 }
 0x33b   : > { %v4220_v51 = vadd.f32 %v4219_v7, %v4218_v37 }
 0x33c   : > { %3948 = vst.msk [vmem:[%s7369_s23 + $0x78] sm:$0xff] %vm3932_vm7, %v3819_v55  ;;  %v3818_v34 = vmax.f32 %v3556_v52, 0.0  ;;  %v4145_v56 = vmul.f32 %v3819_v55, %v3819_v55  ;;  %v4026_v33 = vsel %vm3932_vm7, %v3819_v55, 0.0 }
 0x33e   : > { %3947 = vst.msk [vmem:[%s7369_s23 + $0x70] sm:$0xff] %vm3932_vm7, %v3818_v34  ;;  %v4024_v36 = vsel %vm3932_vm7, %v3818_v34, 0.0  ;;  %v4144_v12 = vmul.f32 %v3818_v34, %v3818_v34  ;;  %v4820_v48 = vpop.f32.mrf.mxu0  ;;  %v4223_v10 = vsel %vm3932_vm7, %v4145_v56, 0.0 }
 0x33f   : > { %v4025_v22 = vadd.f32 %v4024_v36, %v4023_v18  ;;  %v3571_v15 = vadd.f32 %v4820_v48, %v7356_v1 }
 0x340   : > { %v4221_v26 = vsel %vm3932_vm7, %v4144_v12, 0.0  ;;  %v3565_v19 = vpop.f32.mrf.mxu0 }
 0x341   : > { %v4222_v40 = vadd.f32 %v4221_v26, %v4220_v51  ;;  %v3821_v45 = vmax.f32 %v3571_v15, 0.0  ;;  %v3566_v0 = vadd.f32 %v7356_v1, %v3565_v19  ;;  %v4027_v60 = vadd.f32 %v4026_v33, %v4025_v22 }
 0x343   : > { %3950 = vst.msk [vmem:[%s7369_s23 + $0x88] sm:$0xff] %vm3932_vm7, %v3821_v45  ;;  %v3820_v41 = vmax.f32 %v3566_v0, 0.0  ;;  %v4224_v46 = vadd.f32 %v4223_v10, %v4222_v40  ;;  %v4147_v39 = vmul.f32 %v3821_v45, %v3821_v45  ;;  %v4030_v58 = vsel %vm3932_vm7, %v3821_v45, 0.0 }
 0x345   : > { %3949 = vst.msk [vmem:[%s7369_s23 + $0x80] sm:$0xff] %vm3932_vm7, %v3820_v41  ;;  %v4028_v4 = vsel %vm3932_vm7, %v3820_v41, 0.0  ;;  %v4146_v20 = vmul.f32 %v3820_v41, %v3820_v41  ;;  %v4227_v6 = vsel %vm3932_vm7, %v4147_v39, 0.0 }
 0x346   : > { %v4029_v47 = vadd.f32 %v4028_v4, %v4027_v60  ;;  %v4823_v50 = vpop.f32.mrf.mxu0 }
 0x347   : > { %v4225_v30 = vsel %vm3932_vm7, %v4146_v20, 0.0  ;;  %v3581_v9 = vadd.f32 %v4823_v50, %v7356_v1 }
 0x348   : > { %v4226_v43 = vadd.f32 %v4225_v30, %v4224_v46  ;;  %v3575_v57 = vpop.f32.mrf.mxu0  ;;  %v4031_v2 = vadd.f32 %v4030_v58, %v4029_v47 }
 0x349   : > { %v3823_v63 = vmax.f32 %v3581_v9, 0.0  ;;  %v3576_v13 = vadd.f32 %v7356_v1, %v3575_v57 }
 0x34a   : > { %v4228_v23 = vadd.f32 %v4227_v6, %v4226_v43 }
 0x34b   : > { %3952 = vst.msk [vmem:[%s7369_s23 + $0x98] sm:$0xff] %vm3932_vm7, %v3823_v63  ;;  %v3822_v35 = vmax.f32 %v3576_v13, 0.0  ;;  %v4149_v42 = vmul.f32 %v3823_v63, %v3823_v63  ;;  %v4034_v24 = vsel %vm3932_vm7, %v3823_v63, 0.0 }
 0x34d   : > { %3951 = vst.msk [vmem:[%s7369_s23 + $0x90] sm:$0xff] %vm3932_vm7, %v3822_v35  ;;  %v4032_v49 = vsel %vm3932_vm7, %v3822_v35, 0.0  ;;  %v4148_v28 = vmul.f32 %v3822_v35, %v3822_v35  ;;  %v4231_v11 = vsel %vm3932_vm7, %v4149_v42, 0.0 }
 0x34e   : > { %v4033_v29 = vadd.f32 %v4032_v49, %v4031_v2 }
 0x34f   : > { %v4229_v3 = vsel %vm3932_vm7, %v4148_v28, 0.0  ;;  %v4826_v62 = vpop.f32.mrf.mxu0 }
 0x350   : > { %v4230_v27 = vadd.f32 %v4229_v3, %v4228_v23  ;;  %v3591_v53 = vadd.f32 %v4826_v62, %v7356_v1  ;;  %v4035_v54 = vadd.f32 %v4034_v24, %v4033_v29 }
 0x351   : > { %v3585_v5 = vpop.f32.mrf.mxu0 }
 0x352   : > { %v3825_v59 = vmax.f32 %v3591_v53, 0.0  ;;  %v3586_v16 = vadd.f32 %v7356_v1, %v3585_v5  ;;  %v4232_v32 = vadd.f32 %v4231_v11, %v4230_v27 }
 0x354   : > { %3954 = vst.msk [vmem:[%s7369_s23 + $0xa8] sm:$0xff] %vm3932_vm7, %v3825_v59  ;;  %v3824_v25 = vmax.f32 %v3586_v16, 0.0  ;;  %v4151_v21 = vmul.f32 %v3825_v59, %v3825_v59  ;;  %v4038_v38 = vsel %vm3932_vm7, %v3825_v59, 0.0 }
 0x356   : > { %3953 = vst.msk [vmem:[%s7369_s23 + $0xa0] sm:$0xff] %vm3932_vm7, %v3824_v25  ;;  %v4036_v31 = vsel %vm3932_vm7, %v3824_v25, 0.0  ;;  %v4150_v14 = vmul.f32 %v3824_v25, %v3824_v25  ;;  %v4235_v55 = vsel %vm3932_vm7, %v4151_v21, 0.0 }
 0x357   : > { %v4037_v17 = vadd.f32 %v4036_v31, %v4035_v54  ;;  %v4829_v44 = vpop.f32.mrf.mxu0 }
 0x358   : > { %v4233_v8 = vsel %vm3932_vm7, %v4150_v14, 0.0  ;;  %v3601_v37 = vadd.f32 %v4829_v44, %v7356_v1 }
 0x359   : > { %v4234_v61 = vadd.f32 %v4233_v8, %v4232_v32  ;;  %v3595_v18 = vpop.f32.mrf.mxu0  ;;  %v4039_v7 = vadd.f32 %v4038_v38, %v4037_v17 }
 0x35a   : > { %v3827_v52 = vmax.f32 %v3601_v37, 0.0  ;;  %v3596_v51 = vadd.f32 %v7356_v1, %v3595_v18 }
 0x35b   : > { %v4236_v34 = vadd.f32 %v4235_v55, %v4234_v61 }
 0x35c   : > { %3956 = vst.msk [vmem:[%s7369_s23 + $0xb8] sm:$0xff] %vm3932_vm7, %v3827_v52  ;;  %v3826_v56 = vmax.f32 %v3596_v51, 0.0  ;;  %v4153_v36 = vmul.f32 %v3827_v52, %v3827_v52  ;;  %v4042_v26 = vsel %vm3932_vm7, %v3827_v52, 0.0 }
 0x35e   : > { %3955 = vst.msk [vmem:[%s7369_s23 + $0xb0] sm:$0xff] %vm3932_vm7, %v3826_v56  ;;  %v4040_v12 = vsel %vm3932_vm7, %v3826_v56, 0.0  ;;  %v4152_v48 = vmul.f32 %v3826_v56, %v3826_v56  ;;  %v4832_v22 = vpop.f32.mrf.mxu0  ;;  %v4239_v41 = vsel %vm3932_vm7, %v4153_v36, 0.0 }
 0x35f   : > { %v4041_v15 = vadd.f32 %v4040_v12, %v4039_v7  ;;  %v3611_v33 = vadd.f32 %v4832_v22, %v7356_v1 }
 0x360   : > { %v4237_v19 = vsel %vm3932_vm7, %v4152_v48, 0.0  ;;  %v3605_v40 = vpop.f32.mrf.mxu0 }
 0x361   : > { %v4238_v45 = vadd.f32 %v4237_v19, %v4236_v34  ;;  %v3829_v0 = vmax.f32 %v3611_v33, 0.0  ;;  %v3606_v60 = vadd.f32 %v7356_v1, %v3605_v40  ;;  %v4043_v10 = vadd.f32 %v4042_v26, %v4041_v15 }
 0x363   : > { %3958 = vst.msk [vmem:[%s7369_s23 + $0xc8] sm:$0xff] %vm3932_vm7, %v3829_v0  ;;  %v3828_v46 = vmax.f32 %v3606_v60, 0.0  ;;  %v4240_v39 = vadd.f32 %v4239_v41, %v4238_v45  ;;  %v4155_v4 = vmul.f32 %v3829_v0, %v3829_v0  ;;  %v4046_v30 = vsel %vm3932_vm7, %v3829_v0, 0.0 }
 0x365   : > { %3957 = vst.msk [vmem:[%s7369_s23 + $0xc0] sm:$0xff] %vm3932_vm7, %v3828_v46  ;;  %v4044_v20 = vsel %vm3932_vm7, %v3828_v46, 0.0  ;;  %v4154_v47 = vmul.f32 %v3828_v46, %v3828_v46  ;;  %v4243_v63 = vsel %vm3932_vm7, %v4155_v4, 0.0 }
 0x366   : > { %v4045_v50 = vadd.f32 %v4044_v20, %v4043_v10  ;;  %v4835_v58 = vpop.f32.mrf.mxu0 }
 0x367   : > { %v4241_v9 = vsel %vm3932_vm7, %v4154_v47, 0.0  ;;  %v3621_v43 = vadd.f32 %v4835_v58, %v7356_v1 }
 0x368   : > { %v4242_v57 = vadd.f32 %v4241_v9, %v4240_v39  ;;  %v3615_v2 = vpop.f32.mrf.mxu0  ;;  %v4047_v6 = vadd.f32 %v4046_v30, %v4045_v50 }
 0x369   : > { %v3831_v13 = vmax.f32 %v3621_v43, 0.0  ;;  %v3616_v23 = vadd.f32 %v7356_v1, %v3615_v2 }
 0x36a   : > { %v4244_v35 = vadd.f32 %v4243_v63, %v4242_v57 }
 0x36b   : > { %3960 = vst.msk [vmem:[%s7369_s23 + $0xd8] sm:$0xff] %vm3932_vm7, %v3831_v13  ;;  %v3830_v42 = vmax.f32 %v3616_v23, 0.0  ;;  %v4157_v49 = vmul.f32 %v3831_v13, %v3831_v13  ;;  %v4050_v3 = vsel %vm3932_vm7, %v3831_v13, 0.0 }
 0x36d   : > { %3959 = vst.msk [vmem:[%s7369_s23 + $0xd0] sm:$0xff] %vm3932_vm7, %v3830_v42  ;;  %v4048_v28 = vsel %vm3932_vm7, %v3830_v42, 0.0  ;;  %v4156_v29 = vmul.f32 %v3830_v42, %v3830_v42  ;;  %v4247_v5 = vsel %vm3932_vm7, %v4157_v49, 0.0 }
 0x36e   : > { %v4049_v24 = vadd.f32 %v4048_v28, %v4047_v6 }
 0x36f   : > { %v4245_v62 = vsel %vm3932_vm7, %v4156_v29, 0.0  ;;  %v4838_v27 = vpop.f32.mrf.mxu0 }
 0x370   : > { %v4246_v53 = vadd.f32 %v4245_v62, %v4244_v35  ;;  %v3631_v54 = vadd.f32 %v4838_v27, %v7356_v1  ;;  %v4051_v11 = vadd.f32 %v4050_v3, %v4049_v24 }
 0x371   : > { %v3625_v59 = vpop.f32.mrf.mxu0 }
 0x372   : > { %v3833_v16 = vmax.f32 %v3631_v54, 0.0  ;;  %v3626_v32 = vadd.f32 %v7356_v1, %v3625_v59  ;;  %v4248_v25 = vadd.f32 %v4247_v5, %v4246_v53 }
 0x374   : > { %3962 = vst.msk [vmem:[%s7369_s23 + $0xe8] sm:$0xff] %vm3932_vm7, %v3833_v16  ;;  %v3832_v21 = vmax.f32 %v3626_v32, 0.0  ;;  %v4159_v31 = vmul.f32 %v3833_v16, %v3833_v16  ;;  %v4054_v8 = vsel %vm3932_vm7, %v3833_v16, 0.0 }
 0x376   : > { %3961 = vst.msk [vmem:[%s7369_s23 + $0xe0] sm:$0xff] %vm3932_vm7, %v3832_v21  ;;  %v4052_v14 = vsel %vm3932_vm7, %v3832_v21, 0.0  ;;  %v4158_v17 = vmul.f32 %v3832_v21, %v3832_v21  ;;  %v4251_v52 = vsel %vm3932_vm7, %v4159_v31, 0.0 }
 0x377   : > { %v4053_v44 = vadd.f32 %v4052_v14, %v4051_v11  ;;  %v4841_v38 = vpop.f32.mrf.mxu0 }
 0x378   : > { %v4249_v37 = vsel %vm3932_vm7, %v4158_v17, 0.0  ;;  %v3641_v61 = vadd.f32 %v4841_v38, %v7356_v1 }
 0x379   : > { %v4250_v18 = vadd.f32 %v4249_v37, %v4248_v25  ;;  %v3635_v7 = vpop.f32.mrf.mxu0  ;;  %v4055_v55 = vadd.f32 %v4054_v8, %v4053_v44 }
 0x37a   : > { %v3835_v51 = vmax.f32 %v3641_v61, 0.0  ;;  %v3636_v34 = vadd.f32 %v7356_v1, %v3635_v7 }
 0x37b   : > { %v4252_v56 = vadd.f32 %v4251_v52, %v4250_v18 }
 0x37c   : > { %3964 = vst.msk [vmem:[%s7369_s23 + $0xf8] sm:$0xff] %vm3932_vm7, %v3835_v51  ;;  %v3834_v36 = vmax.f32 %v3636_v34, 0.0  ;;  %v4161_v12 = vmul.f32 %v3835_v51, %v3835_v51  ;;  %v4058_v19 = vsel %vm3932_vm7, %v3835_v51, 0.0 }
 0x37e   : > { %3963 = vst.msk [vmem:[%s7369_s23 + $0xf0] sm:$0xff] %vm3932_vm7, %v3834_v36  ;;  %v4056_v48 = vsel %vm3932_vm7, %v3834_v36, 0.0  ;;  %v4160_v22 = vmul.f32 %v3834_v36, %v3834_v36  ;;  %v4844_v15 = vpop.f32.mrf.mxu0  ;;  %v4255_v46 = vsel %vm3932_vm7, %v4161_v12, 0.0 }
 0x37f   : > { %v4057_v33 = vadd.f32 %v4056_v48, %v4055_v55  ;;  %v3651_v26 = vadd.f32 %v4844_v15, %v7356_v1 }
 0x380   : > { %v4253_v40 = vsel %vm3932_vm7, %v4160_v22, 0.0  ;;  %v3645_v45 = vpop.f32.mrf.mxu0 }
 0x381   : > { %v4254_v0 = vadd.f32 %v4253_v40, %v4252_v56  ;;  %v3837_v60 = vmax.f32 %v3651_v26, 0.0  ;;  %v3646_v10 = vadd.f32 %v7356_v1, %v3645_v45  ;;  %v4059_v41 = vadd.f32 %v4058_v19, %v4057_v33 }
 0x383   : > { %3966 = vst.msk [vmem:[%s7369_s23 + $0x108] sm:$0xff] %vm3932_vm7, %v3837_v60  ;;  %v3836_v39 = vmax.f32 %v3646_v10, 0.0  ;;  %v4256_v4 = vadd.f32 %v4255_v46, %v4254_v0  ;;  %v4163_v20 = vmul.f32 %v3837_v60, %v3837_v60  ;;  %v4062_v9 = vsel %vm3932_vm7, %v3837_v60, 0.0  ;;  %v7651_v46 = vld [vmem:[%s7790_s6] ss:$0 sm:$0xff] }
 0x385   : > { %3965 = vst.msk [vmem:[%s7369_s23 + $0x100] sm:$0xff] %vm3932_vm7, %v3836_v39  ;;  %v4060_v47 = vsel %vm3932_vm7, %v3836_v39, 0.0  ;;  %v4162_v50 = vmul.f32 %v3836_v39, %v3836_v39  ;;  %v4259_v13 = vsel %vm3932_vm7, %v4163_v20, 0.0 }
 0x386   : > { %v4061_v58 = vadd.f32 %v4060_v47, %v4059_v41  ;;  %v4847_v30 = vpop.f32.mrf.mxu0 }
 0x387   : > { %v4257_v43 = vsel %vm3932_vm7, %v4162_v50, 0.0  ;;  %v3661_v57 = vadd.f32 %v4847_v30, %v7356_v1 }
 0x388   : > { %v4258_v2 = vadd.f32 %v4257_v43, %v4256_v4  ;;  %v3655_v6 = vpop.f32.mrf.mxu0  ;;  %v4063_v63 = vadd.f32 %v4062_v9, %v4061_v58 }
 0x389   : > { %v3839_v23 = vmax.f32 %v3661_v57, 0.0  ;;  %v3656_v35 = vadd.f32 %v7356_v1, %v3655_v6 }
 0x38a   : > { %v4260_v42 = vadd.f32 %v4259_v13, %v4258_v2 }
 0x38b   : > { %3968 = vst.msk [vmem:[%s7369_s23 + $0x118] sm:$0xff] %vm3932_vm7, %v3839_v23  ;;  %v3838_v49 = vmax.f32 %v3656_v35, 0.0  ;;  %v4066_v24 = vsel %vm3932_vm7, %v3839_v23, 0.0  ;;  %v4165_v36 = vmul.f32 %v3839_v23, %v3839_v23 }
 0x38d   : > { %3967 = vst.msk [vmem:[%s7369_s23 + $0x110] sm:$0xff] %vm3932_vm7, %v3838_v49  ;;  %v4064_v28 = vsel %vm3932_vm7, %v3838_v49, 0.0  ;;  %v4164_v61 = vmul.f32 %v3838_v49, %v3838_v49  ;;  %v4263_v33 = vsel %vm3932_vm7, %v4165_v36, 0.0 }
 0x38e   : > { %v4065_v29 = vadd.f32 %v4064_v28, %v4063_v63 }
 0x38f   : > { %v4850_v3 = vpop.f32.mrf.mxu0  ;;  %v4261_v34 = vsel %vm3932_vm7, %v4164_v61, 0.0 }
 0x390   : > { %v3671_v62 = vadd.f32 %v4850_v3, %v7356_v1  ;;  %v4067_v27 = vadd.f32 %v4066_v24, %v4065_v29  ;;  %v4262_v48 = vadd.f32 %v4261_v34, %v4260_v42 }
 0x391   : > { %v3665_v53 = vpop.f32.mrf.mxu0 }
 0x392   : > { %v3841_v54 = vmax.f32 %v3671_v62, 0.0  ;;  %v3666_v11 = vadd.f32 %v7356_v1, %v3665_v53  ;;  %v4264_v45 = vadd.f32 %v4263_v33, %v4262_v48 }
 0x394   : > { %3970 = vst.msk [vmem:[%s7369_s23 + $0x128] sm:$0xff] %vm3932_vm7, %v3841_v54  ;;  %v3840_v5 = vmax.f32 %v3666_v11, 0.0  ;;  %v4167_v60 = vmul.f32 %v3841_v54, %v3841_v54  ;;  %v4070_v20 = vsel %vm3932_vm7, %v3841_v54, 0.0 }
 0x396   : > { %3969 = vst.msk [vmem:[%s7369_s23 + $0x120] sm:$0xff] %vm3932_vm7, %v3840_v5  ;;  %v4166_v12 = vmul.f32 %v3840_v5, %v3840_v5  ;;  %v4068_v22 = vsel %vm3932_vm7, %v3840_v5, 0.0  ;;  %v4267_v58 = vsel %vm3932_vm7, %v4167_v60, 0.0 }
 0x397   : > { %v4853_v59 = vpop.f32.mrf.mxu0  ;;  %v4069_v40 = vadd.f32 %v4068_v22, %v4067_v27 }
 0x398   : > { %v3681_v16 = vadd.f32 %v4853_v59, %v7356_v1  ;;  %v4265_v26 = vsel %vm3932_vm7, %v4166_v12, 0.0 }
 0x399   : > { %v3675_v32 = vpop.f32.mrf.mxu0  ;;  %v4266_v4 = vadd.f32 %v4265_v26, %v4264_v45  ;;  %v4071_v50 = vadd.f32 %v4070_v20, %v4069_v40 }
 0x39a   : > { %v3843_v25 = vmax.f32 %v3681_v16, 0.0  ;;  %v3676_v21 = vadd.f32 %v7356_v1, %v3675_v32 }
 0x39b   : > { %v4268_v43 = vadd.f32 %v4267_v58, %v4266_v4 }
 0x39c   : > { %3972 = vst.msk [vmem:[%s7369_s23 + $0x138] sm:$0xff] %vm3932_vm7, %v3843_v25  ;;  %v3842_v31 = vmax.f32 %v3676_v21, 0.0  ;;  %v4169_v2 = vmul.f32 %v3843_v25, %v3843_v25  ;;  %v4074_v35 = vsel %vm3932_vm7, %v3843_v25, 0.0 }
 0x39e   : > { %3971 = vst.msk [vmem:[%s7369_s23 + $0x130] sm:$0xff] %vm3932_vm7, %v3842_v31  ;;  %v4856_v14 = vpop.f32.mrf.mxu0  ;;  %v4168_v10 = vmul.f32 %v3842_v31, %v3842_v31  ;;  %v4271_v24 = vsel %vm3932_vm7, %v4169_v2, 0.0 }
 0x39f   : > { %v3691_v17 = vadd.f32 %v4856_v14, %v7356_v1 }
 0x3a0   : > { %v3685_v44 = vpop.f32.mrf.mxu0  ;;  %v4269_v30 = vsel %vm3932_vm7, %v4168_v10, 0.0 }
 0x3a1   : > { %v7624_v38 = vmax.f32 %v3691_v17, 0.0  ;;  %v3686_v8 = vadd.f32 %v7356_v1, %v3685_v44  ;;  %v4270_v13 = vadd.f32 %v4269_v30, %v4268_v43 }
 0x3a3   : > { %3974 = vst.msk [vmem:[%s7369_s23 + $0x148] sm:$0xff] %vm3932_vm7, %v7624_v38  ;;  %v3844_v37 = vmax.f32 %v3686_v8, 0.0  ;;  %v4272_v53 = vadd.f32 %v4271_v24, %v4270_v13  ;;  %v4171_v54 = vmul.f32 %v7624_v38, %v7624_v38  ;;  %v4078_v32 = vsel %vm3932_vm7, %v7624_v38, 0.0 }
 0x3a5   : > { %3973 = vst.msk [vmem:[%s7369_s23 + $0x140] sm:$0xff] %vm3932_vm7, %v3844_v37  ;;  %v4170_v6 = vmul.f32 %v3844_v37, %v3844_v37  ;;  %v4076_v42 = vsel %vm3932_vm7, %v3844_v37, 0.0  ;;  %v4275_v44 = vsel %vm3932_vm7, %v4171_v54, 0.0 }
 0x3a6   : > { %v4859_v18 = vpop.f32.mrf.mxu0 }
 0x3a7   : > { %v3701_v7 = vadd.f32 %v4859_v18, %v7356_v1  ;;  %v4273_v3 = vsel %vm3932_vm7, %v4170_v6, 0.0 }
 0x3a8   : > { %v3695_v55 = vpop.f32.mrf.mxu0  ;;  %v4274_v59 = vadd.f32 %v4273_v3, %v4272_v53 }
 0x3a9   : > { %v7633_v52 = vmax.f32 %v3701_v7, 0.0  ;;  %v3696_v51 = vadd.f32 %v7356_v1, %v3695_v55 }
 0x3aa   : > { %v4276_v61 = vadd.f32 %v4275_v44, %v4274_v59 }
 0x3ab   : > { %3976 = vst.msk [vmem:[%s7369_s23 + $0x158] sm:$0xff] %vm3932_vm7, %v7633_v52  ;;  %v3846_v56 = vmax.f32 %v3696_v51, 0.0  ;;  %v4173_v7 = vmul.f32 %v7633_v52, %v7633_v52  ;;  %v4082_v51 = vsel %vm3932_vm7, %v7633_v52, 0.0 }
 0x3ad   : > { %3975 = vst.msk [vmem:[%s7369_s23 + $0x150] sm:$0xff] %vm3932_vm7, %v3846_v56  ;;  %v4172_v11 = vmul.f32 %v3846_v56, %v3846_v56  ;;  %v4080_v25 = vsel %vm3932_vm7, %v3846_v56, 0.0  ;;  %v4279_v36 = vsel %vm3932_vm7, %v4173_v7, 0.0 }
 0x3af   : > { %v4862_v15 = vpop.f32.mrf.mxu0  ;;  %v4277_v8 = vsel %vm3932_vm7, %v4172_v11, 0.0 }
 0x3b0   : > { %v3711_v19 = vadd.f32 %v4862_v15, %v7356_v1  ;;  %v4072_v1 = vsel %vm3932_vm7, %v3842_v31, 0.0  ;;  %v4278_v55 = vadd.f32 %v4277_v8, %v4276_v61 }
 0x3b1   : > { %v3705_v0 = vpop.f32.mrf.mxu0  ;;  %v4073_v9 = vadd.f32 %v4072_v1, %v4071_v50 }
 0x3b2   : > { %v7646_v41 = vmax.f32 %v3711_v19, 0.0  ;;  %v3706_v39 = vadd.f32 %v7651_v46, %v3705_v0  ;;  %v4280_v15 = vadd.f32 %v4279_v36, %v4278_v55 }
 0x3b3   : > { %v4075_v29 = vadd.f32 %v4074_v35, %v4073_v9 }
 0x3b4   : > { %3978 = vst.msk [vmem:[%s7369_s23 + $0x168] sm:$0xff] %vm3932_vm7, %v7646_v41  ;;  %v3848_v47 = vmax.f32 %v3706_v39, 0.0  ;;  %v4175_v26 = vmul.f32 %v7646_v41, %v7646_v41  ;;  %v4086_v60 = vsel %vm3932_vm7, %v7646_v41, 0.0 }
 0x3b5   : > { %v4077_v27 = vadd.f32 %v4076_v42, %v4075_v29 }
 0x3b6   : > { %3977 = vst.msk [vmem:[%s7369_s23 + $0x160] sm:$0xff] %vm3932_vm7, %v3848_v47  ;;  %v4174_v38 = vmul.f32 %v3848_v47, %v3848_v47  ;;  %v4084_v34 = vsel %vm3932_vm7, %v3848_v47, 0.0  ;;  %v4283_v20 = vsel %vm3932_vm7, %v4175_v26, 0.0 }
 0x3b7   : > { %v4865_v57 = vpop.f32.mrf.mxu0  ;;  %v4079_v31 = vadd.f32 %v4078_v32, %v4077_v27 }
 0x3b8   : > { %v3721_v63 = vadd.f32 %v7651_v46, %v4865_v57  ;;  %v4281_v12 = vsel %vm3932_vm7, %v4174_v38, 0.0 }
 0x3b9   : > { %v3715_v23 = vpop.f32.mrf.mxu0  ;;  %v4081_v37 = vadd.f32 %v4080_v25, %v4079_v31  ;;  %v4282_v52 = vadd.f32 %v4281_v12, %v4280_v15 }
 0x3ba   : > { %v3851_v49 = vmax.f32 %v3721_v63, 0.0  ;;  %v3716_v28 = vadd.f32 %v7651_v46, %v3715_v23 }
 0x3bb   : > { %v4083_v56 = vadd.f32 %v4082_v51, %v4081_v37  ;;  %v4284_v50 = vadd.f32 %v4283_v20, %v4282_v52 }
 0x3bc   : > { %3980 = vst.msk [vmem:[%s7369_s23 + $0x178] sm:$0xff] %vm3932_vm7, %v3851_v49  ;;  %v3850_v62 = vmax.f32 %v3716_v28, 0.0  ;;  %v4177_v58 = vmul.f32 %v3851_v49, %v3851_v49  ;;  %v4090_v57 = vsel %vm3932_vm7, %v3851_v49, 0.0 }
 0x3bd   : > { %v4085_v22 = vadd.f32 %v4084_v34, %v4083_v56 }
 0x3be   : > { %3979 = vst.msk [vmem:[%s7369_s23 + $0x170] sm:$0xff] %vm3932_vm7, %v3850_v62  ;;  %v4868_v5 = vpop.f32.mrf.mxu0  ;;  %v4176_v19 = vmul.f32 %v3850_v62, %v3850_v62  ;;  %v4088_v10 = vsel %vm3932_vm7, %v3850_v62, 0.0  ;;  %v4287_v35 = vsel %vm3932_vm7, %v4177_v58, 0.0 }
 0x3bf   : > { %v3731_v16 = vadd.f32 %v7651_v46, %v4868_v5  ;;  %v4087_v39 = vadd.f32 %v4086_v60, %v4085_v22 }
 0x3c0   : > { %v3725_v21 = vpop.f32.mrf.mxu0  ;;  %v4285_v1 = vsel %vm3932_vm7, %v4176_v19, 0.0 }
 0x3c1   : > { %v3853_v14 = vmax.f32 %v3731_v16, 0.0  ;;  %v3726_v17 = vadd.f32 %v7651_v46, %v3725_v21  ;;  %v4089_v47 = vadd.f32 %v4088_v10, %v4087_v39  ;;  %v4286_v43 = vadd.f32 %v4285_v1, %v4284_v50 }
 0x3c3   : > { %3982 = vst.msk [vmem:[%s7369_s23 + $0x188] sm:$0xff] %vm3932_vm7, %v3853_v14  ;;  %v3852_v18 = vmax.f32 %v3726_v17, 0.0  ;;  %v4091_v63 = vadd.f32 %v4090_v57, %v4089_v47  ;;  %v4288_v29 = vadd.f32 %v4287_v35, %v4286_v43  ;;  %v4179_v3 = vmul.f32 %v3853_v14, %v3853_v14 }
 0x3c4   : > { %v4094_v49 = vsel %vm3932_vm7, %v3853_v14, 0.0 }
 0x3c5   : > { %3981 = vst.msk [vmem:[%s7369_s23 + $0x180] sm:$0xff] %vm3932_vm7, %v3852_v18  ;;  %v4178_v30 = vmul.f32 %v3852_v18, %v3852_v18  ;;  %v4092_v2 = vsel %vm3932_vm7, %v3852_v18, 0.0  ;;  %v4291_v59 = vsel %vm3932_vm7, %v4179_v3, 0.0 }
 0x3c6   : > { %v4871_v48 = vpop.f32.mrf.mxu0  ;;  %v4093_v28 = vadd.f32 %v4092_v2, %v4091_v63 }
 0x3c7   : > { %v3741_v33 = vadd.f32 %v7651_v46, %v4871_v48  ;;  %v4289_v42 = vsel %vm3932_vm7, %v4178_v30, 0.0 }
 0x3c8   : > { %v3735_v40 = vpop.f32.mrf.mxu0  ;;  %v4290_v27 = vadd.f32 %v4289_v42, %v4288_v29  ;;  %v4095_v11 = vadd.f32 %v4094_v49, %v4093_v28 }
 0x3c9   : > { %v3855_v45 = vmax.f32 %v3741_v33, 0.0  ;;  %v3736_v0 = vadd.f32 %v7651_v46, %v3735_v40 }
 0x3ca   : > { %v4292_v21 = vadd.f32 %v4291_v59, %v4290_v27 }
 0x3cb   : > { %3984 = vst.msk [vmem:[%s7369_s23 + $0x198] sm:$0xff] %vm3932_vm7, %v3855_v45  ;;  %v3854_v4 = vmax.f32 %v3736_v0, 0.0  ;;  %v4181_v44 = vmul.f32 %v3855_v45, %v3855_v45  ;;  %v4098_v61 = vsel %vm3932_vm7, %v3855_v45, 0.0 }
 0x3cd   : > { %3983 = vst.msk [vmem:[%s7369_s23 + $0x190] sm:$0xff] %vm3932_vm7, %v3854_v4  ;;  %v4180_v62 = vmul.f32 %v3854_v4, %v3854_v4  ;;  %v4096_v53 = vsel %vm3932_vm7, %v3854_v4, 0.0  ;;  %v4295_v51 = vsel %vm3932_vm7, %v4181_v44, 0.0 }
 0x3ce   : > { %v4097_v25 = vadd.f32 %v4096_v53, %v4095_v11 }
 0x3cf   : > { %v4874_v9 = vpop.f32.mrf.mxu0  ;;  %v4293_v16 = vsel %vm3932_vm7, %v4180_v62, 0.0 }
 0x3d0   : > { %v3751_v41 = vadd.f32 %v7651_v46, %v4874_v9  ;;  %v4294_v14 = vadd.f32 %v4293_v16, %v4292_v21  ;;  %v4099_v38 = vadd.f32 %v4098_v61, %v4097_v25 }
 0x3d1   : > { %v3745_v6 = vpop.f32.mrf.mxu0 }
 0x3d2   : > { %v3857_v13 = vmax.f32 %v3751_v41, 0.0  ;;  %v3746_v23 = vadd.f32 %v7651_v46, %v3745_v6  ;;  %v4296_v12 = vadd.f32 %v4295_v51, %v4294_v14 }
 0x3d4   : > { %3986 = vst.msk [vmem:[%s7369_s23 + $0x1a8] sm:$0xff] %vm3932_vm7, %v3857_v13  ;;  %v3856_v24 = vmax.f32 %v3746_v23, 0.0  ;;  %v4183_v15 = vmul.f32 %v3857_v13, %v3857_v13  ;;  %v4102_v40 = vsel %vm3932_vm7, %v3857_v13, 0.0 }
 0x3d6   : > { %3985 = vst.msk [vmem:[%s7369_s23 + $0x1a0] sm:$0xff] %vm3932_vm7, %v3856_v24  ;;  %v4182_v8 = vmul.f32 %v3856_v24, %v3856_v24  ;;  %v4100_v18 = vsel %vm3932_vm7, %v3856_v24, 0.0  ;;  %v4299_v0 = vsel %vm3932_vm7, %v4183_v15, 0.0 }
 0x3d7   : > { %v4877_v54 = vpop.f32.mrf.mxu0  ;;  %v4101_v36 = vadd.f32 %v4100_v18, %v4099_v38 }
 0x3d8   : > { %v3761_v5 = vadd.f32 %v7651_v46, %v4877_v54  ;;  %v4297_v34 = vsel %vm3932_vm7, %v4182_v8, 0.0 }
 0x3d9   : > { %v3755_v32 = vpop.f32.mrf.mxu0  ;;  %v4298_v26 = vadd.f32 %v4297_v34, %v4296_v12  ;;  %v4103_v45 = vadd.f32 %v4102_v40, %v4101_v36 }
 0x3da   : > { %v3859_v31 = vmax.f32 %v3761_v5, 0.0  ;;  %v3756_v17 = vadd.f32 %v7651_v46, %v3755_v32 }
 0x3db   : > { %v4300_v39 = vadd.f32 %v4299_v0, %v4298_v26 }
 0x3dc   : > { %3988 = vst.msk [vmem:[%s7369_s23 + $0x1b8] sm:$0xff] %vm3932_vm7, %v3859_v31  ;;  %v3858_v37 = vmax.f32 %v3756_v17, 0.0  ;;  %v4185_v4 = vmul.f32 %v3859_v31, %v3859_v31  ;;  %v4106_v58 = vsel %vm3932_vm7, %v3859_v31, 0.0 }
 0x3de   : > { %v4880_v7 = vpop.f32.mrf.mxu0  ;;  %3987 = vst.msk [vmem:[%s7369_s23 + $0x1b0] sm:$0xff] %vm3932_vm7, %v3858_v37  ;;  %v4184_v33 = vmul.f32 %v3858_v37, %v3858_v37  ;;  %v4104_v52 = vsel %vm3932_vm7, %v3858_v37, 0.0  ;;  %v4303_v2 = vsel %vm3932_vm7, %v4185_v4, 0.0 }
 0x3df   : > { %v3771_v55 = vadd.f32 %v7651_v46, %v4880_v7  ;;  %v4105_v10 = vadd.f32 %v4104_v52, %v4103_v45 }
 0x3e0   : > { %v3765_v56 = vpop.f32.mrf.mxu0  ;;  %v4301_v60 = vsel %vm3932_vm7, %v4184_v33, 0.0 }
 0x3e1   : > { %v3861_v48 = vmax.f32 %v3771_v55, 0.0  ;;  %v3766_v22 = vadd.f32 %v7651_v46, %v3765_v56  ;;  %v4302_v47 = vadd.f32 %v4301_v60, %v4300_v39  ;;  %v4107_v43 = vadd.f32 %v4106_v58, %v4105_v10 }
 0x3e3   : > { %3990 = vst.msk [vmem:[%s7369_s23 + $0x1c8] sm:$0xff] %vm3932_vm7, %v3861_v48  ;;  %v3860_v19 = vmax.f32 %v3766_v22, 0.0  ;;  %v4304_v13 = vadd.f32 %v4303_v2, %v4302_v47  ;;  %v4187_v35 = vmul.f32 %v3861_v48, %v3861_v48  ;;  %v4110_v24 = vsel %vm3932_vm7, %v3861_v48, 0.0 }
 0x3e5   : > { %3989 = vst.msk [vmem:[%s7369_s23 + $0x1c0] sm:$0xff] %vm3932_vm7, %v3860_v19  ;;  %v4186_v20 = vmul.f32 %v3860_v19, %v3860_v19  ;;  %v4108_v30 = vsel %vm3932_vm7, %v3860_v19, 0.0  ;;  %v4307_v53 = vsel %vm3932_vm7, %v4187_v35, 0.0 }
 0x3e6   : > { %v4883_v1 = vpop.f32.mrf.mxu0  ;;  %v4109_v63 = vadd.f32 %v4108_v30, %v4107_v43 }
 0x3e7   : > { %v3781_v50 = vadd.f32 %v7651_v46, %v4883_v1  ;;  %v4305_v6 = vsel %vm3932_vm7, %v4186_v20, 0.0 }
 0x3e8   : > { %v3775_v9 = vpop.f32.mrf.mxu0  ;;  %v4306_v42 = vadd.f32 %v4305_v6, %v4304_v13  ;;  %v4111_v27 = vadd.f32 %v4110_v24, %v4109_v63 }
 0x3e9   : > { %v3863_v41 = vmax.f32 %v3781_v50, 0.0  ;;  %v3776_v57 = vadd.f32 %v7651_v46, %v3775_v9 }
 0x3ea   : > { %v4308_v16 = vadd.f32 %v4307_v53, %v4306_v42 }
 0x3eb   : > { %3992 = vst.msk [vmem:[%s7369_s23 + $0x1d8] sm:$0xff] %vm3932_vm7, %v3863_v41  ;;  %v3862_v23 = vmax.f32 %v3776_v57, 0.0  ;;  %v4189_v32 = vmul.f32 %v3863_v41, %v3863_v41  ;;  %v4114_v31 = vsel %vm3932_vm7, %v3863_v41, 0.0 }
 0x3ed   : > { %3991 = vst.msk [vmem:[%s7369_s23 + $0x1d0] sm:$0xff] %vm3932_vm7, %v3862_v23  ;;  %v4188_v28 = vmul.f32 %v3862_v23, %v3862_v23  ;;  %v4112_v3 = vsel %vm3932_vm7, %v3862_v23, 0.0  ;;  %v4311_v37 = vsel %vm3932_vm7, %v4189_v32, 0.0 }
 0x3ee   : > { %v4113_v59 = vadd.f32 %v4112_v3, %v4111_v27 }
 0x3ef   : > { %v4886_v29 = vpop.f32.mrf.mxu0  ;;  %v4309_v54 = vsel %vm3932_vm7, %v4188_v28, 0.0 }
 0x3f0   : > { %v3791_v62 = vadd.f32 %v7651_v46, %v4886_v29  ;;  %v4310_v21 = vadd.f32 %v4309_v54, %v4308_v16  ;;  %v4115_v8 = vadd.f32 %v4114_v31, %v4113_v59 }
 0x3f1   : > { %v3785_v49 = vpop.f32.mrf.mxu0 }
 0x3f2   : > { %v3865_v11 = vmax.f32 %v3791_v62, 0.0  ;;  %v3786_v5 = vadd.f32 %v7651_v46, %v3785_v49  ;;  %v4312_v38 = vadd.f32 %v4311_v37, %v4310_v21 }
 0x3f4   : > { %3994 = vst.msk [vmem:[%s7369_s23 + $0x1e8] sm:$0xff] %vm3932_vm7, %v3865_v11  ;;  %v3864_v25 = vmax.f32 %v3786_v5, 0.0  ;;  %v4191_v51 = vmul.f32 %v3865_v11, %v3865_v11  ;;  %v4118_v12 = vsel %vm3932_vm7, %v3865_v11, 0.0 }
 0x3f6   : > { %3993 = vst.msk [vmem:[%s7369_s23 + $0x1e0] sm:$0xff] %vm3932_vm7, %v3864_v25  ;;  %v4116_v17 = vsel %vm3932_vm7, %v3864_v25, 0.0  ;;  %v4190_v44 = vmul.f32 %v3864_v25, %v3864_v25  ;;  %v4315_v15 = vsel %vm3932_vm7, %v4191_v51, 0.0 }
 0x3f7   : > { %v4889_v14 = vpop.f32.mrf.mxu0  ;;  %v4117_v7 = vadd.f32 %v4116_v17, %v4115_v8 }
 0x3f8   : > { %v4313_v61 = vsel %vm3932_vm7, %v4190_v44, 0.0  ;;  %v3801_v18 = vadd.f32 %v7651_v46, %v4889_v14 }
 0x3f9   : > { %v3795_v55 = vpop.f32.mrf.mxu0  ;;  %v4314_v36 = vadd.f32 %v4313_v61, %v4312_v38  ;;  %v4119_v22 = vadd.f32 %v4118_v12, %v4117_v7 }
 0x3fa   : > { %v3867_v34 = vmax.f32 %v3801_v18, 0.0  ;;  %v3796_v56 = vadd.f32 %v7651_v46, %v3795_v55 }
 0x3fb   : > { %v4316_v52 = vadd.f32 %v4315_v15, %v4314_v36 }
 0x3fc   : > { %3996 = vst.msk [vmem:[%s7369_s23 + $0x1f8] sm:$0xff] %vm3932_vm7, %v3867_v34  ;;  %v3866_v48 = vmax.f32 %v3796_v56, 0.0  ;;  %v4193_v33 = vmul.f32 %v3867_v34, %v3867_v34  ;;  %v4122_v46 = vsel %vm3932_vm7, %v3867_v34, 0.0 }
 0x3fe   : > { %3995 = vst.msk [vmem:[%s7369_s23 + $0x1f0] sm:$0xff] %vm3932_vm7, %v3866_v48  ;;  %v4120_v26 = vsel %vm3932_vm7, %v3866_v48, 0.0  ;;  %v4192_v19 = vmul.f32 %v3866_v48, %v3866_v48  ;;  %v4319_v10 = vsel %vm3932_vm7, %v4193_v33, 0.0 }
 0x3ff   : > { %v4121_v40 = vadd.f32 %v4120_v26, %v4119_v22 }
 0x400   : > { %v4317_v45 = vsel %vm3932_vm7, %v4192_v19, 0.0 }
 0x401   : > { %v4123_v0 = vadd.f32 %v4122_v46, %v4121_v40  ;;  %v4318_v60 = vadd.f32 %v4317_v45, %v4316_v52 }
 0x403   : > { %v4124_v39 = vrot.slane %v4123_v0, 4  ;;  %v4320_v4 = vadd.f32 %v4319_v10, %v4318_v60 }
 0x405   : > { %v4125_v20 = vadd.f32 %v4124_v39, %v4123_v0  ;;  %v4321_v1 = vrot.slane %v4320_v4, 4 }
 0x407   : > { %v4126_v47 = vrot.slane %v4125_v20, 2  ;;  %v4322_v50 = vadd.f32 %v4321_v1, %v4320_v4 }
 0x409   : > { %v4127_v58 = vadd.f32 %v4126_v47, %v4125_v20  ;;  %v4323_v30 = vrot.slane %v4322_v50, 2 }
 0x40b   : > { %v4128_v9 = vrot.slane %v4127_v58, 1  ;;  %v4324_v43 = vadd.f32 %v4323_v30, %v4322_v50 }
 0x40d   : > { %v4325_v41 = vrot.slane %v4324_v43, 1  ;;  %v4129_v57 = vadd.f32 %v4128_v9, %v4127_v58 }
 0x40f   : > { %v4326_v2 = vadd.f32 %v4325_v41, %v4324_v43 }
 0x411   : > { %v4328_v6 = vsel %vm4327_vm0, %v4129_v57, %v4326_v2 }
 0x412   : > { %4330 = vst.msk [vmem:[%s359_s11] sm:$0x3] %vm4329_vm6, %v4328_v6 }
 0x413 PF: > { %s20_s30 = sadd.s32 1, %s5248_s30  }
 0x414   : > { %p17_p5 = scmp.ge.s32.totalorder %s20_s30, 4  }
 0x416   :  { %19 = sbr.rel (!%p17_p5) target bundleno = 1 (0x1), region = 102 }

</bundles_post_ra>
